<compile_context>
chip_gen: v6e
topology: v6e:2x2x1
jax: 0.10.0
libtpu: 0.0.40
codegen_flags: <defaults>
</compile_context>

<pallas_src>
import math
import numpy as np
import jax
import jax.numpy as jnp
from jax.experimental import pallas as pl
from jax.experimental.pallas import tpu as pltpu

rad2mas = 3600.0 * 180.0 * 1000.0 / math.pi
rad2arc = rad2mas / 1000.0
deg2rad = math.pi / 180.0


# ----------------------------------------------------------------------------
# init-time helpers (numpy, parameter independent)
# ----------------------------------------------------------------------------
def _bessel_j1(x):
    """Abramowitz & Stegun 9.4.4 / 9.4.6 rational approximation of J1 (x >= 0)."""
    x = np.asarray(x, dtype=np.float64)
    ax = np.abs(x)
    y = (x / 3.0) ** 2
    small = x * (0.5 - 0.56249985 * y + 0.21093573 * y**2 - 0.03954289 * y**3
                 + 0.00443319 * y**4 - 0.00031761 * y**5 + 0.00001109 * y**6)
    z = 3.0 / np.where(ax < 1e-30, 1e-30, ax)
    f1 = (0.79788456 + 0.00000156 * z + 0.01659667 * z**2 + 0.00017105 * z**3
          - 0.00249511 * z**4 + 0.00113653 * z**5 - 0.00020033 * z**6)
    th = (ax - 2.35619449 + 0.12499612 * z + 0.00005650 * z**2 - 0.00637879 * z**3
          + 0.00074348 * z**4 + 0.00079824 * z**5 - 0.00029166 * z**6)
    large = np.sign(x) * f1 * np.cos(th) / np.sqrt(np.where(ax < 1e-30, 1e-30, ax))
    return np.where(ax < 3.0, small, large)


def _bilinear_resize(img, oh, ow):
    """PyTorch F.interpolate(mode='bilinear', align_corners=False) equivalent."""
    ih, iw = img.shape
    sy, sx = ih / oh, iw / ow
    ys = (np.arange(oh) + 0.5) * sy - 0.5
    xs = (np.arange(ow) + 0.5) * sx - 0.5
    y0 = np.floor(ys).astype(int)
    x0 = np.floor(xs).astype(int)
    wy = (ys - y0)[:, None]
    wx = (xs - x0)[None, :]
    y0c, y1c = np.clip(y0, 0, ih - 1), np.clip(y0 + 1, 0, ih - 1)
    x0c, x1c = np.clip(x0, 0, iw - 1), np.clip(x0 + 1, 0, iw - 1)
    Ia = img[y0c[:, None], x0c[None, :]]
    Ib = img[y0c[:, None], x1c[None, :]]
    Ic = img[y1c[:, None], x0c[None, :]]
    Id = img[y1c[:, None], x1c[None, :]]
    return (1 - wy) * ((1 - wx) * Ia + wx * Ib) + wy * ((1 - wx) * Ic + wx * Id)


def _trapz(y, x):
    return float(np.sum((y[1:] + y[:-1]) * 0.5 * (x[1:] - x[:-1])))


def build_constants():
    # ---- synthetic AO configuration (deterministic, SPHERE/IRDIS-like, small) ----
    D, psInMas, nPix = 8.0, 25.0, 32
    pitch = 0.85
    kc = 1.0 / (2.0 * pitch)
    wvl, GS_wvl = 1.65e-6, 0.79e-6
    wind_speed, wind_dir = np.array([10.0]), np.array([45.0])
    Cn2_weights = np.array([0.7, 0.3])
    nL = Cn2_weights.size
    WFS_d_sub, WFS_n_sub = 0.2, 40.0
    WFS_det_clock_rate, WFS_FOV = 1.0, 240.0
    WFS_RON, WFS_psInMas = 0.2, 417.0
    WFS_wvl, WFS_spot_FWHM_max = GS_wvl, 0.0
    WFS_excess, WFS_Nph = 2.0, 100.0
    HOloop_rate, HOloop_delay, HOloop_gain = 1000.0, 2, 0.5

    # ---- grids (TipToy.InitGrids) ----
    pixels_per_l_D = wvl * rad2mas / (psInMas * D)
    sampling_factor = int(np.ceil(2.0 / pixels_per_l_D))
    sampling = sampling_factor * pixels_per_l_D
    nOtf = nPix * sampling_factor
    dk = 1.0 / D / sampling
    cte = (24 * math.gamma(6 / 5) / 5) ** (5 / 6) * \
        (math.gamma(11 / 6) ** 2 / (2 * np.pi ** (11 / 3)))

    lin = np.linspace(-nOtf / 2, nOtf / 2 - 1, nOtf) * dk + 1e-10
    kx, ky = np.meshgrid(lin, lin, indexing='ij')
    k2 = kx**2 + ky**2
    mask = np.ones_like(k2)
    mask[k2 <= kc**2] = 0.0
    mask_corrected = 1.0 - mask

    nOtf_AO = int(2 * kc / dk)
    nOtf_AO += nOtf_AO % 2
    pad = (nOtf - nOtf_AO) // 2

    n_times = min(4, max(2, int(np.ceil(nOtf / nOtf_AO / 2))))
    ids = [[mi, ni] for mi in range(-n_times, n_times)
           for ni in range(-n_times, n_times) if mi or ni]
    ids = np.array(ids, dtype=np.float64)
    m_comb, n_comb = ids[:, 0], ids[:, 1]
    N_combs = m_comb.shape[0]

    roi = (slice(pad, pad + nOtf_AO), slice(pad, pad + nOtf_AO))
    mask_corrected_AO = mask_corrected[roi]
    kx_AO, ky_AO = kx[roi], ky[roi]
    k_AO = np.sqrt(k2[roi])

    km = kx_AO[:, :, None, None] - (m_comb / WFS_d_sub)[None, None, :, None]
    kn = ky_AO[:, :, None, None] - (n_comb / WFS_d_sub)[None, None, :, None]

    U, V = np.meshgrid(np.linspace(0, nOtf - 1, nOtf),
                       np.linspace(0, nOtf - 1, nOtf), indexing='ij')
    U = (U - nOtf / 2) * 2 / nOtf
    V = (V - nOtf / 2) * 2 / nOtf
    U2, V2, UV = U**2, V**2, U * V

    # ---- synthetic pupil -> static OTF (replaces FITS pupil + apodizer) ----
    pupil_pix = 32
    cg = (np.arange(pupil_pix) - (pupil_pix - 1) / 2) / (pupil_pix / 2)
    px_, py_ = np.meshgrid(cg, cg, indexing='ij')
    pr = np.sqrt(px_**2 + py_**2)
    pupil = ((pr <= 1.0) & (pr >= 0.14)).astype(np.float64)
    padded_pix = int(pupil_pix * sampling)
    pupil_padded = np.zeros((padded_pix, padded_pix))
    c0 = padded_pix // 2 - pupil_pix // 2
    pupil_padded[c0:c0 + pupil_pix, c0:c0 + pupil_pix] = pupil      # apodizer == 1
    x_fft = np.fft.fft2(pupil_padded)
    ac = np.fft.fftshift(np.fft.ifft2(x_fft * np.conj(x_fft)) / padded_pix * padded_pix)
    OTF_static = _bilinear_resize(np.real(ac), nOtf, nOtf)
    OTF_static = OTF_static / OTF_static.max()

    def piston_filter(f):
        xpf = np.pi * D * f
        R = _bessel_j1(xpf) / xpf
        pfil = 1.0 - 4 * R**2
        pfil[nOtf_AO // 2, nOtf_AO // 2, ...] *= 0.0
        return pfil

    pist = piston_filter(k_AO)
    PR = piston_filter(np.hypot(km, kn))

    # ---- Controller() (parameter independent) ----
    Ts = 1.0 / HOloop_rate
    delay, loopGain = HOloop_delay, HOloop_gain

    def tfuncs(freq):
        z = np.exp(-2j * np.pi * freq * Ts)
        hInt = loopGain / (1.0 - z ** (-1.0))
        rtfInt = 1.0 / (1 + hInt * z ** (-delay))
        atfInt = hInt * z ** (-delay) * rtfInt
        ntfInt = atfInt / z
        return hInt, rtfInt, atfInt, ntfInt

    fgrid = np.logspace(-3, np.log10(0.5 / Ts), 1000)
    _, _, _, ntf_f = tfuncs(fgrid)
    noise_gain = _trapz(np.abs(ntf_f) ** 2, fgrid) * 2 * Ts

    vx = float(wind_speed[0] * np.cos(wind_dir[0] * np.pi / 180.0))
    vy = float(wind_speed[0] * np.sin(wind_dir[0] * np.pi / 180.0))
    fi = -vx * kx_AO - vy * ky_AO             # thetaWind = 0 -> cos(theta) = 1
    _, _, atf, _ = tfuncs(fi)
    wsum = float(Cn2_weights.sum())
    h1 = atf * wsum                            # sum over Cn2 layers
    h2 = np.abs(atf) ** 2 * wsum

    # ---- ReconstructionFilter constants (MV=0 => Rx, Ry parameter independent) ----
    Av = np.sinc(WFS_d_sub * kx_AO) * np.sinc(WFS_d_sub * ky_AO) * \
        np.exp(1j * np.pi * WFS_d_sub * (kx_AO + ky_AO))
    SxAv = 2j * np.pi * kx_AO * WFS_d_sub * Av
    SyAv = 2j * np.pi * ky_AO * WFS_d_sub * Av
    gPSD = np.abs(SxAv) ** 2 + np.abs(SyAv) ** 2
    Rx, Ry = np.conj(SxAv) / gPSD, np.conj(SyAv) / gPSD
    Rx[nOtf_AO // 2, nOtf_AO // 2] *= 0
    Ry[nOtf_AO // 2, nOtf_AO // 2] *= 0

    Ff = Rx * SxAv + Ry * SyAv
    ST_factor = 1.0 + np.abs(Ff) ** 2 * h2 - 2 * np.real(Ff * h1)          # A == 1
    noise_base = np.abs(Rx ** 2 + Ry ** 2) / (2 * kc) ** 2 * pist * mask_corrected_AO

    # ---- AliasingPSD constants ----
    T = WFS_det_clock_rate / HOloop_rate
    td = T * HOloop_delay
    Rx1 = (2j * np.pi * WFS_d_sub * Rx)[:, :, None, None]
    Ry1 = (2j * np.pi * WFS_d_sub * Ry)[:, :, None, None]
    Q = (Rx1 * km + Ry1 * kn) * np.sinc(WFS_d_sub * km) * np.sinc(WFS_d_sub * kn)
    tf_rep = np.broadcast_to(h1[:, :, None, None], (nOtf_AO, nOtf_AO, N_combs, nL))
    avr = Cn2_weights[None, None, None, :] * (
        np.sinc(km * vx * T) * np.sinc(kn * vy * T)
        * np.exp(2j * np.pi * km * vx * td) * np.exp(2j * np.pi * kn * vy * td) * tf_rep)
    avr_sum = avr.sum(axis=3, keepdims=True)
    alias_const = (PR * np.abs(Q * avr_sum) ** 2)[:, :, :, 0]              # (H, W, Nc)
    km2kn2 = (km ** 2 + kn ** 2)[:, :, :, 0]                               # (H, W, Nc)

    # ---- Chromatism / norms / jitter constants ----
    IOR = lambda lam: 23.7 + 6839.4 / (130 - (lam * 1e6) ** (-2)) + \
        45.47 / (38.9 - (lam * 1e6) ** (-2))
    n2, n1 = IOR(GS_wvl), IOR(wvl)
    chrom_factor = float(((n2 - n1) / n2) ** 2)

    dk_psd = 2 * kc / nOtf_AO
    PSD_norm = float((dk_psd * 500 / 2 / np.pi) ** 2)
    noise_PSD_norm = float((dk_psd * GS_wvl * 1e9 / 2 / np.pi) ** 2)

    u_max = sampling * D / wvl / (3600 * 180 * 1000.0 / np.pi)
    norm_fact = float(u_max ** 2 * (2 * np.sqrt(2 * np.log(2))) ** 2)
    sf_const = float((2 * np.pi * 1e-9 / wvl) ** 2)
    phasor_coef = float(-np.pi * sampling_factor)
    wvl_ratio2 = float((wvl / GS_wvl) ** 2)

    # ---- fold the parameter-independent multipliers into per-term maps ----
    def pad_full(a):
        out = np.zeros((nOtf, nOtf))
        out[pad:pad + nOtf_AO, pad:pad + nOtf_AO] = a
        return out

    # fitting + spatio-temporal + chromatism share cte*r0^-5/3*(k2+1/L0^2)^-11/6,
    # so their parameter-independent multipliers collapse into one full-grid map.
    combined_full = PSD_norm * (
        mask
        + pad_full(ST_factor * mask_corrected_AO) * wvl_ratio2
        + chrom_factor * pad_full(pist))
    noise_full = pad_full(noise_base)

    alias_c = np.transpose(alias_const, (2, 0, 1)) * \
        (mask_corrected_AO * PSD_norm)[None, :, :]                 # (Nc, nAO, nAO)
    km2_c = np.transpose(km2kn2, (2, 0, 1))                        # (Nc, nAO, nAO)
    # lane-pad the AO-grid aliasing constants to the full grid width so that the
    # in-kernel ROI add is a single tile-aligned sublane-slice store.
    alias_pad = np.zeros((N_combs, nOtf_AO, nOtf))
    alias_pad[:, :, pad:pad + nOtf_AO] = alias_c
    km2_pad = np.zeros((N_combs, nOtf_AO, nOtf))
    km2_pad[:, :, pad:pad + nOtf_AO] = km2_c

    # ---- centered DFT matrix: fftshift(fft2(fftshift(X))) == G @ X @ G, G = P F P ----
    idx = np.arange(nOtf)
    Fm = np.exp(-2j * np.pi * np.outer(idx, idx) / nOtf)
    P = np.zeros((nOtf, nOtf))
    P[idx, (idx + nOtf // 2) % nOtf] = 1.0
    G = P @ Fm @ P                               # symmetric
    Gr, Gi = np.real(G), np.imag(G)

    # ---- exact 'area' pooling nOtf -> nPix as a matmul pair ----
    PmL = np.zeros((nPix, nOtf))
    for i in range(nPix):
        PmL[i, i * sampling_factor:(i + 1) * sampling_factor] = 1.0 / sampling_factor
    PmR = PmL.T.copy()

    f32 = np.float32
    C64 = np.stack([combined_full, noise_full, k2, U, V, U2, V2, UV,
                    OTF_static, Gr, Gi]).astype(f32)              # (11, nOtf, nOtf)

    return dict(
        nPix=nPix, nOtf=nOtf, nOtf_AO=nOtf_AO, sampling_factor=sampling_factor,
        pad=pad, N_combs=N_combs, cte=float(cte),
        wvl=float(wvl), GS_wvl=float(GS_wvl),
        noise_gain=float(noise_gain), noise_PSD_norm=noise_PSD_norm,
        norm_fact=norm_fact, sf_const=sf_const, phasor_coef=phasor_coef,
        WFS_d_sub=float(WFS_d_sub), WFS_n_sub=float(WFS_n_sub), WFS_FOV=float(WFS_FOV),
        WFS_RON=float(WFS_RON), WFS_psInMas=float(WFS_psInMas), WFS_wvl=float(WFS_wvl),
        WFS_spot_FWHM_max=float(WFS_spot_FWHM_max), WFS_excess=float(WFS_excess),
        WFS_Nph=float(WFS_Nph),
        C64=jnp.asarray(C64),
        km2_pad=jnp.asarray(km2_pad.astype(f32)),
        alias_pad=jnp.asarray(alias_pad.astype(f32)),
        PmL=jnp.asarray(PmL.astype(f32)),
        PmR=jnp.asarray(PmR.astype(f32)),
    )


# ----------------------------------------------------------------------------
# forward (TipToy.forward -> PSD2PSF), single fused Pallas kernel
# ----------------------------------------------------------------------------
def make_forward(C):
    f32 = jnp.float32
    nOtf, nAO, nPix = C['nOtf'], C['nOtf_AO'], C['nPix']
    NC, pad = C['N_combs'], C['pad']
    SFC = float(C['sf_const'])                  # (2*pi*1e-9/wvl)^2
    PHC = float(C['phasor_coef'])               # -pi*sampling_factor
    NF = float(C['norm_fact'])
    NEG116 = -11.0 / 6.0
    (I_COMB, I_NOISE, I_K2, I_U, I_V, I_U2, I_V2, I_UV,
     I_STAT, I_GR, I_GI) = range(11)

    def tiptoy_kernel(sc_ref, c64_ref, km2_ref, alf_ref, pml_ref, pmr_ref,
                      out_ref, psd_ref):
        # sc_ref (SMEM, (B,10)):
        # [cte*r0^-5/3, 1/L0^2, noise_scale, PHC*dx, PHC*dy,
        #  0.5*NF*Jx^2, 0.5*NF*Jy^2, NF*|Jxy|, F, bg]
        b = pl.program_id(0)
        cte_r053 = sc_ref[b, 0]
        inv_L0sq = sc_ref[b, 1]
        noise_sc = sc_ref[b, 2]
        px, py = sc_ref[b, 3], sc_ref[b, 4]
        ja, jb, jc = sc_ref[b, 5], sc_ref[b, 6], sc_ref[b, 7]
        Fp, bgp = sc_ref[b, 8], sc_ref[b, 9]

        # --- PSD = fitting + spatio-temporal + chromatism + WFS-noise (full grid) ---
        base = jnp.exp(NEG116 * jnp.log(c64_ref[I_K2] + inv_L0sq))
        psd_ref[...] = cte_r053 * base * c64_ref[I_COMB] + noise_sc * c64_ref[I_NOISE]

        # --- AliasingPSD: 15-comb accumulation, one comb live at a time ---
        alias = alf_ref[0] * jnp.exp(NEG116 * jnp.log(km2_ref[0] + inv_L0sq))
        for comb in range(1, NC):
            wmn = jnp.exp(NEG116 * jnp.log(km2_ref[comb] + inv_L0sq))
            alias = alias + alf_ref[comb] * wmn
        # add into the corrected ROI (tile-aligned sublane slice; lanes pre-padded)
        psd_ref[pad:pad + nAO, :] = psd_ref[pad:pad + nAO, :] + cte_r053 * alias

        # --- cov = 2*fftshift(fft2(fftshift(PSD))) == 2 * (G @ PSD @ G) on the MXU ---
        Gr = c64_ref[I_GR]
        Gi = c64_ref[I_GI]
        X = psd_ref[...]
        Ar = jnp.dot(Gr, X, preferred_element_type=f32)
        Ai = jnp.dot(Gi, X, preferred_element_type=f32)
        raw_r = (jnp.dot(Ar, Gr, preferred_element_type=f32)
                 - jnp.dot(Ai, Gi, preferred_element_type=f32))
        raw_i = (jnp.dot(Ar, Gi, preferred_element_type=f32)
                 + jnp.dot(Ai, Gr, preferred_element_type=f32))
        # |cov|.max()/2 reduced in-kernel (the factor 2 cancels against -0.5*SF*SFC)
        raw_max = jnp.sqrt(jnp.max(raw_r * raw_r + raw_i * raw_i))

        # --- OTF = OTF_turb * OTF_static * fftPhasor * OTF_jitter, fused to 3 EUP ops:
        #     exp(turb_mag + jitter), cos/sin(turb_phase + phasor_phase) ---
        mlog = SFC * (raw_r - raw_max) - (ja * c64_ref[I_U2] + jb * c64_ref[I_V2]
                                          + jc * c64_ref[I_UV])
        ang = SFC * raw_i + px * c64_ref[I_U] + py * c64_ref[I_V]
        amp = jnp.exp(mlog) * c64_ref[I_STAT]
        otf_r = amp * jnp.cos(ang)
        otf_i = amp * jnp.sin(ang)

        # --- PSF = |fftshift(ifft2(fftshift(OTF)))| == |conj(G) @ OTF @ conj(G)| / N^2
        #     (the 1/N^2 and 1/4 pooling scales cancel in the sum normalisation) ---
        Cr = (jnp.dot(Gr, otf_r, preferred_element_type=f32)
              + jnp.dot(Gi, otf_i, preferred_element_type=f32))
        Ci = (jnp.dot(Gr, otf_i, preferred_element_type=f32)
              - jnp.dot(Gi, otf_r, preferred_element_type=f32))
        Pr = (jnp.dot(Cr, Gr, preferred_element_type=f32)
              + jnp.dot(Ci, Gi, preferred_element_type=f32))
        Pi = (jnp.dot(Ci, Gr, preferred_element_type=f32)
              - jnp.dot(Cr, Gi, preferred_element_type=f32))
        psf = jnp.sqrt(Pr * Pr + Pi * Pi)

        # --- exact 'area' pooling nOtf->nPix on the MXU + sum normalisation ---
        pooled = jnp.dot(jnp.dot(pml_ref[...], psf, preferred_element_type=f32),
                         pmr_ref[...], preferred_element_type=f32)
        out_ref[0] = pooled * (Fp / jnp.sum(pooled)) + bgp          # norm_regime 'sum'

    c64, km2, alf = C['C64'], C['km2_pad'], C['alias_pad']
    pml, pmr = C['PmL'], C['PmR']

    def noise_variance(r0_abs):
        # TODO(synk): r0_new() is not defined in the source snippet; standard
        #             lambda^(6/5) r0 rescaling is used.
        r0_WFS = r0_abs * (C['GS_wvl'] / 5e-7) ** 1.2
        WFS_nPix = C['WFS_FOV'] / C['WFS_n_sub']
        WFS_pixelScale = C['WFS_psInMas'] / 1000.0
        nD = max(1.0, rad2arc * C['wvl'] / C['WFS_d_sub'] / WFS_pixelScale)
        varRON = np.pi ** 2 / 3 * (C['WFS_RON'] ** 2 / C['WFS_Nph'] ** 2) * \
            (WFS_nPix ** 2 / nD) ** 2
        nT = jnp.maximum(1.0, jnp.hypot(C['WFS_spot_FWHM_max'] / 1000.0,
                                        rad2arc * C['WFS_wvl'] / r0_WFS) / WFS_pixelScale)
        varShot = np.pi ** 2 / (2 * C['WFS_Nph']) * (nT / nD) ** 2
        return C['WFS_excess'] * (varRON + varShot)

    @jax.jit
    def forward(x):
        B = x.shape[0]
        cols = [x[:, i].astype(f32) for i in range(10)]
        r0, L0, F, dx, dy, bg, dn, Jx, Jy, Jxy = cols
        r0a = jnp.abs(r0)
        WFS_noise_var = jnp.abs(dn + noise_variance(r0a))
        cte_r053 = jnp.float32(C['cte']) * r0a ** (-5.0 / 3.0)
        inv_L0sq = 1.0 / (L0 * L0)
        noise_scal = jnp.float32(C['noise_gain'] * C['noise_PSD_norm']) * WFS_noise_var
        px = jnp.float32(PHC) * dx
        py = jnp.float32(PHC) * dy
        ja = jnp.float32(0.5 * NF) * Jx * Jx                 # |Jx|^2 == Jx^2
        jb = jnp.float32(0.5 * NF) * Jy * Jy
        jc = jnp.float32(NF) * jnp.abs(Jxy)                  # original uses Jxy.abs()
        sc = jnp.stack([cte_r053, inv_L0sq, noise_scal, px, py, ja, jb, jc, F, bg],
                       axis=1).astype(f32)                   # (B, 10) scalars -> SMEM

        out = pl.pallas_call(
            tiptoy_kernel,
            grid=(B,),
            out_shape=jax.ShapeDtypeStruct((B, nPix, nPix), f32),
            in_specs=[
                pl.BlockSpec(memory_space=pltpu.MemorySpace.SMEM),      # per-sample scalars
                pl.BlockSpec((11, nOtf, nOtf), lambda b: (0, 0, 0)),    # stacked 64x64 consts
                pl.BlockSpec((NC, nAO, nOtf), lambda b: (0, 0, 0)),     # km^2+kn^2 (padded)
                pl.BlockSpec((NC, nAO, nOtf), lambda b: (0, 0, 0)),     # aliasing map (padded)
                pl.BlockSpec((nPix, nOtf), lambda b: (0, 0)),           # pooling (left)
                pl.BlockSpec((nOtf, nPix), lambda b: (0, 0)),           # pooling (right)
            ],
            out_specs=pl.BlockSpec((1, nPix, nPix), lambda b: (b, 0, 0)),
            scratch_shapes=[pltpu.VMEM((nOtf, nOtf), f32)],             # PSD accumulator
            compiler_params=pltpu.CompilerParams(
                dimension_semantics=("parallel",)),                     # megacore on v7x
        )(sc, c64, km2, alf, pml, pmr)

        out = out.astype(f32)
        return out[0] if B == 1 else out

    return forward


# ----------------------------------------------------------------------------
if __name__ == "__main__":
    C = build_constants()
    forward = make_forward(C)

    # x rows = [r0, L0, F, dx, dy, bg, dn, Jx, Jy, Jxy]; batch of 2 parameter sets
    key = jax.random.PRNGKey(0)
    base = jnp.array([[0.15, 25.0, 1.0, 0.10, -0.05, 0.00, 0.05, 10.0, 10.0, 2.0],
                      [0.12, 22.0, 1.1, -0.20, 0.08, 0.01, 0.03, 8.0, 12.0, 1.5]],
                     dtype=jnp.float32)
    x = base + 0.01 * jax.random.normal(key, base.shape, dtype=jnp.float32)

    psf = jax.block_until_ready(forward(x))
    assert psf.shape == (2, C['nPix'], C['nPix'])
    assert bool(jnp.all(jnp.isfinite(psf)))
    print("KERNEL_OK")
</pallas_src>

<mosaic_0001>
module attributes {stable_mosaic.version = 11 : i64} {
  func.func @tiptoy_kernel(%arg0: i32, %arg1: memref<2x10xf32, #tpu.memory_space<smem>>, %arg2: memref<11x64x64xf32, #tpu.memory_space<vmem>>, %arg3: memref<15x32x64xf32, #tpu.memory_space<vmem>>, %arg4: memref<15x32x64xf32, #tpu.memory_space<vmem>>, %arg5: memref<32x64xf32, #tpu.memory_space<vmem>>, %arg6: memref<64x32xf32, #tpu.memory_space<vmem>>, %arg7: memref<1x32x32xf32, #tpu.memory_space<vmem>>, %arg8: memref<64x64xf32, #tpu.memory_space<vmem>>) attributes {dimension_semantics = [#tpu.dimension_semantics<parallel>], iteration_bounds = array<i64: 2>, scalar_prefetch = 0 : i64, scratch_operands = 1 : i64, tpu.core_type = #tpu.core_type<tc>, window_params = [{transform_indices = @transform_0, window_bounds = array<i64: 2, 10>}, {pipeline_mode = #tpu.pipeline_mode<synchronous>, transform_indices = @transform_1, window_bounds = array<i64: 11, 64, 64>}, {pipeline_mode = #tpu.pipeline_mode<synchronous>, transform_indices = @transform_2, window_bounds = array<i64: 15, 32, 64>}, {pipeline_mode = #tpu.pipeline_mode<synchronous>, transform_indices = @transform_3, window_bounds = array<i64: 15, 32, 64>}, {pipeline_mode = #tpu.pipeline_mode<synchronous>, transform_indices = @transform_4, window_bounds = array<i64: 32, 64>}, {pipeline_mode = #tpu.pipeline_mode<synchronous>, transform_indices = @transform_5, window_bounds = array<i64: 64, 32>}, {transform_indices = @transform_6, window_bounds = array<i64: 1, 32, 32>}]} {
    %0 = arith.index_cast %arg0 : i32 to index
    %c0 = arith.constant 0 : index
    %1 = memref.load %arg1[%0, %c0] : memref<2x10xf32, #tpu.memory_space<smem>>
    %2 = arith.index_cast %arg0 : i32 to index
    %c1 = arith.constant 1 : index
    %3 = memref.load %arg1[%2, %c1] : memref<2x10xf32, #tpu.memory_space<smem>>
    %4 = arith.index_cast %arg0 : i32 to index
    %c2 = arith.constant 2 : index
    %5 = memref.load %arg1[%4, %c2] : memref<2x10xf32, #tpu.memory_space<smem>>
    %6 = arith.index_cast %arg0 : i32 to index
    %c3 = arith.constant 3 : index
    %7 = memref.load %arg1[%6, %c3] : memref<2x10xf32, #tpu.memory_space<smem>>
    %8 = arith.index_cast %arg0 : i32 to index
    %c4 = arith.constant 4 : index
    %9 = memref.load %arg1[%8, %c4] : memref<2x10xf32, #tpu.memory_space<smem>>
    %10 = arith.index_cast %arg0 : i32 to index
    %c5 = arith.constant 5 : index
    %11 = memref.load %arg1[%10, %c5] : memref<2x10xf32, #tpu.memory_space<smem>>
    %12 = arith.index_cast %arg0 : i32 to index
    %c6 = arith.constant 6 : index
    %13 = memref.load %arg1[%12, %c6] : memref<2x10xf32, #tpu.memory_space<smem>>
    %14 = arith.index_cast %arg0 : i32 to index
    %c7 = arith.constant 7 : index
    %15 = memref.load %arg1[%14, %c7] : memref<2x10xf32, #tpu.memory_space<smem>>
    %16 = arith.index_cast %arg0 : i32 to index
    %c8 = arith.constant 8 : index
    %17 = memref.load %arg1[%16, %c8] : memref<2x10xf32, #tpu.memory_space<smem>>
    %18 = arith.index_cast %arg0 : i32 to index
    %c9 = arith.constant 9 : index
    %19 = memref.load %arg1[%18, %c9] : memref<2x10xf32, #tpu.memory_space<smem>>
    %c2_0 = arith.constant 2 : index
    %c0_1 = arith.constant 0 : index
    %c0_2 = arith.constant 0 : index
    %20 = vector.load %arg2[%c2_0, %c0_1, %c0_2] : memref<11x64x64xf32, #tpu.memory_space<vmem>>, vector<1x64x64xf32>
    %21 = vector.shape_cast %20 : vector<1x64x64xf32> to vector<64x64xf32>
    %22 = vector.broadcast %3 : f32 to vector<64x64xf32>
    %23 = arith.addf %21, %22 : vector<64x64xf32>
    %24 = math.log %23 : vector<64x64xf32>
    %cst = arith.constant -1.83333337 : f32
    %25 = vector.broadcast %cst : f32 to vector<64x64xf32>
    %26 = arith.mulf %25, %24 : vector<64x64xf32>
    %27 = math.exp %26 : vector<64x64xf32>
    %28 = vector.broadcast %1 : f32 to vector<64x64xf32>
    %29 = arith.mulf %28, %27 : vector<64x64xf32>
    %c0_3 = arith.constant 0 : index
    %c0_4 = arith.constant 0 : index
    %c0_5 = arith.constant 0 : index
    %30 = vector.load %arg2[%c0_3, %c0_4, %c0_5] : memref<11x64x64xf32, #tpu.memory_space<vmem>>, vector<1x64x64xf32>
    %31 = vector.shape_cast %30 : vector<1x64x64xf32> to vector<64x64xf32>
    %32 = arith.mulf %29, %31 : vector<64x64xf32>
    %c1_6 = arith.constant 1 : index
    %c0_7 = arith.constant 0 : index
    %c0_8 = arith.constant 0 : index
    %33 = vector.load %arg2[%c1_6, %c0_7, %c0_8] : memref<11x64x64xf32, #tpu.memory_space<vmem>>, vector<1x64x64xf32>
    %34 = vector.shape_cast %33 : vector<1x64x64xf32> to vector<64x64xf32>
    %35 = vector.broadcast %5 : f32 to vector<64x64xf32>
    %36 = arith.mulf %35, %34 : vector<64x64xf32>
    %37 = arith.addf %32, %36 : vector<64x64xf32>
    %c0_9 = arith.constant 0 : index
    %c0_10 = arith.constant 0 : index
    %38 = vector.load %arg8[%c0_9, %c0_10] : memref<64x64xf32, #tpu.memory_space<vmem>>, vector<64x64xf32>
    tpu.vector_store %arg8[%c0_9, %c0_10], %37 {strides = array<i32>} : memref<64x64xf32, #tpu.memory_space<vmem>>, vector<64x64xf32>,
    %c0_11 = arith.constant 0 : index
    %c0_12 = arith.constant 0 : index
    %c0_13 = arith.constant 0 : index
    %39 = vector.load %arg4[%c0_11, %c0_12, %c0_13] : memref<15x32x64xf32, #tpu.memory_space<vmem>>, vector<1x32x64xf32>
    %40 = vector.shape_cast %39 : vector<1x32x64xf32> to vector<32x64xf32>
    %c0_14 = arith.constant 0 : index
    %c0_15 = arith.constant 0 : index
    %c0_16 = arith.constant 0 : index
    %41 = vector.load %arg3[%c0_14, %c0_15, %c0_16] : memref<15x32x64xf32, #tpu.memory_space<vmem>>, vector<1x32x64xf32>
    %42 = vector.shape_cast %41 : vector<1x32x64xf32> to vector<32x64xf32>
    %43 = vector.broadcast %3 : f32 to vector<32x64xf32>
    %44 = arith.addf %42, %43 : vector<32x64xf32>
    %45 = math.log %44 : vector<32x64xf32>
    %cst_17 = arith.constant -1.83333337 : f32
    %46 = vector.broadcast %cst_17 : f32 to vector<32x64xf32>
    %47 = arith.mulf %46, %45 : vector<32x64xf32>
    %48 = math.exp %47 : vector<32x64xf32>
    %49 = arith.mulf %40, %48 : vector<32x64xf32>
    %c1_18 = arith.constant 1 : index
    %c0_19 = arith.constant 0 : index
    %c0_20 = arith.constant 0 : index
    %50 = vector.load %arg3[%c1_18, %c0_19, %c0_20] : memref<15x32x64xf32, #tpu.memory_space<vmem>>, vector<1x32x64xf32>
    %51 = vector.shape_cast %50 : vector<1x32x64xf32> to vector<32x64xf32>
    %52 = vector.broadcast %3 : f32 to vector<32x64xf32>
    %53 = arith.addf %51, %52 : vector<32x64xf32>
    %54 = math.log %53 : vector<32x64xf32>
    %cst_21 = arith.constant -1.83333337 : f32
    %55 = vector.broadcast %cst_21 : f32 to vector<32x64xf32>
    %56 = arith.mulf %55, %54 : vector<32x64xf32>
    %57 = math.exp %56 : vector<32x64xf32>
    %c1_22 = arith.constant 1 : index
    %c0_23 = arith.constant 0 : index
    %c0_24 = arith.constant 0 : index
    %58 = vector.load %arg4[%c1_22, %c0_23, %c0_24] : memref<15x32x64xf32, #tpu.memory_space<vmem>>, vector<1x32x64xf32>
    %59 = vector.shape_cast %58 : vector<1x32x64xf32> to vector<32x64xf32>
    %60 = arith.mulf %59, %57 : vector<32x64xf32>
    %61 = arith.addf %49, %60 : vector<32x64xf32>
    %c2_25 = arith.constant 2 : index
    %c0_26 = arith.constant 0 : index
    %c0_27 = arith.constant 0 : index
    %62 = vector.load %arg3[%c2_25, %c0_26, %c0_27] : memref<15x32x64xf32, #tpu.memory_space<vmem>>, vector<1x32x64xf32>
    %63 = vector.shape_cast %62 : vector<1x32x64xf32> to vector<32x64xf32>
    %64 = vector.broadcast %3 : f32 to vector<32x64xf32>
    %65 = arith.addf %63, %64 : vector<32x64xf32>
    %66 = math.log %65 : vector<32x64xf32>
    %cst_28 = arith.constant -1.83333337 : f32
    %67 = vector.broadcast %cst_28 : f32 to vector<32x64xf32>
    %68 = arith.mulf %67, %66 : vector<32x64xf32>
    %69 = math.exp %68 : vector<32x64xf32>
    %c2_29 = arith.constant 2 : index
    %c0_30 = arith.constant 0 : index
    %c0_31 = arith.constant 0 : index
    %70 = vector.load %arg4[%c2_29, %c0_30, %c0_31] : memref<15x32x64xf32, #tpu.memory_space<vmem>>, vector<1x32x64xf32>
    %71 = vector.shape_cast %70 : vector<1x32x64xf32> to vector<32x64xf32>
    %72 = arith.mulf %71, %69 : vector<32x64xf32>
    %73 = arith.addf %61, %72 : vector<32x64xf32>
    %c3_32 = arith.constant 3 : index
    %c0_33 = arith.constant 0 : index
    %c0_34 = arith.constant 0 : index
    %74 = vector.load %arg3[%c3_32, %c0_33, %c0_34] : memref<15x32x64xf32, #tpu.memory_space<vmem>>, vector<1x32x64xf32>
    %75 = vector.shape_cast %74 : vector<1x32x64xf32> to vector<32x64xf32>
    %76 = vector.broadcast %3 : f32 to vector<32x64xf32>
    %77 = arith.addf %75, %76 : vector<32x64xf32>
    %78 = math.log %77 : vector<32x64xf32>
    %cst_35 = arith.constant -1.83333337 : f32
    %79 = vector.broadcast %cst_35 : f32 to vector<32x64xf32>
    %80 = arith.mulf %79, %78 : vector<32x64xf32>
    %81 = math.exp %80 : vector<32x64xf32>
    %c3_36 = arith.constant 3 : index
    %c0_37 = arith.constant 0 : index
    %c0_38 = arith.constant 0 : index
    %82 = vector.load %arg4[%c3_36, %c0_37, %c0_38] : memref<15x32x64xf32, #tpu.memory_space<vmem>>, vector<1x32x64xf32>
    %83 = vector.shape_cast %82 : vector<1x32x64xf32> to vector<32x64xf32>
    %84 = arith.mulf %83, %81 : vector<32x64xf32>
    %85 = arith.addf %73, %84 : vector<32x64xf32>
    %c4_39 = arith.constant 4 : index
    %c0_40 = arith.constant 0 : index
    %c0_41 = arith.constant 0 : index
    %86 = vector.load %arg3[%c4_39, %c0_40, %c0_41] : memref<15x32x64xf32, #tpu.memory_space<vmem>>, vector<1x32x64xf32>
    %87 = vector.shape_cast %86 : vector<1x32x64xf32> to vector<32x64xf32>
    %88 = vector.broadcast %3 : f32 to vector<32x64xf32>
    %89 = arith.addf %87, %88 : vector<32x64xf32>
    %90 = math.log %89 : vector<32x64xf32>
    %cst_42 = arith.constant -1.83333337 : f32
    %91 = vector.broadcast %cst_42 : f32 to vector<32x64xf32>
    %92 = arith.mulf %91, %90 : vector<32x64xf32>
    %93 = math.exp %92 : vector<32x64xf32>
    %c4_43 = arith.constant 4 : index
    %c0_44 = arith.constant 0 : index
    %c0_45 = arith.constant 0 : index
    %94 = vector.load %arg4[%c4_43, %c0_44, %c0_45] : memref<15x32x64xf32, #tpu.memory_space<vmem>>, vector<1x32x64xf32>
    %95 = vector.shape_cast %94 : vector<1x32x64xf32> to vector<32x64xf32>
    %96 = arith.mulf %95, %93 : vector<32x64xf32>
    %97 = arith.addf %85, %96 : vector<32x64xf32>
    %c5_46 = arith.constant 5 : index
    %c0_47 = arith.constant 0 : index
    %c0_48 = arith.constant 0 : index
    %98 = vector.load %arg3[%c5_46, %c0_47, %c0_48] : memref<15x32x64xf32, #tpu.memory_space<vmem>>, vector<1x32x64xf32>
    %99 = vector.shape_cast %98 : vector<1x32x64xf32> to vector<32x64xf32>
    %100 = vector.broadcast %3 : f32 to vector<32x64xf32>
    %101 = arith.addf %99, %100 : vector<32x64xf32>
    %102 = math.log %101 : vector<32x64xf32>
    %cst_49 = arith.constant -1.83333337 : f32
    %103 = vector.broadcast %cst_49 : f32 to vector<32x64xf32>
    %104 = arith.mulf %103, %102 : vector<32x64xf32>
    %105 = math.exp %104 : vector<32x64xf32>
    %c5_50 = arith.constant 5 : index
    %c0_51 = arith.constant 0 : index
    %c0_52 = arith.constant 0 : index
    %106 = vector.load %arg4[%c5_50, %c0_51, %c0_52] : memref<15x32x64xf32, #tpu.memory_space<vmem>>, vector<1x32x64xf32>
    %107 = vector.shape_cast %106 : vector<1x32x64xf32> to vector<32x64xf32>
    %108 = arith.mulf %107, %105 : vector<32x64xf32>
    %109 = arith.addf %97, %108 : vector<32x64xf32>
    %c6_53 = arith.constant 6 : index
    %c0_54 = arith.constant 0 : index
    %c0_55 = arith.constant 0 : index
    %110 = vector.load %arg3[%c6_53, %c0_54, %c0_55] : memref<15x32x64xf32, #tpu.memory_space<vmem>>, vector<1x32x64xf32>
    %111 = vector.shape_cast %110 : vector<1x32x64xf32> to vector<32x64xf32>
    %112 = vector.broadcast %3 : f32 to vector<32x64xf32>
    %113 = arith.addf %111, %112 : vector<32x64xf32>
    %114 = math.log %113 : vector<32x64xf32>
    %cst_56 = arith.constant -1.83333337 : f32
    %115 = vector.broadcast %cst_56 : f32 to vector<32x64xf32>
    %116 = arith.mulf %115, %114 : vector<32x64xf32>
    %117 = math.exp %116 : vector<32x64xf32>
    %c6_57 = arith.constant 6 : index
    %c0_58 = arith.constant 0 : index
    %c0_59 = arith.constant 0 : index
    %118 = vector.load %arg4[%c6_57, %c0_58, %c0_59] : memref<15x32x64xf32, #tpu.memory_space<vmem>>, vector<1x32x64xf32>
    %119 = vector.shape_cast %118 : vector<1x32x64xf32> to vector<32x64xf32>
    %120 = arith.mulf %119, %117 : vector<32x64xf32>
    %121 = arith.addf %109, %120 : vector<32x64xf32>
    %c7_60 = arith.constant 7 : index
    %c0_61 = arith.constant 0 : index
    %c0_62 = arith.constant 0 : index
    %122 = vector.load %arg3[%c7_60, %c0_61, %c0_62] : memref<15x32x64xf32, #tpu.memory_space<vmem>>, vector<1x32x64xf32>
    %123 = vector.shape_cast %122 : vector<1x32x64xf32> to vector<32x64xf32>
    %124 = vector.broadcast %3 : f32 to vector<32x64xf32>
    %125 = arith.addf %123, %124 : vector<32x64xf32>
    %126 = math.log %125 : vector<32x64xf32>
    %cst_63 = arith.constant -1.83333337 : f32
    %127 = vector.broadcast %cst_63 : f32 to vector<32x64xf32>
    %128 = arith.mulf %127, %126 : vector<32x64xf32>
    %129 = math.exp %128 : vector<32x64xf32>
    %c7_64 = arith.constant 7 : index
    %c0_65 = arith.constant 0 : index
    %c0_66 = arith.constant 0 : index
    %130 = vector.load %arg4[%c7_64, %c0_65, %c0_66] : memref<15x32x64xf32, #tpu.memory_space<vmem>>, vector<1x32x64xf32>
    %131 = vector.shape_cast %130 : vector<1x32x64xf32> to vector<32x64xf32>
    %132 = arith.mulf %131, %129 : vector<32x64xf32>
    %133 = arith.addf %121, %132 : vector<32x64xf32>
    %c8_67 = arith.constant 8 : index
    %c0_68 = arith.constant 0 : index
    %c0_69 = arith.constant 0 : index
    %134 = vector.load %arg3[%c8_67, %c0_68, %c0_69] : memref<15x32x64xf32, #tpu.memory_space<vmem>>, vector<1x32x64xf32>
    %135 = vector.shape_cast %134 : vector<1x32x64xf32> to vector<32x64xf32>
    %136 = vector.broadcast %3 : f32 to vector<32x64xf32>
    %137 = arith.addf %135, %136 : vector<32x64xf32>
    %138 = math.log %137 : vector<32x64xf32>
    %cst_70 = arith.constant -1.83333337 : f32
    %139 = vector.broadcast %cst_70 : f32 to vector<32x64xf32>
    %140 = arith.mulf %139, %138 : vector<32x64xf32>
    %141 = math.exp %140 : vector<32x64xf32>
    %c8_71 = arith.constant 8 : index
    %c0_72 = arith.constant 0 : index
    %c0_73 = arith.constant 0 : index
    %142 = vector.load %arg4[%c8_71, %c0_72, %c0_73] : memref<15x32x64xf32, #tpu.memory_space<vmem>>, vector<1x32x64xf32>
    %143 = vector.shape_cast %142 : vector<1x32x64xf32> to vector<32x64xf32>
    %144 = arith.mulf %143, %141 : vector<32x64xf32>
    %145 = arith.addf %133, %144 : vector<32x64xf32>
    %c9_74 = arith.constant 9 : index
    %c0_75 = arith.constant 0 : index
    %c0_76 = arith.constant 0 : index
    %146 = vector.load %arg3[%c9_74, %c0_75, %c0_76] : memref<15x32x64xf32, #tpu.memory_space<vmem>>, vector<1x32x64xf32>
    %147 = vector.shape_cast %146 : vector<1x32x64xf32> to vector<32x64xf32>
    %148 = vector.broadcast %3 : f32 to vector<32x64xf32>
    %149 = arith.addf %147, %148 : vector<32x64xf32>
    %150 = math.log %149 : vector<32x64xf32>
    %cst_77 = arith.constant -1.83333337 : f32
    %151 = vector.broadcast %cst_77 : f32 to vector<32x64xf32>
    %152 = arith.mulf %151, %150 : vector<32x64xf32>
    %153 = math.exp %152 : vector<32x64xf32>
    %c9_78 = arith.constant 9 : index
    %c0_79 = arith.constant 0 : index
    %c0_80 = arith.constant 0 : index
    %154 = vector.load %arg4[%c9_78, %c0_79, %c0_80] : memref<15x32x64xf32, #tpu.memory_space<vmem>>, vector<1x32x64xf32>
    %155 = vector.shape_cast %154 : vector<1x32x64xf32> to vector<32x64xf32>
    %156 = arith.mulf %155, %153 : vector<32x64xf32>
    %157 = arith.addf %145, %156 : vector<32x64xf32>
    %c10 = arith.constant 10 : index
    %c0_81 = arith.constant 0 : index
    %c0_82 = arith.constant 0 : index
    %158 = vector.load %arg3[%c10, %c0_81, %c0_82] : memref<15x32x64xf32, #tpu.memory_space<vmem>>, vector<1x32x64xf32>
    %159 = vector.shape_cast %158 : vector<1x32x64xf32> to vector<32x64xf32>
    %160 = vector.broadcast %3 : f32 to vector<32x64xf32>
    %161 = arith.addf %159, %160 : vector<32x64xf32>
    %162 = math.log %161 : vector<32x64xf32>
    %cst_83 = arith.constant -1.83333337 : f32
    %163 = vector.broadcast %cst_83 : f32 to vector<32x64xf32>
    %164 = arith.mulf %163, %162 : vector<32x64xf32>
    %165 = math.exp %164 : vector<32x64xf32>
    %c10_84 = arith.constant 10 : index
    %c0_85 = arith.constant 0 : index
    %c0_86 = arith.constant 0 : index
    %166 = vector.load %arg4[%c10_84, %c0_85, %c0_86] : memref<15x32x64xf32, #tpu.memory_space<vmem>>, vector<1x32x64xf32>
    %167 = vector.shape_cast %166 : vector<1x32x64xf32> to vector<32x64xf32>
    %168 = arith.mulf %167, %165 : vector<32x64xf32>
    %169 = arith.addf %157, %168 : vector<32x64xf32>
    %c11 = arith.constant 11 : index
    %c0_87 = arith.constant 0 : index
    %c0_88 = arith.constant 0 : index
    %170 = vector.load %arg3[%c11, %c0_87, %c0_88] : memref<15x32x64xf32, #tpu.memory_space<vmem>>, vector<1x32x64xf32>
    %171 = vector.shape_cast %170 : vector<1x32x64xf32> to vector<32x64xf32>
    %172 = vector.broadcast %3 : f32 to vector<32x64xf32>
    %173 = arith.addf %171, %172 : vector<32x64xf32>
    %174 = math.log %173 : vector<32x64xf32>
    %cst_89 = arith.constant -1.83333337 : f32
    %175 = vector.broadcast %cst_89 : f32 to vector<32x64xf32>
    %176 = arith.mulf %175, %174 : vector<32x64xf32>
    %177 = math.exp %176 : vector<32x64xf32>
    %c11_90 = arith.constant 11 : index
    %c0_91 = arith.constant 0 : index
    %c0_92 = arith.constant 0 : index
    %178 = vector.load %arg4[%c11_90, %c0_91, %c0_92] : memref<15x32x64xf32, #tpu.memory_space<vmem>>, vector<1x32x64xf32>
    %179 = vector.shape_cast %178 : vector<1x32x64xf32> to vector<32x64xf32>
    %180 = arith.mulf %179, %177 : vector<32x64xf32>
    %181 = arith.addf %169, %180 : vector<32x64xf32>
    %c12 = arith.constant 12 : index
    %c0_93 = arith.constant 0 : index
    %c0_94 = arith.constant 0 : index
    %182 = vector.load %arg3[%c12, %c0_93, %c0_94] : memref<15x32x64xf32, #tpu.memory_space<vmem>>, vector<1x32x64xf32>
    %183 = vector.shape_cast %182 : vector<1x32x64xf32> to vector<32x64xf32>
    %184 = vector.broadcast %3 : f32 to vector<32x64xf32>
    %185 = arith.addf %183, %184 : vector<32x64xf32>
    %186 = math.log %185 : vector<32x64xf32>
    %cst_95 = arith.constant -1.83333337 : f32
    %187 = vector.broadcast %cst_95 : f32 to vector<32x64xf32>
    %188 = arith.mulf %187, %186 : vector<32x64xf32>
    %189 = math.exp %188 : vector<32x64xf32>
    %c12_96 = arith.constant 12 : index
    %c0_97 = arith.constant 0 : index
    %c0_98 = arith.constant 0 : index
    %190 = vector.load %arg4[%c12_96, %c0_97, %c0_98] : memref<15x32x64xf32, #tpu.memory_space<vmem>>, vector<1x32x64xf32>
    %191 = vector.shape_cast %190 : vector<1x32x64xf32> to vector<32x64xf32>
    %192 = arith.mulf %191, %189 : vector<32x64xf32>
    %193 = arith.addf %181, %192 : vector<32x64xf32>
    %c13 = arith.constant 13 : index
    %c0_99 = arith.constant 0 : index
    %c0_100 = arith.constant 0 : index
    %194 = vector.load %arg3[%c13, %c0_99, %c0_100] : memref<15x32x64xf32, #tpu.memory_space<vmem>>, vector<1x32x64xf32>
    %195 = vector.shape_cast %194 : vector<1x32x64xf32> to vector<32x64xf32>
    %196 = vector.broadcast %3 : f32 to vector<32x64xf32>
    %197 = arith.addf %195, %196 : vector<32x64xf32>
    %198 = math.log %197 : vector<32x64xf32>
    %cst_101 = arith.constant -1.83333337 : f32
    %199 = vector.broadcast %cst_101 : f32 to vector<32x64xf32>
    %200 = arith.mulf %199, %198 : vector<32x64xf32>
    %201 = math.exp %200 : vector<32x64xf32>
    %c13_102 = arith.constant 13 : index
    %c0_103 = arith.constant 0 : index
    %c0_104 = arith.constant 0 : index
    %202 = vector.load %arg4[%c13_102, %c0_103, %c0_104] : memref<15x32x64xf32, #tpu.memory_space<vmem>>, vector<1x32x64xf32>
    %203 = vector.shape_cast %202 : vector<1x32x64xf32> to vector<32x64xf32>
    %204 = arith.mulf %203, %201 : vector<32x64xf32>
    %205 = arith.addf %193, %204 : vector<32x64xf32>
    %c14 = arith.constant 14 : index
    %c0_105 = arith.constant 0 : index
    %c0_106 = arith.constant 0 : index
    %206 = vector.load %arg3[%c14, %c0_105, %c0_106] : memref<15x32x64xf32, #tpu.memory_space<vmem>>, vector<1x32x64xf32>
    %207 = vector.shape_cast %206 : vector<1x32x64xf32> to vector<32x64xf32>
    %208 = vector.broadcast %3 : f32 to vector<32x64xf32>
    %209 = arith.addf %207, %208 : vector<32x64xf32>
    %210 = math.log %209 : vector<32x64xf32>
    %cst_107 = arith.constant -1.83333337 : f32
    %211 = vector.broadcast %cst_107 : f32 to vector<32x64xf32>
    %212 = arith.mulf %211, %210 : vector<32x64xf32>
    %213 = math.exp %212 : vector<32x64xf32>
    %c14_108 = arith.constant 14 : index
    %c0_109 = arith.constant 0 : index
    %c0_110 = arith.constant 0 : index
    %214 = vector.load %arg4[%c14_108, %c0_109, %c0_110] : memref<15x32x64xf32, #tpu.memory_space<vmem>>, vector<1x32x64xf32>
    %215 = vector.shape_cast %214 : vector<1x32x64xf32> to vector<32x64xf32>
    %216 = arith.mulf %215, %213 : vector<32x64xf32>
    %217 = arith.addf %205, %216 : vector<32x64xf32>
    %c16 = arith.constant 16 : index
    %c0_111 = arith.constant 0 : index
    %218 = vector.load %arg8[%c16, %c0_111] : memref<64x64xf32, #tpu.memory_space<vmem>>, vector<32x64xf32>
    %219 = vector.broadcast %1 : f32 to vector<32x64xf32>
    %220 = arith.mulf %219, %217 : vector<32x64xf32>
    %221 = arith.addf %218, %220 : vector<32x64xf32>
    %c16_112 = arith.constant 16 : index
    %c0_113 = arith.constant 0 : index
    %222 = vector.load %arg8[%c16_112, %c0_113] : memref<64x64xf32, #tpu.memory_space<vmem>>, vector<32x64xf32>
    tpu.vector_store %arg8[%c16_112, %c0_113], %221 {strides = array<i32>} : memref<64x64xf32, #tpu.memory_space<vmem>>, vector<32x64xf32>,
    %c9_114 = arith.constant 9 : index
    %c0_115 = arith.constant 0 : index
    %c0_116 = arith.constant 0 : index
    %223 = vector.load %arg2[%c9_114, %c0_115, %c0_116] : memref<11x64x64xf32, #tpu.memory_space<vmem>>, vector<1x64x64xf32>
    %224 = vector.shape_cast %223 : vector<1x64x64xf32> to vector<64x64xf32>
    %c10_117 = arith.constant 10 : index
    %c0_118 = arith.constant 0 : index
    %c0_119 = arith.constant 0 : index
    %225 = vector.load %arg2[%c10_117, %c0_118, %c0_119] : memref<11x64x64xf32, #tpu.memory_space<vmem>>, vector<1x64x64xf32>
    %226 = vector.shape_cast %225 : vector<1x64x64xf32> to vector<64x64xf32>
    %c0_120 = arith.constant 0 : index
    %c0_121 = arith.constant 0 : index
    %227 = vector.load %arg8[%c0_120, %c0_121] : memref<64x64xf32, #tpu.memory_space<vmem>>, vector<64x64xf32>
    %cst_122 = arith.constant dense<0.000000e+00> : vector<64x64xf32>
    %228 = tpu.matmul %224, %227, %cst_122 {dimension_numbers = #tpu.dot_dimension_numbers<[1], [0], [0], [1], [0, 0, 1, 1], [], []>} : vector<64x64xf32>, vector<64x64xf32>, vector<64x64xf32> -> vector<64x64xf32>
    %cst_123 = arith.constant dense<0.000000e+00> : vector<64x64xf32>
    %229 = tpu.matmul %226, %227, %cst_123 {dimension_numbers = #tpu.dot_dimension_numbers<[1], [0], [0], [1], [0, 0, 1, 1], [], []>} : vector<64x64xf32>, vector<64x64xf32>, vector<64x64xf32> -> vector<64x64xf32>
    %cst_124 = arith.constant dense<0.000000e+00> : vector<64x64xf32>
    %230 = tpu.matmul %228, %224, %cst_124 {dimension_numbers = #tpu.dot_dimension_numbers<[1], [0], [0], [1], [0, 0, 1, 1], [], []>} : vector<64x64xf32>, vector<64x64xf32>, vector<64x64xf32> -> vector<64x64xf32>
    %cst_125 = arith.constant dense<0.000000e+00> : vector<64x64xf32>
    %231 = tpu.matmul %229, %226, %cst_125 {dimension_numbers = #tpu.dot_dimension_numbers<[1], [0], [0], [1], [0, 0, 1, 1], [], []>} : vector<64x64xf32>, vector<64x64xf32>, vector<64x64xf32> -> vector<64x64xf32>
    %232 = arith.subf %230, %231 : vector<64x64xf32>
    %cst_126 = arith.constant dense<0.000000e+00> : vector<64x64xf32>
    %233 = tpu.matmul %228, %226, %cst_126 {dimension_numbers = #tpu.dot_dimension_numbers<[1], [0], [0], [1], [0, 0, 1, 1], [], []>} : vector<64x64xf32>, vector<64x64xf32>, vector<64x64xf32> -> vector<64x64xf32>
    %cst_127 = arith.constant dense<0.000000e+00> : vector<64x64xf32>
    %234 = tpu.matmul %229, %224, %cst_127 {dimension_numbers = #tpu.dot_dimension_numbers<[1], [0], [0], [1], [0, 0, 1, 1], [], []>} : vector<64x64xf32>, vector<64x64xf32>, vector<64x64xf32> -> vector<64x64xf32>
    %235 = arith.addf %233, %234 : vector<64x64xf32>
    %236 = arith.mulf %232, %232 : vector<64x64xf32>
    %237 = arith.mulf %235, %235 : vector<64x64xf32>
    %238 = arith.addf %236, %237 : vector<64x64xf32>
    %239 = vector.shape_cast %238 : vector<64x64xf32> to vector<1x64x64xf32>
    %cst_128 = arith.constant dense<0xFF800000> : vector<1xf32>
    %240 = vector.multi_reduction <maximumf>, %239, %cst_128 [1, 2] : vector<1x64x64xf32> to vector<1xf32>
    %241 = vector.shape_cast %240 : vector<1xf32> to vector<1x1x1xf32>
    %242 = vector.extract %241[0, 0, 0] : f32 from vector<1x1x1xf32>
    %243 = math.sqrt %242 : f32
    %244 = vector.broadcast %243 : f32 to vector<64x64xf32>
    %245 = arith.subf %232, %244 : vector<64x64xf32>
    %cst_129 = arith.constant 1.45007962E-5 : f32
    %246 = vector.broadcast %cst_129 : f32 to vector<64x64xf32>
    %247 = arith.mulf %246, %245 : vector<64x64xf32>
    %c5_130 = arith.constant 5 : index
    %c0_131 = arith.constant 0 : index
    %c0_132 = arith.constant 0 : index
    %248 = vector.load %arg2[%c5_130, %c0_131, %c0_132] : memref<11x64x64xf32, #tpu.memory_space<vmem>>, vector<1x64x64xf32>
    %249 = vector.shape_cast %248 : vector<1x64x64xf32> to vector<64x64xf32>
    %250 = vector.broadcast %11 : f32 to vector<64x64xf32>
    %251 = arith.mulf %250, %249 : vector<64x64xf32>
    %c6_133 = arith.constant 6 : index
    %c0_134 = arith.constant 0 : index
    %c0_135 = arith.constant 0 : index
    %252 = vector.load %arg2[%c6_133, %c0_134, %c0_135] : memref<11x64x64xf32, #tpu.memory_space<vmem>>, vector<1x64x64xf32>
    %253 = vector.shape_cast %252 : vector<1x64x64xf32> to vector<64x64xf32>
    %254 = vector.broadcast %13 : f32 to vector<64x64xf32>
    %255 = arith.mulf %254, %253 : vector<64x64xf32>
    %256 = arith.addf %251, %255 : vector<64x64xf32>
    %c7_136 = arith.constant 7 : index
    %c0_137 = arith.constant 0 : index
    %c0_138 = arith.constant 0 : index
    %257 = vector.load %arg2[%c7_136, %c0_137, %c0_138] : memref<11x64x64xf32, #tpu.memory_space<vmem>>, vector<1x64x64xf32>
    %258 = vector.shape_cast %257 : vector<1x64x64xf32> to vector<64x64xf32>
    %259 = vector.broadcast %15 : f32 to vector<64x64xf32>
    %260 = arith.mulf %259, %258 : vector<64x64xf32>
    %261 = arith.addf %256, %260 : vector<64x64xf32>
    %262 = arith.subf %247, %261 : vector<64x64xf32>
    %cst_139 = arith.constant 1.45007962E-5 : f32
    %263 = vector.broadcast %cst_139 : f32 to vector<64x64xf32>
    %264 = arith.mulf %263, %235 : vector<64x64xf32>
    %c3_140 = arith.constant 3 : index
    %c0_141 = arith.constant 0 : index
    %c0_142 = arith.constant 0 : index
    %265 = vector.load %arg2[%c3_140, %c0_141, %c0_142] : memref<11x64x64xf32, #tpu.memory_space<vmem>>, vector<1x64x64xf32>
    %266 = vector.shape_cast %265 : vector<1x64x64xf32> to vector<64x64xf32>
    %267 = vector.broadcast %7 : f32 to vector<64x64xf32>
    %268 = arith.mulf %267, %266 : vector<64x64xf32>
    %269 = arith.addf %264, %268 : vector<64x64xf32>
    %c4_143 = arith.constant 4 : index
    %c0_144 = arith.constant 0 : index
    %c0_145 = arith.constant 0 : index
    %270 = vector.load %arg2[%c4_143, %c0_144, %c0_145] : memref<11x64x64xf32, #tpu.memory_space<vmem>>, vector<1x64x64xf32>
    %271 = vector.shape_cast %270 : vector<1x64x64xf32> to vector<64x64xf32>
    %272 = vector.broadcast %9 : f32 to vector<64x64xf32>
    %273 = arith.mulf %272, %271 : vector<64x64xf32>
    %274 = arith.addf %269, %273 : vector<64x64xf32>
    %275 = math.exp %262 : vector<64x64xf32>
    %c8_146 = arith.constant 8 : index
    %c0_147 = arith.constant 0 : index
    %c0_148 = arith.constant 0 : index
    %276 = vector.load %arg2[%c8_146, %c0_147, %c0_148] : memref<11x64x64xf32, #tpu.memory_space<vmem>>, vector<1x64x64xf32>
    %277 = vector.shape_cast %276 : vector<1x64x64xf32> to vector<64x64xf32>
    %278 = arith.mulf %275, %277 : vector<64x64xf32>
    %279 = math.cos %274 : vector<64x64xf32>
    %280 = arith.mulf %278, %279 : vector<64x64xf32>
    %281 = math.sin %274 : vector<64x64xf32>
    %282 = arith.mulf %278, %281 : vector<64x64xf32>
    %cst_149 = arith.constant dense<0.000000e+00> : vector<64x64xf32>
    %283 = tpu.matmul %224, %280, %cst_149 {dimension_numbers = #tpu.dot_dimension_numbers<[1], [0], [0], [1], [0, 0, 1, 1], [], []>} : vector<64x64xf32>, vector<64x64xf32>, vector<64x64xf32> -> vector<64x64xf32>
    %cst_150 = arith.constant dense<0.000000e+00> : vector<64x64xf32>
    %284 = tpu.matmul %226, %282, %cst_150 {dimension_numbers = #tpu.dot_dimension_numbers<[1], [0], [0], [1], [0, 0, 1, 1], [], []>} : vector<64x64xf32>, vector<64x64xf32>, vector<64x64xf32> -> vector<64x64xf32>
    %285 = arith.addf %283, %284 : vector<64x64xf32>
    %cst_151 = arith.constant dense<0.000000e+00> : vector<64x64xf32>
    %286 = tpu.matmul %224, %282, %cst_151 {dimension_numbers = #tpu.dot_dimension_numbers<[1], [0], [0], [1], [0, 0, 1, 1], [], []>} : vector<64x64xf32>, vector<64x64xf32>, vector<64x64xf32> -> vector<64x64xf32>
    %cst_152 = arith.constant dense<0.000000e+00> : vector<64x64xf32>
    %287 = tpu.matmul %226, %280, %cst_152 {dimension_numbers = #tpu.dot_dimension_numbers<[1], [0], [0], [1], [0, 0, 1, 1], [], []>} : vector<64x64xf32>, vector<64x64xf32>, vector<64x64xf32> -> vector<64x64xf32>
    %288 = arith.subf %286, %287 : vector<64x64xf32>
    %cst_153 = arith.constant dense<0.000000e+00> : vector<64x64xf32>
    %289 = tpu.matmul %285, %224, %cst_153 {dimension_numbers = #tpu.dot_dimension_numbers<[1], [0], [0], [1], [0, 0, 1, 1], [], []>} : vector<64x64xf32>, vector<64x64xf32>, vector<64x64xf32> -> vector<64x64xf32>
    %cst_154 = arith.constant dense<0.000000e+00> : vector<64x64xf32>
    %290 = tpu.matmul %288, %226, %cst_154 {dimension_numbers = #tpu.dot_dimension_numbers<[1], [0], [0], [1], [0, 0, 1, 1], [], []>} : vector<64x64xf32>, vector<64x64xf32>, vector<64x64xf32> -> vector<64x64xf32>
    %291 = arith.addf %289, %290 : vector<64x64xf32>
    %cst_155 = arith.constant dense<0.000000e+00> : vector<64x64xf32>
    %292 = tpu.matmul %288, %224, %cst_155 {dimension_numbers = #tpu.dot_dimension_numbers<[1], [0], [0], [1], [0, 0, 1, 1], [], []>} : vector<64x64xf32>, vector<64x64xf32>, vector<64x64xf32> -> vector<64x64xf32>
    %cst_156 = arith.constant dense<0.000000e+00> : vector<64x64xf32>
    %293 = tpu.matmul %285, %226, %cst_156 {dimension_numbers = #tpu.dot_dimension_numbers<[1], [0], [0], [1], [0, 0, 1, 1], [], []>} : vector<64x64xf32>, vector<64x64xf32>, vector<64x64xf32> -> vector<64x64xf32>
    %294 = arith.subf %292, %293 : vector<64x64xf32>
    %295 = arith.mulf %291, %291 : vector<64x64xf32>
    %296 = arith.mulf %294, %294 : vector<64x64xf32>
    %297 = arith.addf %295, %296 : vector<64x64xf32>
    %298 = math.sqrt %297 : vector<64x64xf32>
    %c0_157 = arith.constant 0 : index
    %c0_158 = arith.constant 0 : index
    %299 = vector.load %arg5[%c0_157, %c0_158] : memref<32x64xf32, #tpu.memory_space<vmem>>, vector<32x64xf32>
    %cst_159 = arith.constant dense<0.000000e+00> : vector<32x64xf32>
    %300 = tpu.matmul %299, %298, %cst_159 {dimension_numbers = #tpu.dot_dimension_numbers<[1], [0], [0], [1], [0, 0, 1, 1], [], []>} : vector<32x64xf32>, vector<64x64xf32>, vector<32x64xf32> -> vector<32x64xf32>
    %c0_160 = arith.constant 0 : index
    %c0_161 = arith.constant 0 : index
    %301 = vector.load %arg6[%c0_160, %c0_161] : memref<64x32xf32, #tpu.memory_space<vmem>>, vector<64x32xf32>
    %cst_162 = arith.constant dense<0.000000e+00> : vector<32x32xf32>
    %302 = tpu.matmul %300, %301, %cst_162 {dimension_numbers = #tpu.dot_dimension_numbers<[1], [0], [0], [1], [0, 0, 1, 1], [], []>} : vector<32x64xf32>, vector<64x32xf32>, vector<32x32xf32> -> vector<32x32xf32>
    %303 = vector.shape_cast %302 : vector<32x32xf32> to vector<1x32x32xf32>
    %cst_163 = arith.constant dense<0.000000e+00> : vector<1xf32>
    %304 = vector.multi_reduction <add>, %303, %cst_163 [1, 2] : vector<1x32x32xf32> to vector<1xf32>
    %305 = vector.shape_cast %304 : vector<1xf32> to vector<1x1x1xf32>
    %306 = vector.extract %305[0, 0, 0] : f32 from vector<1x1x1xf32>
    %307 = arith.divf %17, %306 : f32
    %308 = vector.broadcast %307 : f32 to vector<32x32xf32>
    %309 = arith.mulf %302, %308 : vector<32x32xf32>
    %310 = vector.broadcast %19 : f32 to vector<32x32xf32>
    %311 = arith.addf %309, %310 : vector<32x32xf32>
    %c0_164 = arith.constant 0 : index
    %c0_165 = arith.constant 0 : index
    %c0_166 = arith.constant 0 : index
    %312 = vector.load %arg7[%c0_164, %c0_165, %c0_166] : memref<1x32x32xf32, #tpu.memory_space<vmem>>, vector<1x32x32xf32>
    %313 = vector.shape_cast %312 : vector<1x32x32xf32> to vector<32x32xf32>
    %314 = vector.shape_cast %311 : vector<32x32xf32> to vector<1x32x32xf32>
    tpu.vector_store %arg7[%c0_164, %c0_165, %c0_166], %314 {strides = array<i32>} : memref<1x32x32xf32, #tpu.memory_space<vmem>>, vector<1x32x32xf32>,
    return
  }
  func.func @transform_0(%arg0: i32) -> (i32, i32) {
    %c0_i32 = arith.constant 0 : i32
    %c0_i32_0 = arith.constant 0 : i32
    %c0_i32_1 = arith.constant 0 : i32
    return %c0_i32, %c0_i32_0 : i32, i32
  }
  func.func @transform_1(%arg0: i32) -> (i32, i32, i32) {
    %c0_i32 = arith.constant 0 : i32
    %c0_i32_0 = arith.constant 0 : i32
    %c0_i32_1 = arith.constant 0 : i32
    %c0_i32_2 = arith.constant 0 : i32
    return %c0_i32, %c0_i32_0, %c0_i32_1 : i32, i32, i32
  }
  func.func @transform_2(%arg0: i32) -> (i32, i32, i32) {
    %c0_i32 = arith.constant 0 : i32
    %c0_i32_0 = arith.constant 0 : i32
    %c0_i32_1 = arith.constant 0 : i32
    %c0_i32_2 = arith.constant 0 : i32
    return %c0_i32, %c0_i32_0, %c0_i32_1 : i32, i32, i32
  }
  func.func @transform_3(%arg0: i32) -> (i32, i32, i32) {
    %c0_i32 = arith.constant 0 : i32
    %c0_i32_0 = arith.constant 0 : i32
    %c0_i32_1 = arith.constant 0 : i32
    %c0_i32_2 = arith.constant 0 : i32
    return %c0_i32, %c0_i32_0, %c0_i32_1 : i32, i32, i32
  }
  func.func @transform_4(%arg0: i32) -> (i32, i32) {
    %c0_i32 = arith.constant 0 : i32
    %c0_i32_0 = arith.constant 0 : i32
    %c0_i32_1 = arith.constant 0 : i32
    return %c0_i32, %c0_i32_0 : i32, i32
  }
  func.func @transform_5(%arg0: i32) -> (i32, i32) {
    %c0_i32 = arith.constant 0 : i32
    %c0_i32_0 = arith.constant 0 : i32
    %c0_i32_1 = arith.constant 0 : i32
    return %c0_i32, %c0_i32_0 : i32, i32
  }
  func.func @transform_6(%arg0: i32) -> (i32, i32, i32) {
    %c0_i32 = arith.constant 0 : i32
    %c0_i32_0 = arith.constant 0 : i32
    %c0_i32_1 = arith.constant 0 : i32
    return %arg0, %c0_i32, %c0_i32_0 : i32, i32, i32
  }
}

</mosaic_0001>

<bundles_post_ra>
// kernel: forward.1
= control target key start
LH: loop header
LB: loop body
LE: loop exit
PB: predicated region body
PF: predicated region fallthrough
CT: control target
= control target key end

     0   :  { %11 = vsyncpa [#allocation6], 0  ;;  %s8948_s0 = inlined_call_operand.vmem [shape: f32[2,10], index: 0, kind: input, shape index: {}]   ;;  %s8949_s1 = inlined_call_operand.hbm [shape: f32[11,64,64], index: 1, kind: input, shape index: {}]   ;;  %s8950_s2 = inlined_call_operand.hbm [shape: f32[15,32,64], index: 2, kind: input, shape index: {}]   ;;  %s8951_s3 = inlined_call_operand.hbm [shape: f32[15,32,64], index: 3, kind: input, shape index: {}]   ;;  %s8952_s4 = inlined_call_operand.hbm [shape: f32[32,64], index: 4, kind: input, shape index: {}]   ;;  %s8953_s5 = inlined_call_operand.vmem [shape: f32[64,32], index: 5, kind: input, shape index: {}]   ;;  %s8954_s6 = inlined_call_operand.hbm [shape: f32[2,32,32], index: 6, kind: output, shape index: {}]  }
   0x1   :  { %12 = vsyncpa [#allocation4], 0 }
   0x2   :  { %13 = vsyncpa [#allocation9], 0 }
   0x3   :  { %14 = vsyncpa [#allocation12], 0 }
   0x4   :  { %15 = vsyncpa [#allocation5], 0 }
   0x5   :  { %17 = vsyncpa [#allocation5 + $0x1], 0  ;;  %s6735_s21 = smov 0   ;;  %s6737_s22 = smov 0  }
   0x6   :  { %s6739_s23 = smov 0   ;;  %s6741_s24 = smov 0  }
   0x7 LB: > { %s6756_s25 = sadd.s32 4294967295, %s6682_s24   ;;  %s5100_s26 = sadd.s32 4294967294, %s6682_s24   ;;  %s6682_s24 = sphi %s6741_s24, %s9186_s24   ;;  %s6678_s23 = sphi %s6739_s23, %s9185_s23   ;;  %s6674_s22 = sphi %s6737_s22, %s9184_s22   ;;  %s6670_s21 = sphi %s6735_s21, %s9183_s21  }
   0x8   : > { %s6760_s27 = sadd.s32 1, %s6682_s24   ;;  %s156_s28 = sadd.s32 1, %s6678_s23 }
   0x9   : > { %s153_s29 = ssub.s32 %s6682_s24, %s6760_s27  ;;  %p166_p0 = scmp.ne.s32.totalorder %s6678_s23, %s6674_s22 }
   0xa   : > { %p154_p1 = scmp.eq.s32.totalorder %s153_s29, 0  ;;  %p167_p2 = scmp.eq.s32.totalorder %s6756_s25, 1 }
   0xb   : > { %p172_p3 = scmp.ne.s32.totalorder %s6674_s22, %s6670_s21  ;;  %p173_p4 = scmp.eq.s32.totalorder %s5100_s26, 1 }
   0xc   : > { %s6771_s30 = scalar_select %p154_p1, %s6678_s23, %s156_s28  }
   0xd   : > { %p6773_p5 = por %p167_p2, %p166_p0  ;;  %p6777_p6 = por %p173_p4, %p172_p3 }
   0xe   : > { %p5101_p7 = scmp.ge.s32.totalorder %s6682_s24, 1  ;;  %p180_p8 = scmp.lt.s32.totalorder %s6682_s24, 3 }
   0xf   : > { %s9011_s7 = scalar_select %p6773_p5, 1, 0 }
  0x10   : > { %s9012_s8 = scalar_select %p6777_p6, 1, 0 }
  0x11   : > { %p8955_p9 = scmp.eq.s32.totalorder %s6756_s25, 0  ;;  %p6784_p10 = pnand %p5101_p7, %p180_p8 }
  0x12   : > { %s6684_s10 = smov [#allocation8]   ;;  %s193_s14 = sshll.u32 %s8948_s0, 4  ;;  %s194_s14 = int_to_ptr.vmem [resolvable:$true] %s193_s14 }
  0x13   : > { %s9013_s9 = scalar_select %p6784_p10, 1, 0 }
  0x14   : > { %p6051_p11 = pneg %p6784_p10  ;;  %s216_s11 = sshll.u32 %s6684_s10, 4  ;;  %s217_s11 = int_to_ptr.vmem [resolvable:$true] %s216_s11 }
  0x15   : > { %s6685_s16 = smov [#allocation7]   ;;  %s6498_s19 = scalar_lea.vmem %s217_s11, 7680 }
  0x16   : > { %p6795_p12 = pnand %p8955_p9, %p6051_p11  ;;  %s203_s17 = sshll.u32 %s6685_s16, 4  ;;  %s204_s17 = int_to_ptr.vmem [resolvable:$true] %s203_s17 }
  0x17   : > { %p6499_p0 = scmp.ne.s32.totalorder %s217_s11, %s6498_s19  ;;  %p6506_p3 = scmp.lt.s32.totalorder %s217_s11, %s217_s11 }
  0x18   : > { %p6801_p13 = pneg %p6795_p12  ;;  %p6507_p4 = scmp.lt.s32.totalorder %s6498_s19, %s6498_s19 }
  0x1a   : > { %p6501_p1 = pnand %p6499_p0, %p6801_p13  ;;  %p6508_p7 = por %p6507_p4, %p6506_p3 }
  0x1c   : > { %p6502_p2 = pneg %p6501_p1 }
  0x1e   : > { %p6509_p8 = pnand %p6508_p7, %p6502_p2 }
  0x20   : > { %6512 = shalt.err (!%p6509_p8)
}
  0x21   : > { %s6686_s20 = smov 128   ;;  %s6687_s26 = smov 8  }
  0x22   : > { %6060 = dma.hbm_to_vmem [thread:$0]  (!%p6795_p12), %s8950_s2, 7680, %s217_s11, [#allocation9], %s6686_s20, %s6686_s20, %s6687_s26  }
  0x23   : > { %s6513_s10 = scalar_lea.vmem %s194_s14, 32  ;;  %p6521_p3 = scmp.lt.s32.totalorder %s194_s14, %s194_s14 }
  0x24   : > { %p6514_p11 = scmp.ne.s32.totalorder %s194_s14, %s6513_s10  ;;  %p6522_p2 = scmp.lt.s32.totalorder %s6513_s10, %s6513_s10 }
  0x26   : > { %p6516_p0 = pnand %p6514_p11, %p6801_p13  ;;  %p6523_p4 = por %p6522_p2, %p6521_p3 }
  0x28   : > { %p6517_p1 = pneg %p6516_p0 }
  0x2a   : > { %p6524_p7 = pnand %p6523_p4, %p6517_p1 }
  0x2c   : > { %6527 = shalt.err (!%p6524_p7)
}
  0x2d   : > { %s6688_s12 = smov [#allocation3]   ;;  %s6539_s13 = scalar_lea.vmem %s204_s17, 11264 }
  0x2e   : > { %6054 = dma.vmem_to_smem (!%p6795_p12), %s194_s14, 32, %s6688_s12, [#allocation6]  }
  0x2f   : > { %p6540_p8 = scmp.ne.s32.totalorder %s204_s17, %s6539_s13  ;;  %p6547_p5 = scmp.lt.s32.totalorder %s204_s17, %s204_s17 }
  0x30   : > { %p6548_p10 = scmp.lt.s32.totalorder %s6539_s13, %s6539_s13 }
  0x31   : > { %p6542_p9 = pnand %p6540_p8, %p6801_p13 }
  0x32   : > { %p6549_p11 = por %p6548_p10, %p6547_p5 }
  0x33   : > { %p6543_p6 = pneg %p6542_p9 }
  0x35   : > { %p6550_p0 = pnand %p6549_p11, %p6543_p6 }
  0x37   : > { %6553 = shalt.err (!%p6550_p0)
}
  0x38   : > { %6057 = dma.hbm_to_vmem [thread:$0]  (!%p6795_p12), %s8949_s1, 11264, %s204_s17, [#allocation4], %s6686_s20, %s6686_s20, %s6687_s26  }
  0x39   : > { %s6689_s14 = smov [#allocation10]   ;;  %s6690_s28 = smov [#allocation11]  }
  0x3a   : > { %s229_s19 = sshll.u32 %s6689_s14, 4  ;;  %s242_s29 = sshll.u32 %s6690_s28, 4  ;;  %s230_s19 = int_to_ptr.vmem [resolvable:$true] %s229_s19  ;;  %s243_s29 = int_to_ptr.vmem [resolvable:$true] %s242_s29 }
  0x3b   : > { %s6565_s10 = scalar_lea.vmem %s230_s19, 7680  ;;  %p6573_p10 = scmp.lt.s32.totalorder %s230_s19, %s230_s19 }
  0x3c   : > { %p6566_p9 = scmp.ne.s32.totalorder %s230_s19, %s6565_s10  ;;  %p6574_p1 = scmp.lt.s32.totalorder %s6565_s10, %s6565_s10 }
  0x3e   : > { %p6568_p5 = pnand %p6566_p9, %p6801_p13  ;;  %p6575_p3 = por %p6574_p1, %p6573_p10 }
  0x40   : > { %p6569_p6 = pneg %p6568_p5 }
  0x42   : > { %p6576_p2 = pnand %p6575_p3, %p6569_p6 }
  0x44   : > { %6579 = shalt.err (!%p6576_p2)
}
  0x45   : > { %6063 = dma.hbm_to_vmem [thread:$0]  (!%p6795_p12), %s8951_s3, 7680, %s230_s19, [#allocation9], %s6686_s20, %s6686_s20, %s6687_s26  }
  0x46   : > { %s6591_s13 = scalar_lea.vmem %s243_s29, 512  ;;  %p6599_p11 = scmp.lt.s32.totalorder %s243_s29, %s243_s29 }
  0x47   : > { %p6592_p4 = scmp.ne.s32.totalorder %s243_s29, %s6591_s13  ;;  %p6600_p0 = scmp.lt.s32.totalorder %s6591_s13, %s6591_s13 }
  0x49   : > { %p6594_p7 = pnand %p6592_p4, %p6801_p13  ;;  %p6601_p9 = por %p6600_p0, %p6599_p11 }
  0x4b   : > { %p6595_p8 = pneg %p6594_p7 }
  0x4d   : > { %p6602_p5 = pnand %p6601_p9, %p6595_p8 }
  0x4f   : > { %6605 = shalt.err (!%p6602_p5)
}
  0x50   : > { %6066 = dma.hbm_to_vmem [thread:$0]  (!%p6795_p12), %s8952_s4, 512, %s243_s29, [#allocation12], %s6686_s20, %s6686_s20, %s6687_s26  }
  0x51   : > { %p9016_p6 = scmp.ne.s32.totalorder %s9013_s9, 0 }
  0x53   : > { %261 = sbr.rel (%p9016_p6) target bundleno = 2232 (0x8b8), region = 44 }
  0x58   : > { %p9017_p13 = scmp.eq.s32.totalorder %s6756_s25, 0 }
  0x5a   : > { %6649 = dma.done.wait (%p9017_p13), [#allocation6], 32   ;;  %p9018_p10 = pmov %p9017_p13 }
  0x5c   : > { %6651 = vsyncadd (%p9018_p10), [#allocation6], 4294967264  ;;  %p9019_p1 = pmov %p9018_p10 }
  0x5e   : > { %6653 = dma.done.wait (%p9019_p1), [#allocation4], 11264   ;;  %p9020_p3 = pmov %p9019_p1 }
  0x5f   : > { %p9021_p2 = pmov %p9019_p1 }
  0x60   : > { %6655 = vsyncadd (%p9020_p3), [#allocation4], 4294956032 }
  0x61   : > { %6657 = dma.done.wait (%p9021_p2), [#allocation9], 15360   ;;  %p9022_p12 = pmov %p9019_p1 }
  0x62   : > { %p9023_p4 = pmov %p9019_p1 }
  0x63   : > { %6659 = vsyncadd (%p9022_p12), [#allocation9], 4294951936 }
  0x64   : > { %6661 = dma.done.wait (%p9023_p4), [#allocation12], 512   ;;  %p9024_p7 = pmov %p9019_p1 }
  0x66   : > { %6663 = vsyncadd (%p9024_p7), [#allocation12], 4294966784 }
  0x67   : > { %283 = sfence }
  0x68   : > { %s6868_s9 = sshll.u32 %s6756_s25, 7  ;;  %v331_v0 = vld [vmem:[#allocation7 + $0xb8] sm:$0xff]  ;;  %v330_v1 = vld [vmem:[#allocation7 + $0xb0] sm:$0xff]  ;;  %v329_v2 = vld [vmem:[#allocation7 + $0xa8] sm:$0xff]  ;;  %vm9008_vm0 = vcmask 523264   ;;  %p9181_p11 = scmp.ne.s32.totalorder %s9011_s7, 0 }
  0x69   : > { %s305_s15 = sadd.s32 1, %s6868_s9  ;;  %v448_v3 = vld [vmem:[#allocation8 + $0x18] sm:$0xff]  ;;  %s307_s20 = sadd.s32 2, %s6868_s9  ;;  %v413_v34 = vld [vmem:[#allocation7 + $0x70] sm:$0xff]  ;;  %v412_v35 = vld [vmem:[#allocation7 + $0x68] sm:$0xff] }
  0x6a   : > { %s306_s18 = sld [smem:[#allocation3 + %s305_s15]]  ;;  %v481_v5 = vld [vmem:[#allocation8 + $0x38] sm:$0xff]  ;;  %v328_v39 = vld [vmem:[#allocation7 + $0xa0] sm:$0xff]  ;;  %v447_v40 = vld [vmem:[#allocation8 + $0x10] sm:$0xff]  ;;  %s309_s19 = sadd.s32 3, %s6868_s9 }
  0x6b   : > { %v523_v9 = vld [vmem:[#allocation8 + $0x58] sm:$0xff]  ;;  %s308_s26 = sld [smem:[#allocation3 + %s307_s20]]  ;;  %v480_v44 = vld [vmem:[#allocation8 + $0x30] sm:$0xff]  ;;  %s311_s29 = sadd.s32 4, %s6868_s9 }
  0x6c   : > { %v565_v11 = vld [vmem:[#allocation8 + $0x78] sm:$0xff]  ;;  %s304_s14 = sld [smem:[#allocation3 + %s6868_s9]]  ;;  %v522_v45 = vld [vmem:[#allocation8 + $0x50] sm:$0xff]  ;;  %s313_s12 = sadd.s32 5, %s6868_s9 }
  0x6d   : > { %v607_v13 = vld [vmem:[#allocation8 + $0x98] sm:$0xff]  ;;  %v564_v50 = vld [vmem:[#allocation8 + $0x70] sm:$0xff]  ;;  %s310_s28 = sld [smem:[#allocation3 + %s309_s19]]  ;;  %s315_s13 = sadd.s32 6, %s6868_s9 }
  0x6e   : > { %v649_v15 = vld [vmem:[#allocation8 + $0xb8] sm:$0xff]  ;;  %v606_v55 = vld [vmem:[#allocation8 + $0x90] sm:$0xff]  ;;  %s312_s10 = sld [smem:[#allocation3 + %s311_s29]]  ;;  %s317_s15 = sadd.s32 7, %s6868_s9 }
  0x6f   : > { %v691_v17 = vld [vmem:[#allocation8 + $0xd8] sm:$0xff]  ;;  %s8174_s11 = sld [smem:[#allocation3 + %s313_s12]]  ;;  %s321_s29 = sadd.s32 9, %s6868_s9 }
  0x70   : > { %v6871_v4 = vstv %s306_s18  ;;  %v733_v19 = vld [vmem:[#allocation8 + $0xf8] sm:$0xff]  ;;  %s8180_s16 = sld [smem:[#allocation3 + %s315_s13]] }
  0x71   : > { %v340_v6 = vadd.f32 %v6871_v4, %v331_v0  ;;  %v339_v7 = vadd.f32 %v6871_v4, %v330_v1  ;;  %v338_v8 = vadd.f32 %v6871_v4, %v329_v2  ;;  %v452_v10 = vadd.f32 %v448_v3, %v6871_v4  ;;  %v775_v21 = vld [vmem:[#allocation8 + $0x118] sm:$0xff]  ;;  %s8201_s18 = sld [smem:[#allocation3 + %s317_s15]]  ;;  %s5304_s15 = sshll.u32 %s6756_s25, 9 }
  0x72   : > { %v485_v12 = vadd.f32 %v481_v5, %v6871_v4  ;;  %v527_v14 = vadd.f32 %v523_v9, %v6871_v4  ;;  %v569_v16 = vadd.f32 %v565_v11, %v6871_v4  ;;  %v611_v18 = vadd.f32 %v607_v13, %v6871_v4  ;;  %v817_v23 = vld [vmem:[#allocation8 + $0x138] sm:$0xff]  ;;  %s322_s12 = sld [smem:[#allocation3 + %s321_s29]] }
  0x73   : > { %6129 = vlog2.f32 %v340_v6  ;;  %v653_v20 = vadd.f32 %v649_v15, %v6871_v4  ;;  %v695_v22 = vadd.f32 %v691_v17, %v6871_v4  ;;  %v737_v24 = vadd.f32 %v733_v19, %v6871_v4  ;;  %v859_v25 = vld [vmem:[#allocation8 + $0x158] sm:$0xff] }
  0x74   : > { %6131 = vlog2.f32 %v339_v7  ;;  %v779_v26 = vadd.f32 %v775_v21, %v6871_v4  ;;  %v901_v27 = vld [vmem:[#allocation8 + $0x178] sm:$0xff]  ;;  %v821_v28 = vadd.f32 %v817_v23, %v6871_v4  ;;  %v863_v31 = vadd.f32 %v859_v25, %v6871_v4 }
  0x75   : > { %6133 = vlog2.f32 %v338_v8  ;;  %v943_v29 = vld [vmem:[#allocation8 + $0x198] sm:$0xff]  ;;  %v6889_v33 = vstv %s308_s26  ;;  %v905_v36 = vadd.f32 %v901_v27, %v6871_v4  ;;  %v6893_v41 = vstv %s304_s14 }
  0x76   : > { %6135 = vlog2.f32 %v452_v10  ;;  %v414_v30 = vld [vmem:[#allocation7 + $0x78] sm:$0xff]  ;;  %v947_v38 = vadd.f32 %v943_v29, %v6871_v4  ;;  %v6900_v47 = vmul.f32 %v6889_v33, %v413_v34  ;;  %v6903_v48 = vmul.f32 %v6889_v33, %v412_v35 }
  0x77   : > { %6137 = vlog2.f32 %v485_v12  ;;  %v985_v32 = vld [vmem:[#allocation8 + $0x1b8] sm:$0xff]  ;;  %v6896_v42 = vmul.f32 %v6889_v33, %v414_v30  ;;  %v337_v53 = vadd.f32 %v6871_v4, %v328_v39  ;;  %v451_v54 = vadd.f32 %v447_v40, %v6871_v4 }
  0x78   : > { %6139 = vlog2.f32 %v527_v14  ;;  %v1027_v37 = vld [vmem:[#allocation8 + $0x1d8] sm:$0xff]  ;;  %v989_v43 = vadd.f32 %v985_v32, %v6871_v4  ;;  %v6909_v58 = vadd.f32 %v480_v44, %v6871_v4  ;;  %v6912_v59 = vadd.f32 %v522_v45, %v6871_v4 }
  0x79   : > { %6141 = vlog2.f32 %v569_v16  ;;  %v1031_v49 = vadd.f32 %v1027_v37, %v6871_v4  ;;  %v6915_v63 = vadd.f32 %v564_v50, %v6871_v4  ;;  %v6918_v3 = vadd.f32 %v606_v55, %v6871_v4 }
  0x7a   : > { %6143 = vlog2.f32 %v611_v18 }
  0x7b   : > { %6145 = vlog2.f32 %v653_v20 }
  0x7c   : > { %6147 = vlog2.f32 %v695_v22 }
  0x7d   : > { %6149 = vlog2.f32 %v737_v24 }
  0x7e   : > { %6151 = vlog2.f32 %v779_v26 }
  0x7f   : > { %6153 = vlog2.f32 %v821_v28 }
  0x80   : > { %v6130_v46 = vpop.eup %6129  ;;  %6155 = vlog2.f32 %v863_v31 }
  0x81   : > { %v6132_v51 = vpop.eup %6131  ;;  %v356_v52 = vmul.f32 0.6931472, %v6130_v46  ;;  %6157 = vlog2.f32 %v905_v36 }
  0x82   : > { %v6134_v56 = vpop.eup %6133  ;;  %v354_v57 = vmul.f32 0.6931472, %v6132_v51  ;;  %6159 = vlog2.f32 %v947_v38 }
  0x83   : > { %v6136_v60 = vpop.eup %6135  ;;  %v364_v61 = vmul.f32 -1.8333334, %v356_v52  ;;  %v352_v62 = vmul.f32 0.6931472, %v6134_v56  ;;  %6161 = vlog2.f32 %v989_v43 }
  0x84   : > { %v6138_v0 = vpop.eup %6137  ;;  %v363_v1 = vmul.f32 -1.8333334, %v354_v57  ;;  %v460_v2 = vmul.f32 0.6931472, %v6136_v60  ;;  %6163 = vlog2.f32 %v1031_v49 }
  0x85   : > { %v6140_v5 = vpop.eup %6139  ;;  %v379_v6 = vmul.f32 1.442695, %v364_v61  ;;  %v362_v7 = vmul.f32 -1.8333334, %v352_v62  ;;  %v493_v8 = vmul.f32 0.6931472, %v6138_v0  ;;  %6165 = vlog2.f32 %v337_v53 }
  0x86   : > { %v6142_v9 = vpop.eup %6141  ;;  %v377_v10 = vmul.f32 1.442695, %v363_v1  ;;  %v464_v11 = vmul.f32 -1.8333334, %v460_v2  ;;  %v535_v12 = vmul.f32 0.6931472, %v6140_v5  ;;  %6167 = vlog2.f32 %v451_v54 }
  0x87   : > { %v6144_v13 = vpop.eup %6143  ;;  %6169 = vpow2.f32 %v379_v6  ;;  %v375_v14 = vmul.f32 1.442695, %v362_v7  ;;  %v497_v15 = vmul.f32 -1.8333334, %v493_v8  ;;  %v577_v16 = vmul.f32 0.6931472, %v6142_v9 }
  0x88   : > { %v6146_v17 = vpop.eup %6145  ;;  %6171 = vpow2.f32 %v377_v10  ;;  %v471_v18 = vmul.f32 1.442695, %v464_v11  ;;  %v539_v19 = vmul.f32 -1.8333334, %v535_v12  ;;  %v619_v20 = vmul.f32 0.6931472, %v6144_v13 }
  0x89   : > { %v6148_v21 = vpop.eup %6147  ;;  %6173 = vpow2.f32 %v375_v14  ;;  %v504_v22 = vmul.f32 1.442695, %v497_v15  ;;  %v581_v23 = vmul.f32 -1.8333334, %v577_v16  ;;  %v661_v24 = vmul.f32 0.6931472, %v6146_v17 }
  0x8a   : > { %v6150_v25 = vpop.eup %6149  ;;  %6175 = vpow2.f32 %v471_v18  ;;  %v546_v26 = vmul.f32 1.442695, %v539_v19  ;;  %v623_v27 = vmul.f32 -1.8333334, %v619_v20  ;;  %v703_v28 = vmul.f32 0.6931472, %v6148_v21 }
  0x8b   : > { %v6152_v29 = vpop.eup %6151  ;;  %6177 = vpow2.f32 %v504_v22  ;;  %v588_v30 = vmul.f32 1.442695, %v581_v23  ;;  %v665_v31 = vmul.f32 -1.8333334, %v661_v24  ;;  %v745_v32 = vmul.f32 0.6931472, %v6150_v25 }
  0x8c   : > { %v6154_v34 = vpop.eup %6153  ;;  %6179 = vpow2.f32 %v546_v26  ;;  %v630_v35 = vmul.f32 1.442695, %v623_v27  ;;  %v707_v36 = vmul.f32 -1.8333334, %v703_v28  ;;  %v787_v37 = vmul.f32 0.6931472, %v6152_v29 }
  0x8d   : > { %v6156_v38 = vpop.eup %6155  ;;  %6181 = vpow2.f32 %v588_v30  ;;  %v672_v39 = vmul.f32 1.442695, %v665_v31  ;;  %v749_v40 = vmul.f32 -1.8333334, %v745_v32  ;;  %v829_v43 = vmul.f32 0.6931472, %v6154_v34 }
  0x8e   : > { %v6158_v44 = vpop.eup %6157  ;;  %6183 = vpow2.f32 %v630_v35  ;;  %v714_v45 = vmul.f32 1.442695, %v707_v36  ;;  %v791_v46 = vmul.f32 -1.8333334, %v787_v37  ;;  %v871_v49 = vmul.f32 0.6931472, %v6156_v38 }
  0x8f   : > { %v6160_v50 = vpop.eup %6159  ;;  %6185 = vpow2.f32 %v672_v39  ;;  %v756_v51 = vmul.f32 1.442695, %v749_v40  ;;  %v833_v52 = vmul.f32 -1.8333334, %v829_v43  ;;  %v913_v53 = vmul.f32 0.6931472, %v6158_v44 }
  0x90   : > { %v6162_v54 = vpop.eup %6161  ;;  %6187 = vpow2.f32 %v714_v45  ;;  %v798_v55 = vmul.f32 1.442695, %v791_v46  ;;  %v875_v56 = vmul.f32 -1.8333334, %v871_v49  ;;  %v955_v57 = vmul.f32 0.6931472, %v6160_v50 }
  0x91   : > { %v6164_v60 = vpop.eup %6163  ;;  %6189 = vpow2.f32 %v756_v51  ;;  %v840_v61 = vmul.f32 1.442695, %v833_v52  ;;  %v917_v62 = vmul.f32 -1.8333334, %v913_v53  ;;  %v997_v0 = vmul.f32 0.6931472, %v6162_v54 }
  0x92   : > { %v6166_v1 = vpop.eup %6165  ;;  %v397_v2 = vld [vmem:[#allocation7 + $0x38] sm:$0xff]  ;;  %6191 = vpow2.f32 %v798_v55  ;;  %v882_v5 = vmul.f32 1.442695, %v875_v56  ;;  %v959_v6 = vmul.f32 -1.8333334, %v955_v57  ;;  %v396_v18 = vld [vmem:[#allocation7 + $0x30] sm:$0xff] }
  0x93   : > { %v1039_v7 = vmul.f32 0.6931472, %v6164_v60  ;;  %v6168_v8 = vpop.eup %6167  ;;  %6193 = vpow2.f32 %v840_v61  ;;  %v924_v9 = vmul.f32 1.442695, %v917_v62  ;;  %v1001_v10 = vmul.f32 -1.8333334, %v997_v0 }
  0x94   : > { %v350_v11 = vmul.f32 0.6931472, %v6166_v1  ;;  %v6170_v12 = vpop.eup %6169  ;;  %6195 = vpow2.f32 %v882_v5  ;;  %v966_v13 = vmul.f32 1.442695, %v959_v6  ;;  %v458_v15 = vmul.f32 0.6931472, %v6168_v8 }
  0x95   : > { %v1043_v14 = vmul.f32 -1.8333334, %v1039_v7  ;;  %v6172_v16 = vpop.eup %6171  ;;  %v389_v17 = vmul.f32 %v6170_v12, %v6893_v41  ;;  %v444_v19 = vld [vmem:[#allocation10 + $0x18] sm:$0xff]  ;;  %6197 = vpow2.f32 %v924_v9  ;;  %v1008_v20 = vmul.f32 1.442695, %v1001_v10  ;;  %v395_v24 = vld [vmem:[#allocation7 + $0x28] sm:$0xff] }
  0x96   : > { %v361_v21 = vmul.f32 -1.8333334, %v350_v11  ;;  %v6174_v22 = vpop.eup %6173  ;;  %v388_v23 = vmul.f32 %v6172_v16, %v6893_v41  ;;  %v510_v25 = vld [vmem:[#allocation10 + $0x38] sm:$0xff]  ;;  %6199 = vpow2.f32 %v966_v13  ;;  %v463_v27 = vmul.f32 -1.8333334, %v458_v15  ;;  %v648_v34 = vld [vmem:[#allocation8 + $0xb0] sm:$0xff] }
  0x97   : > { %v1050_v26 = vmul.f32 1.442695, %v1043_v14  ;;  %v6176_v28 = vpop.eup %6175  ;;  %v405_v29 = vmul.f32 %v397_v2, %v389_v17  ;;  %v387_v30 = vmul.f32 %v6174_v22, %v6893_v41  ;;  %v552_v31 = vld [vmem:[#allocation10 + $0x58] sm:$0xff]  ;;  %6201 = vpow2.f32 %v1008_v20  ;;  %v690_v46 = vld [vmem:[#allocation8 + $0xd0] sm:$0xff]  ;;  %v411_v20 = vld [vmem:[#allocation7 + $0x60] sm:$0xff] }
  0x98   : > { %v373_v32 = vmul.f32 1.442695, %v361_v21  ;;  %v6178_v35 = vpop.eup %6177  ;;  %v404_v36 = vmul.f32 %v396_v18, %v388_v23  ;;  %v476_v37 = vmul.f32 %v6176_v28, %v444_v19  ;;  %v594_v38 = vld [vmem:[#allocation10 + $0x78] sm:$0xff]  ;;  %v469_v39 = vmul.f32 1.442695, %v463_v27  ;;  %v732_v54 = vld [vmem:[#allocation8 + $0xf0] sm:$0xff] }
  0x99   : > { %6203 = vpow2.f32 %v1050_v26  ;;  %v6180_v40 = vpop.eup %6179  ;;  %v431_v43 = vadd.f32 %v6896_v42, %v405_v29  ;;  %v403_v44 = vmul.f32 %v395_v24, %v387_v30  ;;  %v514_v45 = vmul.f32 %v6178_v35, %v510_v25  ;;  %v636_v52 = vld [vmem:[#allocation10 + $0x98] sm:$0xff]  ;;  %v774_v60 = vld [vmem:[#allocation8 + $0x110] sm:$0xff]  ;;  %v446_v27 = vld [vmem:[#allocation8 + $0x8] sm:$0xff] }
  0x9a   : > { %6205 = vpow2.f32 %v373_v32  ;;  %v6182_v49 = vpop.eup %6181  ;;  %v430_v50 = vadd.f32 %v6900_v47, %v404_v36  ;;  %v556_v51 = vmul.f32 %v6180_v40, %v552_v31  ;;  %v652_v53 = vadd.f32 %v648_v34, %v6871_v4  ;;  %v678_v47 = vld [vmem:[#allocation10 + $0xb8] sm:$0xff]  ;;  %v816_v0 = vld [vmem:[#allocation8 + $0x130] sm:$0xff]  ;;  %v479_v28 = vld [vmem:[#allocation8 + $0x28] sm:$0xff] }
  0x9b   : > { %6207 = vpow2.f32 %v469_v39  ;;  %v6184_v55 = vpop.eup %6183  ;;  %440 = vst.msk [vmem:[#allocation2 + $0x38] sm:$0xff] %vm9008_vm0, %v431_v43  ;;  %v429_v56 = vadd.f32 %v6903_v48, %v403_v44  ;;  %v518_v57 = vadd.f32 %v514_v45, %v476_v37  ;;  %v598_v42 = vmul.f32 %v6182_v49, %v594_v38  ;;  %v720_v7 = vld [vmem:[#allocation10 + $0xd8] sm:$0xff]  ;;  %v942_v13 = vld [vmem:[#allocation8 + $0x190] sm:$0xff]  ;;  %v521_v35 = vld [vmem:[#allocation8 + $0x48] sm:$0xff] }
  0x9c   : > { %6209 = vlog2.f32 %v6909_v58  ;;  %v6186_v61 = vpop.eup %6185  ;;  %439 = vst.msk [vmem:[#allocation2 + $0x30] sm:$0xff] %vm9008_vm0, %v430_v50  ;;  %v694_v62 = vadd.f32 %v690_v46, %v6871_v4  ;;  %v640_v5 = vmul.f32 %v6184_v55, %v636_v52  ;;  %v736_v48 = vadd.f32 %v732_v54, %v6871_v4  ;;  %v858_v58 = vld [vmem:[#allocation8 + $0x150] sm:$0xff]  ;;  %v762_v15 = vld [vmem:[#allocation10 + $0xf8] sm:$0xff]  ;;  %v563_v36 = vld [vmem:[#allocation8 + $0x68] sm:$0xff] }
  0x9d   : > { %6211 = vlog2.f32 %v6912_v59  ;;  %v6188_v1 = vpop.eup %6187  ;;  %438 = vst.msk [vmem:[#allocation2 + $0x28] sm:$0xff] %vm9008_vm0, %v429_v56  ;;  %v560_v2 = vadd.f32 %v556_v51, %v518_v57  ;;  %v778_v8 = vadd.f32 %v774_v60, %v6871_v4  ;;  %v900_v59 = vld [vmem:[#allocation8 + $0x170] sm:$0xff]  ;;  %v682_v11 = vmul.f32 %v6186_v61, %v678_v47  ;;  %v327_v23 = vld [vmem:[#allocation7 + $0x98] sm:$0xff]  ;;  %v605_v52 = vld [vmem:[#allocation8 + $0x88] sm:$0xff] }
  0x9e   : > { %6213 = vlog2.f32 %v6915_v63  ;;  %v6190_v6 = vpop.eup %6189  ;;  %v820_v12 = vadd.f32 %v816_v0, %v6871_v4  ;;  %v804_v63 = vld [vmem:[#allocation10 + $0x118] sm:$0xff]  ;;  %v862_v16 = vadd.f32 %v858_v58, %v6871_v4  ;;  %v984_v17 = vld [vmem:[#allocation8 + $0x1b0] sm:$0xff]  ;;  %v904_v21 = vadd.f32 %v900_v59, %v6871_v4  ;;  %v394_v54 = vld [vmem:[#allocation7 + $0x20] sm:$0xff] }
  0x9f   : > { %6215 = vlog2.f32 %v6918_v3  ;;  %v6192_v9 = vpop.eup %6191  ;;  %v602_v10 = vadd.f32 %v598_v42, %v560_v2  ;;  %v724_v3 = vmul.f32 %v6188_v1, %v720_v7  ;;  %v1026_v22 = vld [vmem:[#allocation8 + $0x1d0] sm:$0xff]  ;;  %v946_v26 = vadd.f32 %v942_v13, %v6871_v4  ;;  %v846_v38 = vld [vmem:[#allocation10 + $0x138] sm:$0xff] }
  0xa0   : > { %6217 = vlog2.f32 %v652_v53  ;;  %v6194_v14 = vpop.eup %6193  ;;  %v766_v32 = vmul.f32 %v6190_v6, %v762_v15  ;;  %v988_v34 = vadd.f32 %v984_v17, %v6871_v4  ;;  %v420_v39 = vmul.f32 %v6889_v33, %v411_v20  ;;  %v888_v49 = vld [vmem:[#allocation10 + $0x158] sm:$0xff] }
  0xa1   : > { %6219 = vlog2.f32 %v694_v62  ;;  %v6196_v18 = vpop.eup %6195  ;;  %v644_v19 = vadd.f32 %v640_v5, %v602_v10  ;;  %v1030_v40 = vadd.f32 %v1026_v22, %v6871_v4  ;;  %v336_v43 = vadd.f32 %v6871_v4, %v327_v23  ;;  %v930_v50 = vld [vmem:[#allocation10 + $0x178] sm:$0xff] }
  0xa2   : > { %6221 = vlog2.f32 %v736_v48  ;;  %v6198_v24 = vpop.eup %6197  ;;  %v1106_v25 = vld [vmem:[#allocation2 + $0x38] sm:$0xff]  ;;  %v808_v46 = vmul.f32 %v6192_v9, %v804_v63  ;;  %v450_v51 = vadd.f32 %v446_v27, %v6871_v4  ;;  %v483_v55 = vadd.f32 %v479_v28, %v6871_v4 }
  0xa3   : > { %6223 = vlog2.f32 %v778_v8  ;;  %v6200_v29 = vpop.eup %6199  ;;  %5553 = vmatprep.subr.mxu0 %v1106_v25  ;;  %5581 = vmatprep.subr.mxu1 %v1106_v25  ;;  %v1105_v30 = vld [vmem:[#allocation2 + $0x30] sm:$0xff]  ;;  %v686_v31 = vadd.f32 %v682_v11, %v644_v19  ;;  %v525_v56 = vadd.f32 %v521_v35, %v6871_v4  ;;  %v6949_v57 = vadd.f32 %v563_v36, %v6871_v4  ;;  %v972_v47 = vld [vmem:[#allocation10 + $0x198] sm:$0xff]  ;;  %v1091_v35 = vld [vmem:[#allocation7 + $0x280] sm:$0xff] }
  0xa4   : > { %6225 = vlog2.f32 %v820_v12  ;;  %v6202_v37 = vpop.eup %6201  ;;  %5554 = vmatpush3.msra.mxu0 %v1106_v25  ;;  %5582 = vmatpush3.msra.mxu1 %v1106_v25  ;;  %v850_v61 = vmul.f32 %v6194_v14, %v846_v38  ;;  %v1014_v62 = vld [vmem:[#allocation10 + $0x1b8] sm:$0xff]  ;;  %v892_v2 = vmul.f32 %v6196_v18, %v888_v49  ;;  %v934_v5 = vmul.f32 %v6198_v24, %v930_v50 }
  0xa5   : > { %6227 = vlog2.f32 %v862_v16  ;;  %5555 = vmatprep.subr.mxu0 %v1105_v30  ;;  %5583 = vmatprep.subr.mxu1 %v1105_v30  ;;  %v728_v45 = vadd.f32 %v724_v3, %v686_v31  ;;  %v6955_v48 = vadd.f32 %v605_v52, %v6871_v4  ;;  %v1056_v7 = vld [vmem:[#allocation10 + $0x1d8] sm:$0xff]  ;;  %v976_v10 = vmul.f32 %v6200_v29, %v972_v47 }
  0xa6   : > { %v6204_v44 = vpop.eup %6203  ;;  %6229 = vlog2.f32 %v904_v21  ;;  %5556 = vmatpush3.msra.mxu0 %v1105_v30  ;;  %5584 = vmatpush3.msra.mxu1 %v1105_v30  ;;  %v1018_v11 = vmul.f32 %v6202_v37, %v1014_v62 }
  0xa7   : > { %v6206_v53 = vpop.eup %6205  ;;  %6231 = vlog2.f32 %v946_v26  ;;  %v770_v60 = vadd.f32 %v766_v32, %v728_v45  ;;  %v1060_v18 = vmul.f32 %v6204_v44, %v1056_v7  ;;  %5597 = vmatprep.mubr.msk.f32.mxu1 %vm9008_vm0, %v1091_v35 }
  0xa8   : > { %v6951_v42 = vpop.eup %6207  ;;  %v386_v0 = vmul.f32 %v6206_v53, %v6893_v41  ;;  %6233 = vlog2.f32 %v988_v34  ;;  %v1082_v34 = vld [vmem:[#allocation7 + $0x240] sm:$0xff] }
  0xa9   : > { %v6210_v1 = vpop.eup %6209  ;;  %6235 = vlog2.f32 %v1030_v40  ;;  %v812_v6 = vadd.f32 %v808_v46, %v770_v60  ;;  %5569 = vmatprep.mubr.msk.f32.mxu0 %vm9008_vm0, %v1082_v34  ;;  %v1068_v60 = vld [vmem:[#allocation2 + $0x28] sm:$0xff] }
  0xaa   : > { %v6212_v58 = vpop.eup %6211  ;;  %v402_v8 = vmul.f32 %v394_v54, %v386_v0  ;;  %v491_v59 = vmul.f32 0.6931472, %v6210_v1  ;;  %6237 = vlog2.f32 %v336_v43 }
  0xab   : > { %v6214_v9 = vpop.eup %6213  ;;  %v533_v12 = vmul.f32 0.6931472, %v6212_v58  ;;  %6239 = vlog2.f32 %v450_v51  ;;  %v854_v14 = vadd.f32 %v850_v61, %v812_v6 }
  0xac   : > { %v6216_v13 = vpop.eup %6215  ;;  %v428_v15 = vadd.f32 %v420_v39, %v402_v8  ;;  %v496_v63 = vmul.f32 -1.8333334, %v491_v59  ;;  %v575_v16 = vmul.f32 0.6931472, %v6214_v9  ;;  %6241 = vlog2.f32 %v483_v55 }
  0xad   : > { %v6218_v17 = vpop.eup %6217  ;;  %v538_v19 = vmul.f32 -1.8333334, %v533_v12  ;;  %v617_v3 = vmul.f32 0.6931472, %v6216_v13  ;;  %v896_v21 = vadd.f32 %v892_v2, %v854_v14  ;;  %6243 = vlog2.f32 %v525_v56 }
  0xae   : > { %v6220_v20 = vpop.eup %6219  ;;  %437 = vst.msk [vmem:[#allocation2 + $0x20] sm:$0xff] %vm9008_vm0, %v428_v15  ;;  %v502_v22 = vmul.f32 1.442695, %v496_v63  ;;  %v580_v23 = vmul.f32 -1.8333334, %v575_v16 }
  0xaf   : > { %v659_v24 = vmul.f32 0.6931472, %v6218_v17  ;;  %v6222_v25 = vpop.eup %6221  ;;  %v544_v26 = vmul.f32 1.442695, %v538_v19  ;;  %v622_v27 = vmul.f32 -1.8333334, %v617_v3  ;;  %v938_v30 = vadd.f32 %v934_v5, %v896_v21 }
  0xb0   : > { %v701_v28 = vmul.f32 0.6931472, %v6220_v20  ;;  %v6224_v29 = vpop.eup %6223  ;;  %6245 = vpow2.f32 %v502_v22  ;;  %v586_v31 = vmul.f32 1.442695, %v580_v23  ;;  %v743_v39 = vmul.f32 0.6931472, %v6222_v25 }
  0xb1   : > { %v664_v32 = vmul.f32 -1.8333334, %v659_v24  ;;  %v6226_v36 = vpop.eup %6225  ;;  %6247 = vpow2.f32 %v544_v26  ;;  %v628_v37 = vmul.f32 1.442695, %v622_v27  ;;  %v980_v43 = vadd.f32 %v976_v10, %v938_v30  ;;  %v551_v25 = vld [vmem:[#allocation10 + $0x50] sm:$0xff] }
  0xb2   : > { %v706_v38 = vmul.f32 -1.8333334, %v701_v28  ;;  %v6228_v40 = vpop.eup %6227  ;;  %6249 = vpow2.f32 %v586_v31  ;;  %v785_v45 = vmul.f32 0.6931472, %v6224_v29  ;;  %v748_v50 = vmul.f32 -1.8333334, %v743_v39 }
  0xb3   : > { %v670_v44 = vmul.f32 1.442695, %v664_v32  ;;  %v6230_v46 = vpop.eup %6229  ;;  %6251 = vpow2.f32 %v628_v37  ;;  %v827_v51 = vmul.f32 0.6931472, %v6226_v36  ;;  %v1022_v53 = vadd.f32 %v1018_v11, %v980_v43  ;;  %v443_v11 = vld [vmem:[#allocation10 + $0x10] sm:$0xff] }
  0xb4   : > { %v712_v49 = vmul.f32 1.442695, %v706_v38  ;;  %v6232_v52 = vpop.eup %6231  ;;  %v790_v54 = vmul.f32 -1.8333334, %v785_v45  ;;  %v869_v55 = vmul.f32 0.6931472, %v6228_v40  ;;  %v475_v24 = vmul.f32 %v6951_v42, %v443_v11 }
  0xb5   : > { %6253 = vpow2.f32 %v670_v44  ;;  %v6234_v56 = vpop.eup %6233  ;;  %v754_v61 = vmul.f32 1.442695, %v748_v50  ;;  %v832_v47 = vmul.f32 -1.8333334, %v827_v51  ;;  %v911_v62 = vmul.f32 0.6931472, %v6230_v46 }
  0xb6   : > { %6255 = vpow2.f32 %v712_v49  ;;  %v6236_v0 = vpop.eup %6235  ;;  %v1064_v1 = vadd.f32 %v1060_v18, %v1022_v53  ;;  %v796_v2 = vmul.f32 1.442695, %v790_v54  ;;  %v874_v5 = vmul.f32 -1.8333334, %v869_v55  ;;  %v509_v18 = vld [vmem:[#allocation10 + $0x30] sm:$0xff]  ;;  %v647_v38 = vld [vmem:[#allocation8 + $0xa8] sm:$0xff] }
  0xb7   : > { %v953_v58 = vmul.f32 0.6931472, %v6232_v52  ;;  %v6238_v6 = vpop.eup %6237  ;;  %6257 = vpow2.f32 %v754_v61  ;;  %v838_v7 = vmul.f32 1.442695, %v832_v47  ;;  %v916_v8 = vmul.f32 -1.8333334, %v911_v62 }
  0xb8   : > { %v995_v59 = vmul.f32 0.6931472, %v6234_v56  ;;  %v6240_v9 = vpop.eup %6239  ;;  %v1072_v10 = vmul.f32 %v1064_v1, %v6893_v41  ;;  %6259 = vpow2.f32 %v796_v2  ;;  %v880_v12 = vmul.f32 1.442695, %v874_v5  ;;  %v593_v26 = vld [vmem:[#allocation10 + $0x70] sm:$0xff]  ;;  %v689_v45 = vld [vmem:[#allocation8 + $0xc8] sm:$0xff] }
  0xb9   : > { %v958_v13 = vmul.f32 -1.8333334, %v953_v58  ;;  %6261 = vpow2.f32 %v838_v7  ;;  %v922_v14 = vmul.f32 1.442695, %v916_v8  ;;  %v1037_v63 = vmul.f32 0.6931472, %v6236_v0  ;;  %v6242_v16 = vpop.eup %6241 }
  0xba   : > { %v1000_v15 = vmul.f32 -1.8333334, %v995_v59  ;;  %v1076_v17 = vadd.f32 %v1072_v10, %v1068_v60  ;;  %6263 = vpow2.f32 %v880_v12  ;;  %v348_v3 = vmul.f32 0.6931472, %v6238_v6  ;;  %v6244_v23 = vpop.eup %6243  ;;  %v635_v42 = vld [vmem:[#allocation10 + $0x90] sm:$0xff]  ;;  %v731_v52 = vld [vmem:[#allocation8 + $0xe8] sm:$0xff] }
  0xbb   : > { %v964_v19 = vmul.f32 1.442695, %v958_v13  ;;  %6265 = vpow2.f32 %v922_v14  ;;  %v1042_v21 = vmul.f32 -1.8333334, %v1037_v63  ;;  %v456_v22 = vmul.f32 0.6931472, %v6240_v9 }
  0xbc   : > { %v1006_v20 = vmul.f32 1.442695, %v1000_v15  ;;  %1080 = vst.msk [vmem:[#allocation2 + $0x28] sm:$0xff] %vm9008_vm0, %v1076_v17  ;;  %v360_v27 = vmul.f32 -1.8333334, %v348_v3  ;;  %v677_v54 = vld [vmem:[#allocation10 + $0xb0] sm:$0xff]  ;;  %v693_v62 = vadd.f32 %v689_v45, %v6871_v4  ;;  %v735_v5 = vadd.f32 %v731_v52, %v6871_v4 }
  0xbd   : > { %6267 = vpow2.f32 %v964_v19  ;;  %v489_v28 = vmul.f32 0.6931472, %v6242_v16  ;;  %v6246_v29 = vpop.eup %6245  ;;  %v1048_v30 = vmul.f32 1.442695, %v1042_v21  ;;  %v462_v31 = vmul.f32 -1.8333334, %v456_v22 }
  0xbe   : > { %6269 = vpow2.f32 %v1006_v20  ;;  %v531_v32 = vmul.f32 0.6931472, %v6244_v23  ;;  %v6248_v34 = vpop.eup %6247  ;;  %v513_v35 = vmul.f32 %v6246_v29, %v509_v18  ;;  %v371_v36 = vmul.f32 1.442695, %v360_v27  ;;  %v773_v56 = vld [vmem:[#allocation8 + $0x108] sm:$0xff]  ;;  %v719_v2 = vld [vmem:[#allocation10 + $0xd0] sm:$0xff] }
  0xbf   : > { %v495_v37 = vmul.f32 -1.8333334, %v489_v28  ;;  %6271 = vlog2.f32 %v6949_v57  ;;  %v6250_v39 = vpop.eup %6249  ;;  %v555_v40 = vmul.f32 %v6248_v34, %v551_v25  ;;  %v467_v43 = vmul.f32 1.442695, %v462_v31  ;;  %v815_v0 = vld [vmem:[#allocation8 + $0x128] sm:$0xff]  ;;  %v410_v59 = vld [vmem:[#allocation7 + $0x58] sm:$0xff] }
  0xc0   : > { %6273 = vpow2.f32 %v1048_v30  ;;  %v537_v44 = vmul.f32 -1.8333334, %v531_v32  ;;  %v6252_v46 = vpop.eup %6251  ;;  %v517_v49 = vadd.f32 %v513_v35, %v475_v24  ;;  %v597_v50 = vmul.f32 %v6250_v39, %v593_v26  ;;  %v857_v58 = vld [vmem:[#allocation8 + $0x148] sm:$0xff]  ;;  %v761_v12 = vld [vmem:[#allocation10 + $0xf0] sm:$0xff]  ;;  %v445_v23 = vld [vmem:[#allocation8] sm:$0xff] }
  0xc1   : > { %6275 = vpow2.f32 %v371_v36  ;;  %v500_v51 = vmul.f32 1.442695, %v495_v37  ;;  %v651_v57 = vadd.f32 %v647_v38, %v6871_v4  ;;  %v639_v47 = vmul.f32 %v6252_v46, %v635_v42  ;;  %v899_v10 = vld [vmem:[#allocation8 + $0x168] sm:$0xff]  ;;  %v803_v20 = vld [vmem:[#allocation10 + $0x110] sm:$0xff]  ;;  %v478_v28 = vld [vmem:[#allocation8 + $0x20] sm:$0xff] }
  0xc2   : > { %v6254_v53 = vpop.eup %6253  ;;  %6277 = vpow2.f32 %v467_v43  ;;  %v542_v55 = vmul.f32 1.442695, %v537_v44  ;;  %v559_v61 = vadd.f32 %v555_v40, %v517_v49  ;;  %v777_v9 = vadd.f32 %v773_v56, %v6871_v4  ;;  %v941_v14 = vld [vmem:[#allocation8 + $0x188] sm:$0xff]  ;;  %v520_v29 = vld [vmem:[#allocation8 + $0x40] sm:$0xff]  ;;  %v845_v32 = vld [vmem:[#allocation10 + $0x130] sm:$0xff] }
  0xc3   : > { %v6256_v60 = vpop.eup %6255  ;;  %6279 = vpow2.f32 %v500_v51  ;;  %v1104_v1 = vld [vmem:[#allocation2 + $0x28] sm:$0xff]  ;;  %v681_v8 = vmul.f32 %v6254_v53, %v677_v54  ;;  %v819_v13 = vadd.f32 %v815_v0, %v6871_v4  ;;  %v861_v17 = vadd.f32 %v857_v58, %v6871_v4  ;;  %v562_v30 = vld [vmem:[#allocation8 + $0x60] sm:$0xff]  ;;  %v887_v40 = vld [vmem:[#allocation10 + $0x150] sm:$0xff] }
  0xc4   : > { %6281 = vpow2.f32 %v542_v55  ;;  %v6258_v6 = vpop.eup %6257  ;;  %5557 = vmatprep.subr.mxu0 %v1104_v1  ;;  %5585 = vmatprep.subr.mxu1 %v1104_v1  ;;  %v601_v7 = vadd.f32 %v597_v50, %v559_v61  ;;  %v723_v16 = vmul.f32 %v6256_v60, %v719_v2  ;;  %v983_v18 = vld [vmem:[#allocation8 + $0x1a8] sm:$0xff]  ;;  %v6972_v21 = vmul.f32 %v6889_v33, %v410_v59  ;;  %v604_v43 = vld [vmem:[#allocation8 + $0x80] sm:$0xff]  ;;  %v929_v54 = vld [vmem:[#allocation10 + $0x170] sm:$0xff] }
  0xc5   : > { %6283 = vlog2.f32 %v6955_v48  ;;  %v6260_v11 = vpop.eup %6259  ;;  %5558 = vmatpush3.msra.mxu0 %v1104_v1  ;;  %5586 = vmatpush3.msra.mxu1 %v1104_v1  ;;  %v1025_v19 = vld [vmem:[#allocation8 + $0x1c8] sm:$0xff]  ;;  %v326_v48 = vld [vmem:[#allocation7 + $0x90] sm:$0xff]  ;;  %v903_v22 = vadd.f32 %v899_v10, %v6871_v4  ;;  %v765_v26 = vmul.f32 %v6258_v6, %v761_v12  ;;  %v945_v27 = vadd.f32 %v941_v14, %v6871_v4  ;;  %v646_v44 = vld [vmem:[#allocation8 + $0xa0] sm:$0xff] }
  0xc6   : > { %6285 = vlog2.f32 %v651_v57  ;;  %v6262_v15 = vpop.eup %6261  ;;  %v643_v63 = vadd.f32 %v639_v47, %v601_v7  ;;  %v987_v34 = vadd.f32 %v983_v18, %v6871_v4  ;;  %v1029_v35 = vadd.f32 %v1025_v19, %v6871_v4  ;;  %v442_v55 = vld [vmem:[#allocation10 + $0x8] sm:$0xff]  ;;  %v688_v56 = vld [vmem:[#allocation8 + $0xc0] sm:$0xff]  ;;  %v393_v47 = vld [vmem:[#allocation7 + $0x18] sm:$0xff] }
  0xc7   : > { %6287 = vlog2.f32 %v693_v62  ;;  %v6264_v3 = vpop.eup %6263  ;;  %v335_v36 = vadd.f32 %v6871_v4, %v326_v48  ;;  %v807_v39 = vmul.f32 %v6260_v11, %v803_v20  ;;  %v449_v42 = vadd.f32 %v445_v23, %v6871_v4  ;;  %v508_v62 = vld [vmem:[#allocation10 + $0x28] sm:$0xff]  ;;  %v971_v58 = vld [vmem:[#allocation10 + $0x190] sm:$0xff] }
  0xc8   : > { %6289 = vlog2.f32 %v735_v5  ;;  %v6266_v24 = vpop.eup %6265  ;;  %v685_v25 = vadd.f32 %v681_v8, %v643_v63  ;;  %v482_v46 = vadd.f32 %v478_v28, %v6871_v4  ;;  %v524_v49 = vadd.f32 %v520_v29, %v6871_v4  ;;  %v1013_v6 = vld [vmem:[#allocation10 + $0x1b0] sm:$0xff]  ;;  %v550_v8 = vld [vmem:[#allocation10 + $0x48] sm:$0xff] }
  0xc9   : > { %6291 = vlog2.f32 %v777_v9  ;;  %v566_v50 = vadd.f32 %v562_v30, %v6871_v4  ;;  %v849_v53 = vmul.f32 %v6262_v15, %v845_v32  ;;  %v891_v61 = vmul.f32 %v6264_v3, %v887_v40  ;;  %v1055_v15 = vld [vmem:[#allocation10 + $0x1d0] sm:$0xff] }
  0xca   : > { %v6268_v31 = vpop.eup %6267  ;;  %6293 = vlog2.f32 %v819_v13  ;;  %v727_v38 = vadd.f32 %v723_v16, %v685_v25  ;;  %v608_v0 = vadd.f32 %v604_v43, %v6871_v4  ;;  %v650_v1 = vadd.f32 %v646_v44, %v6871_v4 }
  0xcb   : > { %v6270_v37 = vpop.eup %6269  ;;  %6295 = vlog2.f32 %v861_v17  ;;  %v933_v10 = vmul.f32 %v6266_v24, %v929_v54  ;;  %v6987_v12 = vadd.f32 %v688_v56, %v6871_v4  ;;  %v975_v19 = vmul.f32 %v6268_v31, %v971_v58 }
  0xcc   : > { %v6272_v45 = vpop.eup %6271  ;;  %6297 = vlog2.f32 %v903_v22  ;;  %v769_v52 = vadd.f32 %v765_v26, %v727_v38  ;;  %v1017_v48 = vmul.f32 %v6270_v37, %v1013_v6 }
  0xcd   : > { %v6274_v51 = vpop.eup %6273  ;;  %v573_v57 = vmul.f32 0.6931472, %v6272_v45  ;;  %6299 = vlog2.f32 %v945_v27 }
  0xce   : > { %v6276_v60 = vpop.eup %6275  ;;  %6301 = vlog2.f32 %v987_v34  ;;  %v811_v5 = vadd.f32 %v807_v39, %v769_v52  ;;  %v1059_v26 = vmul.f32 %v6274_v51, %v1055_v15 }
  0xcf   : > { %v6278_v2 = vpop.eup %6277  ;;  %v385_v7 = vmul.f32 %v6276_v60, %v6893_v41  ;;  %v579_v59 = vmul.f32 -1.8333334, %v573_v57  ;;  %6303 = vlog2.f32 %v1029_v35 }
  0xd0   : > { %v6280_v9 = vpop.eup %6279  ;;  %v474_v11 = vmul.f32 %v6278_v2, %v442_v55  ;;  %6305 = vlog2.f32 %v335_v36  ;;  %v853_v14 = vadd.f32 %v849_v53, %v811_v5 }
  0xd1   : > { %v6282_v13 = vpop.eup %6281  ;;  %v401_v63 = vmul.f32 %v393_v47, %v385_v7  ;;  %v512_v16 = vmul.f32 %v6280_v9, %v508_v62  ;;  %v584_v17 = vmul.f32 1.442695, %v579_v59  ;;  %6307 = vlog2.f32 %v449_v42  ;;  %v592_v7 = vld [vmem:[#allocation10 + $0x68] sm:$0xff] }
  0xd2   : > { %v6284_v18 = vpop.eup %6283  ;;  %v554_v3 = vmul.f32 %v6282_v13, %v550_v8  ;;  %v895_v22 = vadd.f32 %v891_v61, %v853_v14  ;;  %v1067_v61 = vld [vmem:[#allocation2 + $0x20] sm:$0xff] }
  0xd3   : > { %v6286_v20 = vpop.eup %6285  ;;  %v427_v23 = vadd.f32 %v6972_v21, %v401_v63  ;;  %v516_v24 = vadd.f32 %v512_v16, %v474_v11  ;;  %6309 = vpow2.f32 %v584_v17  ;;  %v615_v27 = vmul.f32 0.6931472, %v6284_v18  ;;  %v730_v16 = vld [vmem:[#allocation8 + $0xe0] sm:$0xff] }
  0xd4   : > { %v6288_v25 = vpop.eup %6287  ;;  %v657_v28 = vmul.f32 0.6931472, %v6286_v20  ;;  %6311 = vlog2.f32 %v482_v46  ;;  %v937_v30 = vadd.f32 %v933_v10, %v895_v22 }
  0xd5   : > { %v6290_v29 = vpop.eup %6289  ;;  %436 = vst.msk [vmem:[#allocation2 + $0x18] sm:$0xff] %vm9008_vm0, %v427_v23  ;;  %v6991_v32 = vadd.f32 %v554_v3, %v516_v24  ;;  %v699_v31 = vmul.f32 0.6931472, %v6288_v25  ;;  %6313 = vlog2.f32 %v524_v49  ;;  %v621_v35 = vmul.f32 -1.8333334, %v615_v27 }
  0xd6   : > { %v6292_v34 = vpop.eup %6291  ;;  %v663_v36 = vmul.f32 -1.8333334, %v657_v28  ;;  %v741_v37 = vmul.f32 0.6931472, %v6290_v29  ;;  %6315 = vlog2.f32 %v566_v50  ;;  %v979_v38 = vadd.f32 %v975_v19, %v937_v30  ;;  %v634_v29 = vld [vmem:[#allocation10 + $0x88] sm:$0xff] }
  0xd7   : > { %v6294_v21 = vpop.eup %6293  ;;  %v705_v39 = vmul.f32 -1.8333334, %v699_v31  ;;  %v783_v40 = vmul.f32 0.6931472, %v6292_v34  ;;  %6317 = vlog2.f32 %v608_v0  ;;  %v626_v43 = vmul.f32 1.442695, %v621_v35 }
  0xd8   : > { %v6296_v42 = vpop.eup %6295  ;;  %v668_v44 = vmul.f32 1.442695, %v663_v36  ;;  %v747_v45 = vmul.f32 -1.8333334, %v741_v37  ;;  %6319 = vlog2.f32 %v650_v1  ;;  %v1021_v51 = vadd.f32 %v1017_v48, %v979_v38  ;;  %v772_v35 = vld [vmem:[#allocation8 + $0x100] sm:$0xff] }
  0xd9   : > { %v6298_v46 = vpop.eup %6297  ;;  %v710_v52 = vmul.f32 1.442695, %v705_v39  ;;  %v789_v53 = vmul.f32 -1.8333334, %v783_v40  ;;  %v825_v49 = vmul.f32 0.6931472, %v6294_v21  ;;  %6321 = vpow2.f32 %v626_v43 }
  0xda   : > { %v6300_v54 = vpop.eup %6299  ;;  %v752_v55 = vmul.f32 1.442695, %v747_v45  ;;  %v867_v57 = vmul.f32 0.6931472, %v6296_v42  ;;  %v909_v50 = vmul.f32 0.6931472, %v6298_v46  ;;  %v1063_v60 = vadd.f32 %v1059_v26, %v1021_v51 }
  0xdb   : > { %v6302_v56 = vpop.eup %6301  ;;  %6323 = vpow2.f32 %v668_v44  ;;  %v794_v47 = vmul.f32 1.442695, %v789_v53  ;;  %v831_v62 = vmul.f32 -1.8333334, %v825_v49  ;;  %v951_v5 = vmul.f32 0.6931472, %v6300_v54 }
  0xdc   : > { %v6304_v0 = vpop.eup %6303  ;;  %6325 = vpow2.f32 %v710_v52  ;;  %v873_v2 = vmul.f32 -1.8333334, %v867_v57  ;;  %v915_v1 = vmul.f32 -1.8333334, %v909_v50  ;;  %v1071_v6 = vmul.f32 %v1063_v60, %v6893_v41  ;;  %v676_v45 = vld [vmem:[#allocation10 + $0xa8] sm:$0xff] }
  0xdd   : > { %v6306_v58 = vpop.eup %6305  ;;  %6327 = vpow2.f32 %v752_v55  ;;  %v836_v8 = vmul.f32 1.442695, %v831_v62  ;;  %v993_v59 = vmul.f32 0.6931472, %v6302_v56  ;;  %v957_v11 = vmul.f32 -1.8333334, %v951_v5 }
  0xde   : > { %6329 = vpow2.f32 %v794_v47  ;;  %v878_v9 = vmul.f32 1.442695, %v873_v2  ;;  %v920_v10 = vmul.f32 1.442695, %v915_v1  ;;  %v6308_v13 = vpop.eup %6307  ;;  %v1075_v14 = vadd.f32 %v1071_v6, %v1067_v61  ;;  %v718_v46 = vld [vmem:[#allocation10 + $0xc8] sm:$0xff]  ;;  %v814_v61 = vld [vmem:[#allocation8 + $0x120] sm:$0xff] }
  0xdf   : > { %6331 = vpow2.f32 %v836_v8  ;;  %v999_v15 = vmul.f32 -1.8333334, %v993_v59  ;;  %v1035_v63 = vmul.f32 0.6931472, %v6304_v0  ;;  %v962_v18 = vmul.f32 1.442695, %v957_v11 }
  0xe0   : > { %v6310_v17 = vpop.eup %6309  ;;  %6333 = vpow2.f32 %v878_v9  ;;  %v346_v19 = vmul.f32 0.6931472, %v6306_v58  ;;  %v454_v48 = vmul.f32 0.6931472, %v6308_v13  ;;  %1079 = vst.msk [vmem:[#allocation2 + $0x20] sm:$0xff] %vm9008_vm0, %v1075_v14  ;;  %v734_v34 = vadd.f32 %v730_v16, %v6871_v4  ;;  %v760_v62 = vld [vmem:[#allocation10 + $0xe8] sm:$0xff] }
  0xe1   : > { %v6312_v3 = vpop.eup %6311  ;;  %v596_v20 = vmul.f32 %v6310_v17, %v592_v7  ;;  %6335 = vpow2.f32 %v920_v10  ;;  %v1004_v22 = vmul.f32 1.442695, %v999_v15  ;;  %v1041_v23 = vmul.f32 -1.8333334, %v1035_v63  ;;  %v856_v1 = vld [vmem:[#allocation8 + $0x140] sm:$0xff]  ;;  %v802_v9 = vld [vmem:[#allocation10 + $0x108] sm:$0xff] }
  0xe2   : > { %v6314_v24 = vpop.eup %6313  ;;  %6337 = vpow2.f32 %v962_v18  ;;  %v359_v25 = vmul.f32 -1.8333334, %v346_v19  ;;  %v461_v26 = vmul.f32 -1.8333334, %v454_v48  ;;  %v487_v27 = vmul.f32 0.6931472, %v6312_v3 }
  0xe3   : > { %v6316_v28 = vpop.eup %6315  ;;  %6339 = vpow2.f32 %v1004_v22  ;;  %v1046_v30 = vmul.f32 1.442695, %v1041_v23  ;;  %v529_v31 = vmul.f32 0.6931472, %v6314_v24  ;;  %v600_v44 = vadd.f32 %v596_v20, %v6991_v32  ;;  %v898_v8 = vld [vmem:[#allocation8 + $0x160] sm:$0xff]  ;;  %v844_v18 = vld [vmem:[#allocation10 + $0x128] sm:$0xff] }
  0xe4   : > { %v6318_v36 = vpop.eup %6317  ;;  %v369_v37 = vmul.f32 1.442695, %v359_v25  ;;  %v465_v21 = vmul.f32 1.442695, %v461_v26  ;;  %v494_v38 = vmul.f32 -1.8333334, %v487_v27  ;;  %6341 = vlog2.f32 %v6987_v12 }
  0xe5   : > { %v6320_v39 = vpop.eup %6319  ;;  %6343 = vpow2.f32 %v1046_v30  ;;  %v536_v40 = vmul.f32 -1.8333334, %v529_v31  ;;  %v571_v42 = vmul.f32 0.6931472, %v6316_v28  ;;  %v613_v43 = vmul.f32 0.6931472, %v6318_v36 }
  0xe6   : > { %6345 = vpow2.f32 %v369_v37  ;;  %v498_v51 = vmul.f32 1.442695, %v494_v38  ;;  %v655_v52 = vmul.f32 0.6931472, %v6320_v39  ;;  %v6322_v53 = vpop.eup %6321  ;;  %v776_v60 = vadd.f32 %v772_v35, %v6871_v4  ;;  %v940_v11 = vld [vmem:[#allocation8 + $0x180] sm:$0xff]  ;;  %v325_v24 = vld [vmem:[#allocation7 + $0x88] sm:$0xff] }
  0xe7   : > { %6347 = vpow2.f32 %v465_v21  ;;  %v540_v49 = vmul.f32 1.442695, %v536_v40  ;;  %v578_v54 = vmul.f32 -1.8333334, %v571_v42  ;;  %v620_v55 = vmul.f32 -1.8333334, %v613_v43 }
  0xe8   : > { %v6324_v57 = vpop.eup %6323  ;;  %v1103_v50 = vld [vmem:[#allocation2 + $0x20] sm:$0xff]  ;;  %v638_v12 = vmul.f32 %v6322_v53, %v634_v29  ;;  %6349 = vpow2.f32 %v498_v51  ;;  %v662_v56 = vmul.f32 -1.8333334, %v655_v52  ;;  %v818_v10 = vadd.f32 %v814_v61, %v6871_v4  ;;  %v886_v26 = vld [vmem:[#allocation10 + $0x148] sm:$0xff]  ;;  %v392_v51 = vld [vmem:[#allocation7 + $0x10] sm:$0xff] }
  0xe9   : > { %v6326_v47 = vpop.eup %6325  ;;  %5559 = vmatprep.subr.mxu0 %v1103_v50  ;;  %5587 = vmatprep.subr.mxu1 %v1103_v50  ;;  %v680_v32 = vmul.f32 %v6324_v57, %v676_v45  ;;  %6351 = vpow2.f32 %v540_v49  ;;  %v582_v0 = vmul.f32 1.442695, %v578_v54  ;;  %v624_v2 = vmul.f32 1.442695, %v620_v55  ;;  %v982_v16 = vld [vmem:[#allocation8 + $0x1a0] sm:$0xff]  ;;  %v928_v31 = vld [vmem:[#allocation10 + $0x168] sm:$0xff] }
  0xea   : > { %v6328_v5 = vpop.eup %6327  ;;  %5560 = vmatpush3.msra.mxu0 %v1103_v50  ;;  %5588 = vmatpush3.msra.mxu1 %v1103_v50  ;;  %v642_v58 = vadd.f32 %v638_v12, %v600_v44  ;;  %v722_v6 = vmul.f32 %v6326_v47, %v718_v46  ;;  %v666_v7 = vmul.f32 1.442695, %v662_v56  ;;  %6353 = vlog2.f32 %v734_v34  ;;  %v1024_v48 = vld [vmem:[#allocation8 + $0x1c0] sm:$0xff]  ;;  %v409_v34 = vld [vmem:[#allocation7 + $0x50] sm:$0xff]  ;;  %v970_v42 = vld [vmem:[#allocation10 + $0x188] sm:$0xff] }
  0xeb   : > { %v6330_v59 = vpop.eup %6329  ;;  %6355 = vpow2.f32 %v582_v0  ;;  %v764_v15 = vmul.f32 %v6328_v5, %v760_v62  ;;  %v860_v63 = vadd.f32 %v856_v1, %v6871_v4  ;;  %v902_v19 = vadd.f32 %v898_v8, %v6871_v4  ;;  %v324_v36 = vld [vmem:[#allocation7 + $0x80] sm:$0xff]  ;;  %v1012_v57 = vld [vmem:[#allocation10 + $0x1a8] sm:$0xff] }
  0xec   : > { %v6332_v13 = vpop.eup %6331  ;;  %v684_v14 = vadd.f32 %v680_v32, %v642_v58  ;;  %6357 = vpow2.f32 %v624_v2  ;;  %v806_v22 = vmul.f32 %v6330_v59, %v802_v9  ;;  %v944_v23 = vadd.f32 %v940_v11, %v6871_v4  ;;  %v441_v43 = vld [vmem:[#allocation10] sm:$0xff] }
  0xed   : > { %v6334_v17 = vpop.eup %6333  ;;  %6359 = vpow2.f32 %v666_v7  ;;  %v986_v27 = vadd.f32 %v982_v16, %v6871_v4  ;;  %v848_v30 = vmul.f32 %v6332_v13, %v844_v18  ;;  %v1028_v35 = vadd.f32 %v1024_v48, %v6871_v4  ;;  %v507_v53 = vld [vmem:[#allocation10 + $0x20] sm:$0xff] }
  0xee   : > { %v6336_v3 = vpop.eup %6335  ;;  %v726_v20 = vadd.f32 %v722_v6, %v684_v14  ;;  %6361 = vlog2.f32 %v776_v60  ;;  %v334_v21 = vadd.f32 %v6871_v4, %v325_v24  ;;  %v890_v40 = vmul.f32 %v6334_v17, %v886_v26  ;;  %v549_v12 = vld [vmem:[#allocation10 + $0x40] sm:$0xff]  ;;  %v1054_v6 = vld [vmem:[#allocation10 + $0x1c8] sm:$0xff] }
  0xef   : > { %v6338_v25 = vpop.eup %6337  ;;  %6363 = vlog2.f32 %v818_v10  ;;  %v932_v46 = vmul.f32 %v6336_v3, %v928_v31  ;;  %v418_v52 = vmul.f32 %v6889_v33, %v409_v34  ;;  %v333_v49 = vadd.f32 %v6871_v4, %v324_v36  ;;  %v591_v1 = vld [vmem:[#allocation10 + $0x60] sm:$0xff]  ;;  %v1066_v36 = vld [vmem:[#allocation2 + $0x18] sm:$0xff] }
  0xf0   : > { %v6340_v28 = vpop.eup %6339  ;;  %v768_v29 = vadd.f32 %v764_v15, %v726_v20  ;;  %6365 = vlog2.f32 %v860_v63  ;;  %v974_v61 = vmul.f32 %v6338_v25, %v970_v42  ;;  %v633_v18 = vld [vmem:[#allocation10 + $0x80] sm:$0xff] }
  0xf1   : > { %v6342_v37 = vpop.eup %6341  ;;  %6367 = vlog2.f32 %v902_v19  ;;  %v1016_v4 = vmul.f32 %v6340_v28, %v1012_v57  ;;  %v675_v26 = vld [vmem:[#allocation10 + $0xa0] sm:$0xff] }
  0xf2   : > { %v6344_v38 = vpop.eup %6343  ;;  %v810_v39 = vadd.f32 %v806_v22, %v768_v29  ;;  %v697_v44 = vmul.f32 0.6931472, %v6342_v37  ;;  %6369 = vlog2.f32 %v944_v23 }
  0xf3   : > { %v6346_v45 = vpop.eup %6345  ;;  %6371 = vlog2.f32 %v986_v27  ;;  %v1058_v16 = vmul.f32 %v6344_v38, %v1054_v6 }
  0xf4   : > { %v6348_v54 = vpop.eup %6347  ;;  %v852_v55 = vadd.f32 %v848_v30, %v810_v39  ;;  %v384_v50 = vmul.f32 %v6346_v45, %v6893_v41  ;;  %v704_v56 = vmul.f32 -1.8333334, %v697_v44  ;;  %6373 = vlog2.f32 %v1028_v35 }
  0xf5   : > { %v6350_v60 = vpop.eup %6349  ;;  %v473_v47 = vmul.f32 %v6348_v54, %v441_v43  ;;  %6375 = vlog2.f32 %v334_v21 }
  0xf6   : > { %v6352_v32 = vpop.eup %6351  ;;  %v894_v62 = vadd.f32 %v890_v40, %v852_v55  ;;  %v400_v0 = vmul.f32 %v392_v51, %v384_v50  ;;  %v511_v2 = vmul.f32 %v6350_v60, %v507_v53  ;;  %v708_v5 = vmul.f32 1.442695, %v704_v56  ;;  %v717_v60 = vld [vmem:[#allocation10 + $0xc0] sm:$0xff] }
  0xf7   : > { %v6354_v58 = vpop.eup %6353  ;;  %v553_v7 = vmul.f32 %v6352_v32, %v549_v12  ;;  %6377 = vlog2.f32 %v333_v49 }
  0xf8   : > { %v6356_v8 = vpop.eup %6355  ;;  %v936_v59 = vadd.f32 %v932_v46, %v894_v62  ;;  %v426_v9 = vadd.f32 %v418_v52, %v400_v0  ;;  %v515_v10 = vadd.f32 %v511_v2, %v473_v47  ;;  %6379 = vpow2.f32 %v708_v5 }
  0xf9   : > { %v6358_v11 = vpop.eup %6357  ;;  %v595_v13 = vmul.f32 %v6356_v8, %v591_v1  ;;  %v739_v14 = vmul.f32 0.6931472, %v6354_v58 }
  0xfa   : > { %v6360_v15 = vpop.eup %6359  ;;  %v978_v63 = vadd.f32 %v974_v61, %v936_v59  ;;  %435 = vst.msk [vmem:[#allocation2 + $0x10] sm:$0xff] %vm9008_vm0, %v426_v9  ;;  %v557_v17 = vadd.f32 %v553_v7, %v515_v10  ;;  %v637_v25 = vmul.f32 %v6358_v11, %v633_v18  ;;  %v759_v9 = vld [vmem:[#allocation10 + $0xe0] sm:$0xff] }
  0xfb   : > { %v6362_v19 = vpop.eup %6361  ;;  %v746_v48 = vmul.f32 -1.8333334, %v739_v14  ;;  %v679_v40 = vmul.f32 %v6360_v15, %v675_v26  ;;  %v801_v15 = vld [vmem:[#allocation10 + $0x100] sm:$0xff] }
  0xfc   : > { %v6364_v3 = vpop.eup %6363  ;;  %v1020_v20 = vadd.f32 %v1016_v4, %v978_v63  ;;  %v781_v22 = vmul.f32 0.6931472, %v6362_v19  ;;  %v599_v24 = vadd.f32 %v595_v13, %v557_v17  ;;  %v843_v63 = vld [vmem:[#allocation10 + $0x120] sm:$0xff] }
  0xfd   : > { %v6366_v23 = vpop.eup %6365  ;;  %v750_v27 = vmul.f32 1.442695, %v746_v48  ;;  %v823_v28 = vmul.f32 0.6931472, %v6364_v3  ;;  %v885_v18 = vld [vmem:[#allocation10 + $0x140] sm:$0xff] }
  0xfe   : > { %v6368_v29 = vpop.eup %6367  ;;  %v1062_v30 = vadd.f32 %v1058_v16, %v1020_v20  ;;  %v788_v31 = vmul.f32 -1.8333334, %v781_v22  ;;  %v865_v34 = vmul.f32 0.6931472, %v6366_v23  ;;  %v641_v45 = vadd.f32 %v637_v25, %v599_v24  ;;  %v927_v22 = vld [vmem:[#allocation10 + $0x160] sm:$0xff] }
  0xff   : > { %v6370_v35 = vpop.eup %6369  ;;  %6381 = vpow2.f32 %v750_v27  ;;  %v830_v37 = vmul.f32 -1.8333334, %v823_v28  ;;  %v907_v21 = vmul.f32 0.6931472, %v6368_v29  ;;  %v969_v26 = vld [vmem:[#allocation10 + $0x180] sm:$0xff] }
 0x100   : > { %v6372_v38 = vpop.eup %6371  ;;  %v1070_v39 = vmul.f32 %v1062_v30, %v6893_v41  ;;  %v792_v42 = vmul.f32 1.442695, %v788_v31  ;;  %v872_v43 = vmul.f32 -1.8333334, %v865_v34  ;;  %v949_v52 = vmul.f32 0.6931472, %v6370_v35 }
 0x101   : > { %v6374_v44 = vpop.eup %6373  ;;  %v834_v46 = vmul.f32 1.442695, %v830_v37  ;;  %v914_v51 = vmul.f32 -1.8333334, %v907_v21  ;;  %v991_v55 = vmul.f32 0.6931472, %v6372_v38  ;;  %v683_v1 = vadd.f32 %v679_v40, %v641_v45 }
 0x102   : > { %v6376_v53 = vpop.eup %6375  ;;  %v1074_v49 = vadd.f32 %v1070_v39, %v1066_v36  ;;  %6383 = vpow2.f32 %v792_v42  ;;  %v876_v54 = vmul.f32 1.442695, %v872_v43  ;;  %v956_v50 = vmul.f32 -1.8333334, %v949_v52  ;;  %v1011_v31 = vld [vmem:[#allocation10 + $0x1a0] sm:$0xff]  ;;  %v408_v34 = vld [vmem:[#allocation7 + $0x48] sm:$0xff] }
 0x103   : > { %6385 = vpow2.f32 %v834_v46  ;;  %v918_v57 = vmul.f32 1.442695, %v914_v51  ;;  %v1033_v12 = vmul.f32 0.6931472, %v6374_v44  ;;  %v998_v61 = vmul.f32 -1.8333334, %v991_v55 }
 0x104   : > { %v6378_v56 = vpop.eup %6377  ;;  %1078 = vst.msk [vmem:[#allocation2 + $0x18] sm:$0xff] %vm9008_vm0, %v1074_v49  ;;  %6387 = vpow2.f32 %v876_v54  ;;  %v344_v47 = vmul.f32 0.6931472, %v6376_v53  ;;  %v960_v62 = vmul.f32 1.442695, %v956_v50  ;;  %v407_v21 = vld [vmem:[#allocation7 + $0x40] sm:$0xff]  ;;  %v417_v46 = vmul.f32 %v6889_v33, %v408_v34 }
 0x105   : > { %v6380_v32 = vpop.eup %6379  ;;  %6389 = vpow2.f32 %v918_v57  ;;  %v1040_v0 = vmul.f32 -1.8333334, %v1033_v12  ;;  %v342_v2 = vmul.f32 0.6931472, %v6378_v56  ;;  %v1002_v5 = vmul.f32 1.442695, %v998_v61 }
 0x106   : > { %v358_v58 = vmul.f32 -1.8333334, %v344_v47  ;;  %v721_v4 = vmul.f32 %v6380_v32, %v717_v60  ;;  %6391 = vpow2.f32 %v960_v62  ;;  %v1053_v39 = vld [vmem:[#allocation10 + $0x1c0] sm:$0xff]  ;;  %v391_v40 = vld [vmem:[#allocation7 + $0x8] sm:$0xff]  ;;  %v416_v53 = vmul.f32 %v6889_v33, %v407_v21  ;;  %v1065_v61 = vld [vmem:[#allocation2 + $0x10] sm:$0xff] }
 0x107   : > { %v1044_v6 = vmul.f32 1.442695, %v1040_v0  ;;  %v357_v7 = vmul.f32 -1.8333334, %v342_v2  ;;  %6393 = vpow2.f32 %v1002_v5  ;;  %v390_v51 = vld [vmem:[#allocation7] sm:$0xff]  ;;  %v7020_v2 = vld [vmem:[#allocation7 + $0x248] sm:$0xff] }
 0x108   : > { %v367_v8 = vmul.f32 1.442695, %v358_v58  ;;  %v725_v11 = vadd.f32 %v721_v4, %v683_v1  ;;  %v7022_v1 = vld [vmem:[#allocation7 + $0x288] sm:$0xff]  ;;  %v7026_v5 = vld [vmem:[#allocation7 + $0x290] sm:$0xff]  ;;  %v7032_v58 = vld [vmem:[#allocation7 + $0x258] sm:$0xff] }
 0x109   : > { %6395 = vpow2.f32 %v1044_v6  ;;  %v365_v59 = vmul.f32 1.442695, %v357_v7  ;;  %v7038_v4 = vld [vmem:[#allocation7 + $0x298] sm:$0xff] }
 0x10a   : > { %6397 = vpow2.f32 %v367_v8  ;;  %v7040_v6 = vld [vmem:[#allocation7 + $0x278] sm:$0xff]  ;;  %v7044_v8 = vld [vmem:[#allocation7 + $0x260] sm:$0xff] }
 0x10b   : > { %v1102_v10 = vld [vmem:[#allocation2 + $0x18] sm:$0xff]  ;;  %6399 = vpow2.f32 %v365_v59  ;;  %v7046_v59 = vld [vmem:[#allocation7 + $0x2a0] sm:$0xff] }
 0x10c   : > { %v6382_v13 = vpop.eup %6381  ;;  %5561 = vmatprep.subr.mxu0 %v1102_v10  ;;  %5589 = vmatprep.subr.mxu1 %v1102_v10  ;;  %v7042_v7 = vld [vmem:[#allocation7 + $0x2b8] sm:$0xff] }
 0x10d   : > { %5562 = vmatpush3.msra.mxu0 %v1102_v10  ;;  %5590 = vmatpush3.msra.mxu1 %v1102_v10  ;;  %v763_v14 = vmul.f32 %v6382_v13, %v759_v9  ;;  %v7056_v9 = vld [vmem:[#allocation7 + $0x268] sm:$0xff]  ;;  %v1097_v13 = vld [vmem:[#allocation7 + $0x2b0] sm:$0xff] }
 0x10e   : > { %v7062_v10 = vld [vmem:[#allocation7 + $0x2a8] sm:$0xff] }
 0x10f   : > { %v6384_v16 = vpop.eup %6383  ;;  %v767_v17 = vadd.f32 %v763_v14, %v725_v11  ;;  %v1088_v11 = vld [vmem:[#allocation7 + $0x270] sm:$0xff]  ;;  %v7094_v14 = vld [vmem:[#allocation7 + $0x240] sm:$0xff] }
 0x110   : > { %v6386_v19 = vpop.eup %6385  ;;  %v805_v48 = vmul.f32 %v6384_v16, %v801_v15  ;;  %v7097_v15 = vld [vmem:[#allocation7 + $0x280] sm:$0xff] }
 0x111   : > { %v6388_v3 = vpop.eup %6387  ;;  %v847_v20 = vmul.f32 %v6386_v19, %v843_v63 }
 0x112   : > { %v6390_v23 = vpop.eup %6389  ;;  %v809_v24 = vadd.f32 %v805_v48, %v767_v17  ;;  %v889_v25 = vmul.f32 %v6388_v3, %v885_v18 }
 0x113   : > { %v6392_v27 = vpop.eup %6391  ;;  %v931_v29 = vmul.f32 %v6390_v23, %v927_v22 }
 0x114   : > { %v851_v28 = vadd.f32 %v847_v20, %v809_v24  ;;  %v6394_v30 = vpop.eup %6393  ;;  %v973_v37 = vmul.f32 %v6392_v27, %v969_v26 }
 0x115   : > { %v1015_v44 = vmul.f32 %v6394_v30, %v1011_v31 }
 0x116   : > { %v6396_v35 = vpop.eup %6395  ;;  %v893_v36 = vadd.f32 %v889_v25, %v851_v28 }
 0x117   : > { %v6398_v38 = vpop.eup %6397  ;;  %v1057_v54 = vmul.f32 %v6396_v35, %v1053_v39 }
 0x118   : > { %v6400_v42 = vpop.eup %6399  ;;  %v935_v43 = vadd.f32 %v931_v29, %v893_v36  ;;  %v383_v45 = vmul.f32 %v6398_v38, %v6893_v41 }
 0x119   : > { %v382_v52 = vmul.f32 %v6400_v42, %v6893_v41 }
 0x11a   : > { %v977_v49 = vadd.f32 %v973_v37, %v935_v43  ;;  %v399_v55 = vmul.f32 %v391_v40, %v383_v45 }
 0x11b   : > { %v398_v57 = vmul.f32 %v390_v51, %v382_v52 }
 0x11c   : > { %v1019_v50 = vadd.f32 %v1015_v44, %v977_v49  ;;  %v425_v12 = vadd.f32 %v417_v46, %v399_v55 }
 0x11d   : > { %v424_v56 = vadd.f32 %v416_v53, %v398_v57 }
 0x11e   : > { %v1061_v60 = vadd.f32 %v1057_v54, %v1019_v50  ;;  %434 = vst.msk [vmem:[#allocation2 + $0x8] sm:$0xff] %vm9008_vm0, %v425_v12 }
 0x11f   : > { %433 = vst.msk [vmem:[#allocation2] sm:$0xff] %vm9008_vm0, %v424_v56 }
 0x120   : > { %v1069_v47 = vmul.f32 %v1061_v60, %v6893_v41  ;;  %v7024_v41 = vld [vmem:[#allocation7 + $0x250] sm:$0xff] }
 0x122   : > { %v1073_v32 = vadd.f32 %v1069_v47, %v1065_v61 }
 0x124   : > { %1077 = vst.msk [vmem:[#allocation2 + $0x10] sm:$0xff] %vm9008_vm0, %v1073_v32 }
 0x125   : > { %v1100_v33 = vld [vmem:[#allocation2 + $0x8] sm:$0xff] }
 0x126   : > { %v1099_v0 = vld [vmem:[#allocation2] sm:$0xff] }
 0x12b   : > { %v1101_v62 = vld [vmem:[#allocation2 + $0x10] sm:$0xff] }
 0x12c   : > { %5563 = vmatprep.subr.mxu0 %v1101_v62  ;;  %5591 = vmatprep.subr.mxu1 %v1101_v62 }
 0x12d   : > { %5564 = vmatpush3.msra.mxu0 %v1101_v62  ;;  %5592 = vmatpush3.msra.mxu1 %v1101_v62 }
 0x12e   : > { %5565 = vmatprep.subr.mxu0 %v1100_v33  ;;  %5593 = vmatprep.subr.mxu1 %v1100_v33 }
 0x12f   : > { %5566 = vmatpush3.msra.mxu0 %v1100_v33  ;;  %5594 = vmatpush3.msra.mxu1 %v1100_v33 }
 0x130   : > { %5567 = vmatprep.subr.mxu0 %v1099_v0  ;;  %5595 = vmatprep.subr.mxu1 %v1099_v0 }
 0x131   : > { %5568 = vmatpush3.msra.mxu0 %v1099_v0  ;;  %5596 = vmatpush3.msra.mxu1 %v1099_v0 }
 0x132   : > { %5570 = vmatmul.mubr.msk.f32.vlgmr.msra.gmra.mxu0 %vm9008_vm0, %v7020_v2  ;;  %5598 = vmatmul.mubr.msk.f32.vlgmr.msra.gmra.mxu1 %vm9008_vm0, %v7022_v1 }
 0x133   : > { %5572 = vmatprep.mubr.msk.f32.mxu0 %vm9008_vm0, %v7024_v41  ;;  %5600 = vmatprep.mubr.msk.f32.mxu1 %vm9008_vm0, %v7026_v5 }
 0x134   : > { %5609 = vmatprep.subr.mxu0 %v7040_v6  ;;  %5637 = vmatprep.subr.mxu1 %v7042_v7 }
 0x135   : > { %5610 = vmatpush3.msra.mxu0 %v7040_v6  ;;  %5638 = vmatpush3.msra.mxu1 %v7042_v7 }
 0x136   : > { %5573 = vmatmul.mubr.msk.f32.gmra.mxu0 %vm9008_vm0, %v7032_v58  ;;  %5601 = vmatmul.mubr.msk.f32.gmra.mxu1 %vm9008_vm0, %v7038_v4 }
 0x137   : > { %5575 = vmatprep.mubr.msk.f32.mxu0 %vm9008_vm0, %v7044_v8  ;;  %5603 = vmatprep.mubr.msk.f32.mxu1 %vm9008_vm0, %v7046_v59 }
 0x138   : > { %5611 = vmatprep.subr.mxu0 %v1088_v11  ;;  %5639 = vmatprep.subr.mxu1 %v1097_v13 }
 0x139   : > { %5612 = vmatpush3.msra.mxu0 %v1088_v11  ;;  %5640 = vmatpush3.msra.mxu1 %v1097_v13 }
 0x13a   : > { %5576 = vmatmul.mubr.msk.f32.gmra.mxu0 %vm9008_vm0, %v7056_v9  ;;  %5604 = vmatmul.mubr.msk.f32.gmra.mxu1 %vm9008_vm0, %v7062_v10 }
 0x13b   : > { %5578 = vmatprep.mubr.msk.f32.mxu0 %vm9008_vm0, %v1088_v11  ;;  %5606 = vmatprep.mubr.msk.f32.mxu1 %vm9008_vm0, %v1097_v13 }
 0x13c   : > { %5613 = vmatprep.subr.mxu0 %v7056_v9  ;;  %5641 = vmatprep.subr.mxu1 %v7062_v10 }
 0x13d   : > { %5614 = vmatpush3.msra.mxu0 %v7056_v9  ;;  %5642 = vmatpush3.msra.mxu1 %v7062_v10 }
 0x13e   : > { %5579 = vmatmul.mubr.msk.f32.gmra.mxu0 %vm9008_vm0, %v7040_v6  ;;  %5607 = vmatmul.mubr.msk.f32.gmra.mxu1 %vm9008_vm0, %v7042_v7 }
 0x13f   : > { %5615 = vmatprep.subr.mxu0 %v7044_v8  ;;  %5643 = vmatprep.subr.mxu1 %v7046_v59 }
 0x140   : > { %5616 = vmatpush3.msra.mxu0 %v7044_v8  ;;  %5644 = vmatpush3.msra.mxu1 %v7046_v59 }
 0x141   : > { %5617 = vmatprep.subr.mxu0 %v7032_v58  ;;  %5645 = vmatprep.subr.mxu1 %v7038_v4 }
 0x142   : > { %5618 = vmatpush3.msra.mxu0 %v7032_v58  ;;  %5646 = vmatpush3.msra.mxu1 %v7038_v4 }
 0x143   : > { %5619 = vmatprep.subr.mxu0 %v7024_v41  ;;  %5647 = vmatprep.subr.mxu1 %v7026_v5 }
 0x144   : > { %5620 = vmatpush3.msra.mxu0 %v7024_v41  ;;  %5648 = vmatpush3.msra.mxu1 %v7026_v5 }
 0x145   : > { %5621 = vmatprep.subr.mxu0 %v7020_v2  ;;  %5649 = vmatprep.subr.mxu1 %v7022_v1 }
 0x146   : > { %5622 = vmatpush3.msra.mxu0 %v7020_v2  ;;  %5650 = vmatpush3.msra.mxu1 %v7022_v1 }
 0x147   : > { %5623 = vmatprep.subr.mxu0 %v7094_v14  ;;  %5651 = vmatprep.subr.mxu1 %v7097_v15 }
 0x148   : > { %5624 = vmatpush3.msra.mxu0 %v7094_v14  ;;  %5652 = vmatpush3.msra.mxu1 %v7097_v15 }
 0x149   : > { %5665 = vmatprep.subr.mxu0 %v7040_v6  ;;  %5693 = vmatprep.subr.mxu1 %v7042_v7 }
 0x1f2   : > { %v7104_v63 = vpop.f32.mrf.mxu0  ;;  %v7106_v16 = vpop.f32.mrf.mxu1 }
 0x1f4   : > { %v1197_v17 = vpop.f32.mrf.mxu0  ;;  %v1326_v18 = vpop.f32.mrf.mxu1 }
 0x1f5   : > { %5625 = vmatprep.mubr.msk.f32.mxu0 %vm9008_vm0, %v1197_v17  ;;  %5653 = vmatprep.mubr.msk.f32.mxu1 %vm9008_vm0, %v1326_v18 }
 0x1f6   : > { %v7110_v19 = vpop.f32.mrf.mxu0  ;;  %v5602_v48 = vpop.f32.mrf.mxu1  ;;  %5626 = vmatmul.mubr.msk.f32.vlgmr.msra.gmra.mxu0 %vm9008_vm0, %v7104_v63  ;;  %5654 = vmatmul.mubr.msk.f32.vlgmr.msra.gmra.mxu1 %vm9008_vm0, %v7106_v16 }
 0x1f7   : > { %5666 = vmatpush3.msra.mxu0 %v7040_v6  ;;  %5694 = vmatpush3.msra.mxu1 %v7042_v7 }
 0x1f8   : > { %v1207_v3 = vpop.f32.mrf.mxu0  ;;  %v1336_v20 = vpop.f32.mrf.mxu1  ;;  %5667 = vmatprep.subr.mxu0 %v1088_v11  ;;  %5695 = vmatprep.subr.mxu1 %v1097_v13 }
 0x1f9   : > { %5628 = vmatprep.mubr.msk.f32.mxu0 %vm9008_vm0, %v1207_v3  ;;  %5656 = vmatprep.mubr.msk.f32.mxu1 %vm9008_vm0, %v1336_v20 }
 0x1fa   : > { %5668 = vmatpush3.msra.mxu0 %v1088_v11  ;;  %5696 = vmatpush3.msra.mxu1 %v1097_v13  ;;  %v5577_v22 = vpop.f32.mrf.mxu0  ;;  %v5605_v23 = vpop.f32.mrf.mxu1 }
 0x1fb   : > { %5629 = vmatmul.mubr.msk.f32.gmra.mxu0 %vm9008_vm0, %v7110_v19  ;;  %5657 = vmatmul.mubr.msk.f32.gmra.mxu1 %vm9008_vm0, %v5602_v48 }
 0x1fc   : > { %5669 = vmatprep.subr.mxu0 %v7056_v9  ;;  %5697 = vmatprep.subr.mxu1 %v7062_v10  ;;  %v1217_v24 = vpop.f32.mrf.mxu0  ;;  %v1346_v25 = vpop.f32.mrf.mxu1 }
 0x1fd   : > { %5670 = vmatpush3.msra.mxu0 %v7056_v9  ;;  %5698 = vmatpush3.msra.mxu1 %v7062_v10 }
 0x1fe   : > { %5671 = vmatprep.subr.mxu0 %v7044_v8  ;;  %5699 = vmatprep.subr.mxu1 %v7046_v59  ;;  %v5580_v26 = vpop.f32.mrf.mxu0  ;;  %v5608_v27 = vpop.f32.mrf.mxu1 }
 0x1ff   : > { %5631 = vmatprep.mubr.msk.f32.mxu0 %vm9008_vm0, %v1217_v24  ;;  %5659 = vmatprep.mubr.msk.f32.mxu1 %vm9008_vm0, %v1346_v25 }
 0x200   : > { %5672 = vmatpush3.msra.mxu0 %v7044_v8  ;;  %5700 = vmatpush3.msra.mxu1 %v7046_v59  ;;  %v1227_v28 = vpop.f32.mrf.mxu0  ;;  %v1356_v29 = vpop.f32.mrf.mxu1 }
 0x201   : > { %5632 = vmatmul.mubr.msk.f32.gmra.mxu0 %vm9008_vm0, %v5577_v22  ;;  %5660 = vmatmul.mubr.msk.f32.gmra.mxu1 %vm9008_vm0, %v5605_v23 }
 0x202   : > { %5673 = vmatprep.subr.mxu0 %v7032_v58  ;;  %5701 = vmatprep.subr.mxu1 %v7038_v4 }
 0x203   : > { %5674 = vmatpush3.msra.mxu0 %v7032_v58  ;;  %5702 = vmatpush3.msra.mxu1 %v7038_v4 }
 0x204   : > { %5675 = vmatprep.subr.mxu0 %v7024_v41  ;;  %5703 = vmatprep.subr.mxu1 %v7026_v5 }
 0x205   : > { %5634 = vmatprep.mubr.msk.f32.mxu0 %vm9008_vm0, %v1227_v28  ;;  %5662 = vmatprep.mubr.msk.f32.mxu1 %vm9008_vm0, %v1356_v29 }
 0x206   : > { %5676 = vmatpush3.msra.mxu0 %v7024_v41  ;;  %5704 = vmatpush3.msra.mxu1 %v7026_v5 }
 0x207   : > { %5635 = vmatmul.mubr.msk.f32.gmra.mxu0 %vm9008_vm0, %v5580_v26  ;;  %5663 = vmatmul.mubr.msk.f32.gmra.mxu1 %vm9008_vm0, %v5608_v27 }
 0x208   : > { %5677 = vmatprep.subr.mxu0 %v7020_v2  ;;  %5705 = vmatprep.subr.mxu1 %v7022_v1 }
 0x209   : > { %5678 = vmatpush3.msra.mxu0 %v7020_v2  ;;  %5681 = vmatprep.mubr.msk.f32.mxu0 %vm9008_vm0, %v1326_v18 }
 0x20a   : > { %5706 = vmatpush3.msra.mxu1 %v7022_v1  ;;  %5709 = vmatprep.mubr.msk.f32.mxu1 %vm9008_vm0, %v1197_v17 }
 0x20b   : > { %5679 = vmatprep.subr.mxu0 %v7094_v14  ;;  %5707 = vmatprep.subr.mxu1 %v7097_v15 }
 0x20c   : > { %5680 = vmatpush3.msra.mxu0 %v7094_v14  ;;  %5708 = vmatpush3.msra.mxu1 %v7097_v15 }
 0x20d   : > { %5682 = vmatmul.mubr.msk.f32.vlgmr.msra.gmra.mxu0 %vm9008_vm0, %v7106_v16  ;;  %5710 = vmatmul.mubr.msk.f32.vlgmr.msra.gmra.mxu1 %vm9008_vm0, %v7104_v63 }
 0x20e   : > { %5684 = vmatprep.mubr.msk.f32.mxu0 %vm9008_vm0, %v1336_v20  ;;  %5712 = vmatprep.mubr.msk.f32.mxu1 %vm9008_vm0, %v1207_v3 }
 0x211   : > { %5685 = vmatmul.mubr.msk.f32.gmra.mxu0 %vm9008_vm0, %v5602_v48  ;;  %5713 = vmatmul.mubr.msk.f32.gmra.mxu1 %vm9008_vm0, %v7110_v19 }
 0x212   : > { %5687 = vmatprep.mubr.msk.f32.mxu0 %vm9008_vm0, %v1346_v25  ;;  %5715 = vmatprep.mubr.msk.f32.mxu1 %vm9008_vm0, %v1217_v24 }
 0x215   : > { %5688 = vmatmul.mubr.msk.f32.gmra.mxu0 %vm9008_vm0, %v5605_v23  ;;  %5716 = vmatmul.mubr.msk.f32.gmra.mxu1 %vm9008_vm0, %v5577_v22 }
 0x216   : > { %5690 = vmatprep.mubr.msk.f32.mxu0 %vm9008_vm0, %v1356_v29  ;;  %5718 = vmatprep.mubr.msk.f32.mxu1 %vm9008_vm0, %v1227_v28 }
 0x219   : > { %5691 = vmatmul.mubr.msk.f32.gmra.mxu0 %vm9008_vm0, %v5608_v27  ;;  %5719 = vmatmul.mubr.msk.f32.gmra.mxu1 %vm9008_vm0, %v5580_v26 }
 0x21a   : > { %5737 = vmatprep.mubr.msk.f32.mxu0 %vm9008_vm0, %v7097_v15  ;;  %5765 = vmatprep.mubr.msk.f32.mxu1 %vm9008_vm0, %v7094_v14 }
 0x2b6   : > { %v5627_v30 = vpop.f32.mrf.mxu0  ;;  %v5655_v31 = vpop.f32.mrf.mxu1 }
 0x2b7   : > { %v7206_v15 = vsub.f32 %v5627_v30, %v5655_v31 }
 0x2b8   : > { %v1455_v34 = vpop.f32.mrf.mxu0  ;;  %v1584_v35 = vpop.f32.mrf.mxu1 }
 0x2b9   : > { %v7192_v7 = vsub.f32 %v1455_v34, %v1584_v35  ;;  %9030 = vst [vmem:[#allocation24_spill] sm:$0xff] %v7206_v15  ;;  %v1842_v29 = vmul.f32 %v7206_v15, %v7206_v15 }
 0x2bb   : > { %v5630_v36 = vpop.f32.mrf.mxu0  ;;  %v5658_v37 = vpop.f32.mrf.mxu1  ;;  %9027 = vst [vmem:[#allocation21_spill] sm:$0xff] %v7192_v7  ;;  %v1841_v20 = vmul.f32 %v7192_v7, %v7192_v7 }
 0x2bc   : > { %v7208_v63 = vsub.f32 %v5630_v36, %v5658_v37 }
 0x2bd   : > { %v1465_v21 = vpop.f32.mrf.mxu0  ;;  %v1594_v38 = vpop.f32.mrf.mxu1 }
 0x2be   : > { %v7194_v8 = vsub.f32 %v1465_v21, %v1594_v38  ;;  %9031 = vst [vmem:[#allocation25_spill] sm:$0xff] %v7208_v63  ;;  %v1844_v31 = vmul.f32 %v7208_v63, %v7208_v63 }
 0x2c0   : > { %9028 = vst [vmem:[#allocation22_spill] sm:$0xff] %v7194_v8  ;;  %v1843_v22 = vmul.f32 %v7194_v8, %v7194_v8 }
 0x2c1   : > { %v5633_v39 = vpop.f32.mrf.mxu0  ;;  %v5661_v40 = vpop.f32.mrf.mxu1 }
 0x2c2   : > { %v7196_v59 = vsub.f32 %v5633_v39, %v5661_v40 }
 0x2c3   : > { %v1475_v42 = vpop.f32.mrf.mxu0  ;;  %v1604_v43 = vpop.f32.mrf.mxu1 }
 0x2c4   : > { %v7182_v41 = vsub.f32 %v1475_v42, %v1604_v43  ;;  %9029 = vst [vmem:[#allocation23_spill] sm:$0xff] %v7196_v59  ;;  %v1846_v23 = vmul.f32 %v7196_v59, %v7196_v59 }
 0x2c6   : > { %9025 = vst [vmem:[#allocation19_spill] sm:$0xff] %v7182_v41  ;;  %v1845_v16 = vmul.f32 %v7182_v41, %v7182_v41 }
 0x2c7   : > { %v5636_v44 = vpop.f32.mrf.mxu0  ;;  %v5664_v45 = vpop.f32.mrf.mxu1 }
 0x2c8   : > { %v7212_v17 = vsub.f32 %v5636_v44, %v5664_v45 }
 0x2c9   : > { %v1485_v46 = vpop.f32.mrf.mxu0  ;;  %v1614_v51 = vpop.f32.mrf.mxu1 }
 0x2ca   : > { %v7184_v5 = vsub.f32 %v1485_v46, %v1614_v51  ;;  %9032 = vst [vmem:[#allocation26_spill] sm:$0xff] %v7212_v17  ;;  %v1848_v30 = vmul.f32 %v7212_v17, %v7212_v17 }
 0x2cc   : > { %9026 = vst [vmem:[#allocation20_spill] sm:$0xff] %v7184_v5  ;;  %v1847_v18 = vmul.f32 %v7184_v5, %v7184_v5 }
 0x2cd   : > { %v5683_v52 = vpop.f32.mrf.mxu0  ;;  %v5711_v53 = vpop.f32.mrf.mxu1 }
 0x2ce   : > { %v1808_v10 = vadd.f32 %v5711_v53, %v5683_v52 }
 0x2cf   : > { %v1697_v49 = vpop.f32.mrf.mxu0  ;;  %v1802_v54 = vpop.f32.mrf.mxu1 }
 0x2d0   : > { %v7186_v58 = vadd.f32 %v1802_v54, %v1697_v49  ;;  %v1850_v25 = vmul.f32 %v1808_v10, %v1808_v10 }
 0x2d1   : > { %v5686_v55 = vpop.f32.mrf.mxu0  ;;  %v5714_v57 = vpop.f32.mrf.mxu1 }
 0x2d2   : > { %v7200_v11 = vadd.f32 %v5714_v57, %v5686_v55  ;;  %v1849_v19 = vmul.f32 %v7186_v58, %v7186_v58  ;;  %v1858_v21 = vadd.f32 %v1850_v25, %v1842_v29 }
 0x2d3   : > { %v1707_v50 = vpop.f32.mrf.mxu0  ;;  %v1812_v12 = vpop.f32.mrf.mxu1 }
 0x2d4   : > { %v7188_v4 = vadd.f32 %v1812_v12, %v1707_v50  ;;  %v1852_v26 = vmul.f32 %v7200_v11, %v7200_v11  ;;  %v1857_v34 = vadd.f32 %v1849_v19, %v1841_v20  ;;  %v1866_v52 = vsel %vm9008_vm0, %v1858_v21, -inf  ;;  %v2003_v12 = vld [vmem:[#allocation7 + $0xc8] sm:$0xff] }
 0x2d5   : > { %v5689_v56 = vpop.f32.mrf.mxu0  ;;  %v5717_v60 = vpop.f32.mrf.mxu1  ;;  %v1996_v25 = vmul.f32 1.4500796e-05, %v7200_v11  ;;  %v2004_v11 = vld [vmem:[#allocation7 + $0xd0] sm:$0xff] }
 0x2d6   : > { %v7190_v6 = vadd.f32 %v5717_v60, %v5689_v56  ;;  %v1851_v48 = vmul.f32 %v7188_v4, %v7188_v4  ;;  %v1860_v38 = vadd.f32 %v1852_v26, %v1844_v31  ;;  %v1865_v42 = vsel %vm9008_vm0, %v1857_v34, -inf }
 0x2d7   : > { %v1717_v61 = vpop.f32.mrf.mxu0  ;;  %v1822_v47 = vpop.f32.mrf.mxu1  ;;  %v7248_v56 = vstv %s310_s28  ;;  %v1994_v60 = vmul.f32 1.4500796e-05, %v1808_v10  ;;  %s319_s28 = sadd.s32 8, %s6868_s9  ;;  %s8900_s9 = scalar_lea.hbm %s8954_s6, %s5304_s15 }
 0x2d8   : > { %v7178_v2 = vadd.f32 %v1822_v47, %v1717_v61  ;;  %v1854_v3 = vmul.f32 %v7190_v6, %v7190_v6  ;;  %v1859_v35 = vadd.f32 %v1851_v48, %v1843_v22  ;;  %v1868_v53 = vsel %vm9008_vm0, %v1860_v38, -inf  ;;  %v2029_v47 = vld [vmem:[#allocation7 + $0x108] sm:$0xff]  ;;  %v2028_v48 = vld [vmem:[#allocation7 + $0x100] sm:$0xff]  ;;  %v2030_v38 = vld [vmem:[#allocation7 + $0x110] sm:$0xff] }
 0x2d9   : > { %v5692_v32 = vpop.f32.mrf.mxu0  ;;  %v5720_v62 = vpop.f32.mrf.mxu1  ;;  %v2012_v61 = vmul.f32 %v7248_v56, %v2003_v12  ;;  %v8969_v12 = vmov 2131351028  }
 0x2da   : > { %v7198_v9 = vadd.f32 %v5720_v62, %v5692_v32  ;;  %v1853_v13 = vmul.f32 %v7178_v2, %v7178_v2  ;;  %v1862_v36 = vadd.f32 %v1854_v3, %v1846_v23  ;;  %v1867_v43 = vsel %vm9008_vm0, %v1859_v35, -inf  ;;  %v2005_v23 = vld [vmem:[#allocation7 + $0xd8] sm:$0xff] }
 0x2db   : > { %v1727_v33 = vpop.f32.mrf.mxu0  ;;  %v1832_v0 = vpop.f32.mrf.mxu1  ;;  %v7251_v32 = vstv %s312_s10  ;;  %v2020_v62 = vadd.f32 %v2012_v61, %v1994_v60  ;;  %v2014_v26 = vmul.f32 %v7248_v56, %v2005_v23  ;;  %v8962_v61 = vmov 2102212464   ;;  %s300_s10 = sand.u32 1, %s6674_s22  }
 0x2dc   : > { %v7180_v1 = vadd.f32 %v1832_v0, %v1727_v33  ;;  %v1856_v24 = vmul.f32 %v7198_v9, %v7198_v9  ;;  %v1861_v27 = vadd.f32 %v1853_v13, %v1845_v16  ;;  %v1871_v44 = vsel %vm9008_vm0, %v1862_v36, -inf  ;;  %s5113_s13 = sshll.u32 %s300_s10, 5  ;;  %s8908_s25 = scalar_lea.sflag [#allocation5], %s300_s10 }
 0x2dd   : > { %v1872_v49 = vmax.f32 %v1866_v52, %v1871_v44  ;;  %v2038_v33 = vmul.f32 %v7251_v32, %v2029_v47  ;;  %v2037_v20 = vmul.f32 %v7251_v32, %v2028_v48  ;;  %v2022_v29 = vadd.f32 %v2014_v26, %v1996_v25 }
 0x2de   : > { %v1855_v14 = vmul.f32 %v7180_v1, %v7180_v1  ;;  %v1864_v37 = vadd.f32 %v1856_v24, %v1848_v30  ;;  %v1869_v39 = vsel %vm9008_vm0, %v1861_v27, -inf  ;;  %v2031_v27 = vld [vmem:[#allocation7 + $0x118] sm:$0xff]  ;;  %v1995_v44 = vmul.f32 1.4500796e-05, %v7188_v4 }
 0x2df   : > { %v1870_v45 = vmax.f32 %v1865_v42, %v1869_v39  ;;  %v7254_v0 = vadd.f32 %v2038_v33, %v2020_v62  ;;  %v2040_v30 = vmul.f32 %v7251_v32, %v2031_v27  ;;  %v2007_v39 = vld [vmem:[#allocation7 + $0xe8] sm:$0xff]  ;;  %v8964_v42 = vmov 1326507024   ;;  %v2006_v33 = vld [vmem:[#allocation7 + $0xe0] sm:$0xff] }
 0x2e0   : > { %v1863_v28 = vadd.f32 %v1855_v14, %v1847_v18  ;;  %v1875_v51 = vsel %vm9008_vm0, %v1864_v37, -inf  ;;  %v2002_v14 = vld [vmem:[#allocation7 + $0xc0] sm:$0xff]  ;;  %v1993_v18 = vmul.f32 1.4500796e-05, %v7186_v58  ;;  %v8966_v23 = vmov 683565275  }
 0x2e1   : > { %v1876_v54 = vmax.f32 %v1868_v53, %v1875_v51  ;;  %v1877_v55 = vmax.f32 %v1870_v45, %v1872_v49  ;;  %9033 = vst [vmem:[#allocation27_spill] sm:$0xff] %v7254_v0  ;;  %v2192_v13 = vand.u32 2139095040, %v7254_v0  ;;  %v2011_v19 = vmul.f32 %v7248_v56, %v2002_v14 }
 0x2e2   : > { %v1873_v40 = vsel %vm9008_vm0, %v1863_v28, -inf  ;;  %v7266_v35 = vadd.f32 %v2040_v30, %v2022_v29  ;;  %v2013_v45 = vmul.f32 %v7248_v56, %v2004_v11  ;;  %v2039_v53 = vmul.f32 %v7251_v32, %v2030_v38  ;;  %v2032_v30 = vld [vmem:[#allocation7 + $0x120] sm:$0xff] }
 0x2e3   : > { %v1874_v46 = vmax.f32 %v1867_v43, %v1873_v40  ;;  %v2193_v16 = vshrl.u32 %v2192_v13, 23  ;;  %v2019_v3 = vadd.f32 %v2011_v19, %v1993_v18  ;;  %v2016_v49 = vmul.f32 %v7248_v56, %v2007_v39 }
 0x2e4   : > { %9035 = vst [vmem:[#allocation29_spill] sm:$0xff] %v7266_v35  ;;  %v2398_v21 = vand.u32 2139095040, %v7266_v35  ;;  %v6695_v13 = vmov 2475754826   ;;  %v2021_v18 = vadd.f32 %v2013_v45, %v1995_v44  ;;  %v7298_v27 = vmul.f32 %v7248_v56, %v2006_v33 }
 0x2e5   : > { %v1878_v57 = vmax.f32 %v1874_v46, %v1876_v54  ;;  %v5167_v10 = vadd.s32 4294967169, %v2193_v16  ;;  %v7260_v24 = vadd.f32 %v2037_v20, %v2019_v3  ;;  %v8974_v46 = vmov 920167782   ;;  %v2033_v54 = vld [vmem:[#allocation7 + $0x128] sm:$0xff] }
 0x2e6   : > { %v2399_v52 = vshrl.u32 %v2398_v21, 23  ;;  %v2042_v19 = vmul.f32 %v7251_v32, %v2033_v54  ;;  %v7308_v11 = vadd.f32 %v2039_v53, %v2021_v18  ;;  %v7316_v44 = vmul.f32 %v7251_v32, %v2032_v30 }
 0x2e7   : > { %v1879_v50 = vmax.f32 %v1877_v55, %v1878_v57  ;;  %v2199_v22 = vadd.s32 1, %v5167_v10  ;;  %9034 = vst [vmem:[#allocation28_spill] sm:$0xff] %v7260_v24  ;;  %v2089_v28 = vand.u32 2139095040, %v7260_v24  ;;  %v8959_v55 = vand.u32 2147483647, %v7254_v0 }
 0x2e8   : > { %v8958_v4 = vand.u32 2147483647, %v7260_v24  ;;  %v5175_v20 = vadd.s32 4294967169, %v2399_v52  ;;  %9036 = vst [vmem:[#allocation30_spill] sm:$0xff] %v7308_v11  ;;  %v1999_v15 = vmul.f32 1.4500796e-05, %v7180_v1 }
 0x2e9   : > { %1880 = vmax.xlane.f32.xlu0 %v1879_v50  ;;  %vm2200_vm1 = vcmp.gt.s32.totalorder %v2199_v22, 0  ;;  %v2090_v31 = vshrl.u32 %v2089_v28, 23 }
 0x2ea   : > { %v2201_v58 = vsel %vm2200_vm1, %v2199_v22, 0  ;;  %v2196_v22 = vand.u32 8388607, %v8959_v55  ;;  %v2093_v29 = vand.u32 8388607, %v8958_v4 }
 0x2eb   : > { %v2203_v34 = vand.u32 31, %v2201_v58  ;;  %v5163_v36 = vadd.s32 4294967169, %v2090_v31  ;;  %v7280_v57 = vshrl.u32 %v2201_v58, 5  ;;  %v2009_v31 = vld [vmem:[#allocation7 + $0xf8] sm:$0xff] }
 0x2ec   : > { %v7319_v45 = vmul.f32 %v7248_v56, %v2009_v31  ;;  %v2094_v54 = vor.u32 8388608, %v2093_v29 }
 0x2ed   : > { %v7268_v37 = vsub.s32 32, %v2203_v34  ;;  %v2096_v40 = vadd.s32 1, %v5163_v36  ;;  %v2218_v50 = vshll.u32 %v8974_v46, %v2203_v34  ;;  %v2215_v62 = vshll.u32 %v8962_v61, %v2203_v34 }
 0x2ee   : > { %v2209_v48 = vshll.u32 %v6695_v13, %v2203_v34  ;;  %v2212_v10 = vshll.u32 %v8969_v12, %v2203_v34  ;;  %v2206_v25 = vshll.u32 %v8966_v23, %v2203_v34  ;;  %vm2224_vm3 = vcmp.lt.s32.totalorder %v7280_v57, 4 }
 0x2ef   : > { %v2219_v43 = vshrl.u32 %v8964_v42, %v7268_v37  ;;  %v2216_v51 = vshrl.u32 %v8974_v46, %v7268_v37  ;;  %v2210_v60 = vshrl.u32 %v8969_v12, %v7268_v37  ;;  %v2213_v47 = vshrl.u32 %v8962_v61, %v7268_v37 }
 0x2f0   : > { %vm2097_vm2 = vcmp.gt.s32.totalorder %v2096_v40, 0  ;;  %v2207_v14 = vshrl.u32 %v6695_v13, %v7268_v37  ;;  %v8961_v34 = vand.u32 2147483647, %v7266_v35  ;;  %vm2221_vm4 = vcmp.lt.s32.totalorder %v7280_v57, 1 }
 0x2f1   : > { %v2220_v16 = vor.u32 %v2219_v43, %v2218_v50  ;;  %v2217_v3 = vor.u32 %v2216_v51, %v2215_v62  ;;  %v2098_v26 = vsel %vm2097_vm2, %v2096_v40, 0  ;;  %v7300_v28 = vor.u32 %v2210_v60, %v2209_v48  ;;  %v2008_v50 = vld [vmem:[#allocation7 + $0xf0] sm:$0xff] }
 0x2f2   : > { %v2214_v58 = vor.u32 %v2213_v47, %v2212_v10  ;;  %v2208_v36 = vor.u32 %v2207_v14, %v2206_v25  ;;  %v2100_v39 = vand.u32 31, %v2098_v26  ;;  %v2405_v40 = vadd.s32 1, %v5175_v20  ;;  %v2034_v60 = vld [vmem:[#allocation7 + $0x130] sm:$0xff] }
 0x2f3   : > { %v2234_v21 = vsel %vm2224_vm3, %v2220_v16, 1326507024  ;;  %v2230_v38 = vsel %vm2224_vm3, %v2217_v3, 920167782  ;;  %v1998_v43 = vmul.f32 1.4500796e-05, %v7190_v6  ;;  %v7344_v20 = vmul.f32 %v7251_v32, %v2034_v60 }
 0x2f4   : > { %vm2223_vm5 = vcmp.lt.s32.totalorder %v7280_v57, 3  ;;  %v2197_v51 = vor.u32 8388608, %v2196_v22  ;;  %v2233_v52 = vsel %vm2221_vm4, %v7300_v28, %v2214_v58  ;;  %v2035_v6 = vld [vmem:[#allocation7 + $0x138] sm:$0xff]  ;;  %v2229_v47 = vsel %vm2221_vm4, %v2208_v36, %v7300_v28 }
 0x2f5   : > { %v2235_v53 = vsel %vm2223_vm5, %v2217_v3, %v2234_v21  ;;  %v2231_v62 = vsel %vm2223_vm5, %v2214_v58, %v2230_v38  ;;  %v2402_v33 = vand.u32 8388607, %v8961_v34  ;;  %v8960_v14 = vand.u32 2147483647, %v7308_v11 }
 0x2f6   : > { %vm2222_vm6 = vcmp.lt.s32.totalorder %v7280_v57, 2  ;;  %v2101_v16 = vsub.s32 32, %v2100_v39  ;;  %vm2406_vm7 = vcmp.gt.s32.totalorder %v2405_v40, 0  ;;  %v2024_v18 = vadd.f32 %v2016_v49, %v1998_v43 }
 0x2f7   : > { %v2236_v48 = vsel %vm2222_vm6, %v2233_v52, %v2235_v53  ;;  %v7338_v10 = vmul.f32 %v7251_v32, %v2035_v6  ;;  %v7341_v3 = vmul.f32 %v7248_v56, %v2008_v50  ;;  %v2232_v22 = vsel %vm2222_vm6, %v2229_v47, %v2231_v62 }
 0x2f8   : > { %v7348_v25 = vshll.u32 %v2197_v51, 8  ;;  %v7350_v29 = vshll.u32 %v2094_v54, 8  ;;  %v2295_v49 = vand.u32 2139095040, %v7308_v11  ;;  %v2205_v30 = vshrl.u32 %v8966_v23, %v7268_v37 }
 0x2f9   : > { %v2403_v31 = vor.u32 8388608, %v2402_v33  ;;  %v2407_v21 = vsel %vm2406_vm7, %v2405_v40, 0  ;;  %v7357_v56 = vand.u32 8388607, %v8960_v14  ;;  %v2113_v43 = vshrl.u32 %v8974_v46, %v2101_v16 }
 0x2fa   : > { %v7360_v32 = vmul.u32.u64.low %v7348_v25, %v2236_v48  ;;  %v7361_v38 = vmul.u32.u64.high %v7348_v25, %v2236_v48, %v7360_v32  ;;  %v7364_v51 = vadd.f32 %v2042_v19, %v2024_v18  ;;  %v2226_v52 = vsel %vm2224_vm3, %v2214_v58, 2102212464 }
 0x2fb   : > { %v7369_v53 = vmul.u32.u64.low %v7348_v25, %v2232_v22  ;;  %v7370_v37 = vmul.u32.u64.high %v7348_v25, %v2232_v22, %v7369_v53  ;;  %v2104_v40 = vshrl.u32 %v6695_v13, %v2101_v16  ;;  %v2112_v54 = vshll.u32 %v8962_v61, %v2100_v39 }
 0x2fc   : > { %9037 = vst [vmem:[#allocation31_spill] sm:$0xff] %v7361_v38  ;;  %9038 = vst [vmem:[#allocation32_spill] sm:$0xff] %v7364_v51  ;;  %v2409_v6 = vand.u32 31, %v2407_v21  ;;  %v2296_v50 = vshrl.u32 %v2295_v49, 23  ;;  %v1997_v60 = vmul.f32 1.4500796e-05, %v7178_v2  ;;  %v2107_v19 = vshrl.u32 %v8969_v12, %v2101_v16 }
 0x2fd   : > { %9039 = vst [vmem:[#allocation33_spill] sm:$0xff] %v7369_v53  ;;  %v7376_v47 = vshrl.u32 %v2098_v26, 5  ;;  %v2110_v62 = vshrl.u32 %v8962_v61, %v2101_v16  ;;  %v2116_v58 = vshrl.u32 %v8964_v42, %v2101_v16  ;;  %v2225_v33 = vsel %vm2221_vm4, %v2205_v30, %v2208_v36 }
 0x2fe   : > { %v2103_v18 = vshll.u32 %v8966_v23, %v2100_v39  ;;  %v2114_v48 = vor.u32 %v2113_v43, %v2112_v54  ;;  %v2604_v22 = vand.u32 2139095040, %v7364_v51  ;;  %v2227_v2 = vsel %vm2223_vm5, %v7300_v28, %v2226_v52 }
 0x2ff   : > { %v2106_v26 = vshll.u32 %v6695_v13, %v2100_v39  ;;  %v2109_v49 = vshll.u32 %v8969_v12, %v2100_v39  ;;  %v2115_v32 = vshll.u32 %v8974_v46, %v2100_v39  ;;  %v7393_v55 = vsub.s32 32, %v2409_v6 }
 0x300   : > { %v7391_v4 = vor.u32 %v2104_v40, %v2103_v18  ;;  %v5171_v36 = vadd.s32 4294967169, %v2296_v50  ;;  %v2023_v30 = vadd.f32 %v7298_v27, %v1997_v60  ;;  %vm2121_vm8 = vcmp.lt.s32.totalorder %v7376_v47, 4 }
 0x301   : > { %v2108_v43 = vor.u32 %v2107_v19, %v2106_v26  ;;  %v2111_v54 = vor.u32 %v2110_v62, %v2109_v49  ;;  %v2117_v14 = vor.u32 %v2116_v58, %v2115_v32  ;;  %v7399_v28 = vsel %vm2222_vm6, %v2225_v33, %v2227_v2 }
 0x302   : > { %v2127_v52 = vsel %vm2121_vm8, %v2114_v48, 920167782  ;;  %v7403_v39 = vshll.u32 %v2403_v31, 8  ;;  %v2605_v40 = vshrl.u32 %v2604_v22, 23  ;;  %v2247_v18 = vadd.s32 1, %v7370_v37 }
 0x303   : > { %v2102_v50 = vshrl.u32 %v8966_v23, %v2101_v16  ;;  %vm2118_vm9 = vcmp.lt.s32.totalorder %v7376_v47, 1  ;;  %vm2119_vm10 = vcmp.lt.s32.totalorder %v7376_v47, 2  ;;  %vm2246_vm11 = vc.u32 %v7361_v38, %v7369_v53 }
 0x304   : > { %9040 = vst [vmem:[#allocation34_spill] sm:$0xff] %v7403_v39  ;;  %vm2120_vm12 = vcmp.lt.s32.totalorder %v7376_v47, 3  ;;  %v2422_v57 = vshrl.u32 %v8974_v46, %v7393_v55  ;;  %v2302_v27 = vadd.s32 1, %v5171_v36  ;;  %v7415_v31 = vadd.f32 %v7316_v44, %v2023_v30 }
 0x305   : > { %v2126_v16 = vsel %vm2118_vm9, %v7391_v4, %v2108_v43  ;;  %v2128_v60 = vsel %vm2120_vm12, %v2111_v54, %v2127_v52  ;;  %v2130_v19 = vsel %vm2118_vm9, %v2108_v43, %v2111_v54  ;;  %v2131_v62 = vsel %vm2121_vm8, %v2117_v14, 1326507024 }
 0x306   : > { %9041 = vst [vmem:[#allocation35_spill] sm:$0xff] %v7415_v31  ;;  %v2413_v58 = vshrl.u32 %v6695_v13, %v7393_v55  ;;  %v2421_v33 = vshll.u32 %v8962_v61, %v2409_v6  ;;  %v5183_v44 = vadd.s32 4294967169, %v2605_v40  ;;  %v2000_v22 = vmul.f32 1.4500796e-05, %v7198_v9 }
 0x307   : > { %v7430_v2 = vshrl.u32 %v2407_v21, 5  ;;  %v2412_v26 = vshll.u32 %v8966_v23, %v2409_v6  ;;  %v2416_v49 = vshrl.u32 %v8969_v12, %v7393_v55  ;;  %v2419_v32 = vshrl.u32 %v8962_v61, %v7393_v55 }
 0x308   : > { %v2423_v36 = vor.u32 %v2422_v57, %v2421_v33  ;;  %v2425_v14 = vshrl.u32 %v8964_v42, %v7393_v55  ;;  %vm2303_vm13 = vcmp.gt.s32.totalorder %v2302_v27, 0  ;;  %v2501_v30 = vand.u32 2139095040, %v7415_v31 }
 0x309   : > { %v2129_v9 = vsel %vm2119_vm10, %v2126_v16, %v2128_v60  ;;  %v2132_v21 = vsel %vm2120_vm12, %v2114_v48, %v2131_v62  ;;  %v2415_v52 = vshll.u32 %v6695_v13, %v2409_v6  ;;  %v2418_v40 = vshll.u32 %v8969_v12, %v2409_v6 }
 0x30a   : > { %v2414_v34 = vor.u32 %v2413_v58, %v2412_v26  ;;  %v2424_v61 = vshll.u32 %v8974_v46, %v2409_v6  ;;  %v2611_v57 = vadd.s32 1, %v5183_v44  ;;  %v2026_v33 = vadd.f32 %v7319_v45, %v2000_v22 }
 0x30b   : > { %v2417_v42 = vor.u32 %v2416_v49, %v2415_v52  ;;  %v2420_v23 = vor.u32 %v2419_v32, %v2418_v40  ;;  %vm2430_vm14 = vcmp.lt.s32.totalorder %v7430_v2, 4  ;;  %v2304_v7 = vsel %vm2303_vm13, %v2302_v27, 0 }
 0x30c   : > { %v2123_v16 = vsel %vm2121_vm8, %v2111_v54, 2102212464  ;;  %v2426_v60 = vor.u32 %v2425_v14, %v2424_v61  ;;  %v2436_v48 = vsel %vm2430_vm14, %v2423_v36, 920167782  ;;  %v2502_v62 = vshrl.u32 %v2501_v30, 23 }
 0x30d   : > { %v7455_v58 = vsel %vm2119_vm10, %v2130_v19, %v2132_v21  ;;  %v7458_v6 = vmul.u32.u64.low %v7350_v29, %v2129_v9  ;;  %v7459_v45 = vmul.u32.u64.high %v7350_v29, %v2129_v9, %v7458_v6  ;;  %vm2427_vm15 = vcmp.lt.s32.totalorder %v7430_v2, 1 }
 0x30e   : > { %vm2429_vm1 = vcmp.lt.s32.totalorder %v7430_v2, 3  ;;  %v2306_v27 = vand.u32 31, %v2304_v7  ;;  %vm2612_vm2 = vcmp.gt.s32.totalorder %v2611_v57, 0  ;;  %v7465_v61 = vadd.f32 %v7338_v10, %v2026_v33 }
 0x30f   : > { %v2244_v54 = vmul.u32 %v7348_v25, %v7399_v28  ;;  %v2248_v19 = vsel %vm2246_vm11, %v2247_v18, %v7370_v37  ;;  %v2435_v44 = vsel %vm2427_vm15, %v2414_v34, %v2417_v42  ;;  %v2437_v22 = vsel %vm2429_vm1, %v2420_v23, %v2436_v48 }
 0x310   : > { %v2122_v26 = vsel %vm2118_vm9, %v2102_v50, %v7391_v4  ;;  %v2124_v10 = vsel %vm2120_vm12, %v2108_v43, %v2123_v16  ;;  %v2440_v25 = vsel %vm2430_vm14, %v2426_v60, 1326507024  ;;  %v5179_v28 = vadd.s32 4294967169, %v2502_v62 }
 0x311   : > { %v7486_v37 = vmul.u32.u64.low %v7350_v29, %v7455_v58  ;;  %v7487_v18 = vmul.u32.u64.high %v7350_v29, %v7455_v58, %v7486_v37  ;;  %vm2428_vm3 = vcmp.lt.s32.totalorder %v7430_v2, 2  ;;  %v2613_v49 = vsel %vm2612_vm2, %v2611_v57, 0 }
 0x312   : > { %v7491_v32 = vadd.s32 %v2248_v19, %v2244_v54  ;;  %v7495_v4 = vsel %vm2428_vm3, %v2435_v44, %v2437_v22  ;;  %v7497_v43 = vsub.s32 32, %v2306_v27  ;;  %v2810_v50 = vand.u32 2139095040, %v7465_v61 }
 0x313   : > { %v7502_v14 = vsel %vm2119_vm10, %v2122_v26, %v2124_v10  ;;  %v9043_v30 = vmov 683565275   ;;  %v2439_v21 = vsel %vm2427_vm15, %v2417_v42, %v2420_v23  ;;  %v2441_v52 = vsel %vm2429_vm1, %v2423_v36, %v2440_v25 }
 0x314   : > { %9042 = vst [vmem:[#allocation36_spill] sm:$0xff] %v7497_v43  ;;  %v2411_v9 = vshrl.u32 %v9043_v30, %v7393_v55  ;;  %v2432_v40 = vsel %vm2430_vm14, %v2420_v23, 2102212464  ;;  %v2615_v33 = vand.u32 31, %v2613_v49  ;;  %v2508_v16 = vadd.s32 1, %v5179_v28 }
 0x315   : > { %v7514_v47 = vadd.s32 1, %v7459_v45  ;;  %v7522_v55 = vmul.u32.u64.low %v7403_v39, %v7495_v4  ;;  %v7523_v48 = vmul.u32.u64.high %v7403_v39, %v7495_v4, %v7522_v55  ;;  %v7528_v23 = vsel %vm2428_vm3, %v2439_v21, %v2441_v52 }
 0x316   : > { %v7518_v60 = vsel %vm2427_vm15, %v2411_v9, %v2414_v34  ;;  %v2310_v36 = vshrl.u32 %v6695_v13, %v7497_v43  ;;  %v8971_v62 = vand.u32 2147483647, %v7364_v51  ;;  %v2811_v58 = vshrl.u32 %v2810_v50, 23 }
 0x317   : > { %9044 = vst [vmem:[#allocation37_spill] sm:$0xff] %v7523_v48  ;;  %9045 = vst [vmem:[#allocation38_spill] sm:$0xff] %v7522_v55  ;;  %v7535_v34 = vsel %vm2429_vm1, %v2417_v42, %v2432_v40  ;;  %v7537_v54 = vshrl.u32 %v2304_v7, 5  ;;  %v2313_v19 = vshrl.u32 %v8969_v12, %v7497_v43  ;;  %v9046_v44 = vmov 2102212464  }
 0x318   : > { %v2316_v22 = vshrl.u32 %v9046_v44, %v7497_v43  ;;  %v2309_v26 = vshll.u32 %v9043_v30, %v2306_v27  ;;  %v2319_v10 = vshrl.u32 %v8974_v46, %v7497_v43  ;;  %v7546_v25 = vsub.s32 32, %v2615_v33 }
 0x319   : > { %vm2509_vm4 = vcmp.gt.s32.totalorder %v2508_v16, 0  ;;  %v7550_v42 = vmul.u32.u64.low %v7403_v39, %v7528_v23  ;;  %v7551_v28 = vmul.u32.u64.high %v7403_v39, %v7528_v23, %v7550_v42  ;;  %v2312_v7 = vshll.u32 %v6695_v13, %v2306_v27 }
 0x31a   : > { %v2315_v37 = vshll.u32 %v8969_v12, %v2306_v27  ;;  %v7556_v4 = vor.u32 %v2310_v36, %v2309_v26  ;;  %v2318_v50 = vshll.u32 %v9046_v44, %v2306_v27  ;;  %v2608_v9 = vand.u32 8388607, %v8971_v62 }
 0x31b   : > { %9047 = vst [vmem:[#allocation39_spill] sm:$0xff] %v7551_v28  ;;  %v5191_v21 = vadd.s32 4294967169, %v2811_v58  ;;  %v7561_v52 = vor.u32 %v2313_v19, %v2312_v7  ;;  %v7566_v23 = vshll.u32 %v8974_v46, %v2306_v27  ;;  %v2510_v42 = vsel %vm2509_vm4, %v2508_v16, 0 }
 0x31c   : > { %9048 = vst [vmem:[#allocation40_spill] sm:$0xff] %v7556_v4  ;;  %v7563_v40 = vor.u32 %v2316_v22, %v2315_v37  ;;  %v7568_v57 = vor.u32 %v2319_v10, %v2318_v50  ;;  %v9049_v12 = vmov 1326507024   ;;  %vm2324_vm5 = vcmp.lt.s32.totalorder %v7537_v54, 1 }
 0x31d   : > { %v7572_v36 = vshrl.u32 %v9049_v12, %v7497_v43  ;;  %v2631_v26 = vshrl.u32 %v9049_v12, %v7546_v25  ;;  %vm2326_vm6 = vcmp.lt.s32.totalorder %v7537_v54, 3  ;;  %vm2327_vm7 = vcmp.lt.s32.totalorder %v7537_v54, 4 }
 0x31e   : > { %v2628_v27 = vshrl.u32 %v8974_v46, %v7546_v25  ;;  %v2630_v16 = vshll.u32 %v8974_v46, %v2615_v33  ;;  %v2619_v58 = vshrl.u32 %v6695_v13, %v7546_v25  ;;  %v9050_v19 = vmov 2131351028  }
 0x31f   : > { %v2622_v22 = vshrl.u32 %v9050_v19, %v7546_v25  ;;  %v2512_v10 = vand.u32 31, %v2510_v42  ;;  %v2817_v7 = vadd.s32 1, %v5191_v21  ;;  %v7586_v37 = vshrl.u32 %v2613_v49, 5 }
 0x320   : > { %v2625_v50 = vshrl.u32 %v9046_v44, %v7546_v25  ;;  %v2627_v62 = vshll.u32 %v9046_v44, %v2615_v33  ;;  %v2609_v8 = vor.u32 8388608, %v2608_v9  ;;  %v2618_v46 = vshll.u32 %v9043_v30, %v2615_v33 }
 0x321   : > { %v2621_v63 = vshll.u32 %v6695_v13, %v2615_v33  ;;  %v2632_v17 = vor.u32 %v2631_v26, %v2630_v16  ;;  %v2333_v5 = vsel %vm2327_vm7, %v7568_v57, 920167782  ;;  %v2624_v49 = vshll.u32 %v9050_v19, %v2615_v33 }
 0x322   : > { %v2629_v21 = vor.u32 %v2628_v27, %v2627_v62  ;;  %v8985_v59 = vand.u32 2147483647, %v7415_v31  ;;  %v2620_v41 = vor.u32 %v2619_v58, %v2618_v46  ;;  %v7601_v35 = vsub.s32 32, %v2512_v10 }
 0x323   : > { %v7599_v11 = vor.u32 %v2622_v22, %v2621_v63  ;;  %vm2818_vm8 = vcmp.gt.s32.totalorder %v2817_v7, 0  ;;  %v2626_v9 = vor.u32 %v2625_v50, %v2624_v49  ;;  %vm2636_vm9 = vcmp.lt.s32.totalorder %v7586_v37, 4 }
 0x324   : > { %v2025_v26 = vadd.f32 %v7341_v3, %v1999_v15  ;;  %v7611_v33 = vsel %vm2324_vm5, %v7556_v4, %v7561_v52  ;;  %v7616_v63 = vsel %vm2326_vm6, %v7563_v40, %v2333_v5  ;;  %v2646_v46 = vsel %vm2636_vm9, %v2632_v17, 1326507024 }
 0x325   : > { %v7620_v62 = vshll.u32 %v2609_v8, 8  ;;  %vm2633_vm10 = vcmp.lt.s32.totalorder %v7586_v37, 1  ;;  %v2642_v15 = vsel %vm2636_vm9, %v2629_v21, 920167782  ;;  %v2505_v3 = vand.u32 8388607, %v8985_v59 }
 0x326   : > { %v2819_v27 = vsel %vm2818_vm8, %v2817_v7, 0  ;;  %vm2634_vm11 = vcmp.lt.s32.totalorder %v7586_v37, 2  ;;  %vm2635_vm12 = vcmp.lt.s32.totalorder %v7586_v37, 3  ;;  %v2641_v5 = vsel %vm2633_vm10, %v2620_v41, %v7599_v11 }
 0x327   : > { %v9051_v8 = vmov 920167782   ;;  %v2645_v16 = vsel %vm2633_vm10, %v7599_v11, %v2626_v9  ;;  %v2647_v58 = vsel %vm2635_vm12, %v2629_v21, %v2646_v46  ;;  %v2528_v22 = vshrl.u32 %v9049_v12, %v7601_v35 }
 0x328   : > { %v2525_v17 = vshrl.u32 %v9051_v8, %v7601_v35  ;;  %v7642_v7 = vadd.f32 %v7344_v20, %v2025_v26  ;;  %v2643_v50 = vsel %vm2635_vm12, %v2626_v9, %v2642_v15  ;;  %v7646_v49 = vshrl.u32 %v2510_v42, 5 }
 0x329   : > { %v2524_v59 = vshll.u32 %v9046_v44, %v2512_v10  ;;  %v2821_v1 = vand.u32 31, %v2819_v27  ;;  %v2516_v24 = vshrl.u32 %v6695_v13, %v7601_v35  ;;  %v2519_v21 = vshrl.u32 %v9050_v19, %v7601_v35 }
 0x32a   : > { %9052 = vst [vmem:[#allocation41_spill] sm:$0xff] %v7642_v7  ;;  %v2522_v46 = vshrl.u32 %v9046_v44, %v7601_v35  ;;  %v2527_v20 = vshll.u32 %v9051_v8, %v2512_v10  ;;  %v2617_v26 = vshrl.u32 %v9043_v30, %v7546_v25  ;;  %v2648_v42 = vsel %vm2634_vm11, %v2645_v16, %v2647_v58 }
 0x32b   : > { %v2515_v15 = vshll.u32 %v9043_v30, %v2512_v10  ;;  %v2526_v0 = vor.u32 %v2525_v17, %v2524_v59  ;;  %v2518_v31 = vshll.u32 %v6695_v13, %v2512_v10  ;;  %v2521_v51 = vshll.u32 %v9050_v19, %v2512_v10 }
 0x32c   : > { %v2529_v53 = vor.u32 %v2528_v22, %v2527_v20  ;;  %v2707_v38 = vand.u32 2139095040, %v7642_v7  ;;  %v7666_v4 = vsel %vm2633_vm10, %v2617_v26, %v2620_v41  ;;  %v2638_v25 = vsel %vm2636_vm9, %v2626_v9, 2102212464 }
 0x32d   : > { %v2644_v16 = vsel %vm2634_vm11, %v2641_v5, %v2643_v50  ;;  %v7672_v58 = vsub.s32 32, %v2821_v1  ;;  %v7674_v59 = vor.u32 %v2516_v24, %v2515_v15  ;;  %v7676_v17 = vor.u32 %v2519_v21, %v2518_v31 }
 0x32e   : > { %v7678_v10 = vor.u32 %v2522_v46, %v2521_v51  ;;  %vm2533_vm13 = vcmp.lt.s32.totalorder %v7646_v49, 4  ;;  %v7682_v22 = vmul.u32.u64.low %v7620_v62, %v2648_v42  ;;  %v7683_v41 = vmul.u32.u64.high %v7620_v62, %v2648_v42, %v7682_v22 }
 0x32f   : > { %9053 = vst [vmem:[#allocation42_spill] sm:$0xff] %v7672_v58  ;;  %v2506_v20 = vor.u32 8388608, %v2505_v3  ;;  %v2539_v9 = vsel %vm2533_vm13, %v2526_v0, 920167782  ;;  %v7688_v5 = vmul.u32.u64.low %v7620_v62, %v2644_v16  ;;  %v7689_v50 = vmul.u32.u64.high %v7620_v62, %v2644_v16, %v7688_v5 }
 0x330   : > { %v2543_v24 = vsel %vm2533_vm13, %v2529_v53, 1326507024  ;;  %v2708_v51 = vshrl.u32 %v2707_v38, 23  ;;  %vm2530_vm14 = vcmp.lt.s32.totalorder %v7646_v49, 1  ;;  %vm2532_vm15 = vcmp.lt.s32.totalorder %v7646_v49, 3 }
 0x331   : > { %v2834_v3 = vshrl.u32 %v9051_v8, %v7672_v58  ;;  %v2538_v21 = vsel %vm2530_vm14, %v7674_v59, %v7676_v17  ;;  %v2540_v46 = vsel %vm2532_vm15, %v7678_v10, %v2539_v9  ;;  %v2542_v38 = vsel %vm2530_vm14, %v7676_v17, %v7678_v10 }
 0x332   : > { %v2837_v53 = vshrl.u32 %v9049_v12, %v7672_v58  ;;  %v2544_v26 = vsel %vm2532_vm15, %v2526_v0, %v2543_v24  ;;  %v7714_v42 = vshrl.u32 %v2819_v27, 5  ;;  %v2825_v15 = vshrl.u32 %v6695_v13, %v7672_v58 }
 0x333   : > { %v2833_v16 = vshll.u32 %v9046_v44, %v2821_v1  ;;  %v2828_v22 = vshrl.u32 %v9050_v19, %v7672_v58  ;;  %v2831_v9 = vshrl.u32 %v9046_v44, %v7672_v58  ;;  %v2836_v31 = vshll.u32 %v9051_v8, %v2821_v1 }
 0x334   : > { %v5187_v43 = vadd.s32 4294967169, %v2708_v51  ;;  %vm2531_vm1 = vcmp.lt.s32.totalorder %v7646_v49, 2  ;;  %v7725_v7 = vshll.u32 %v2506_v20, 8  ;;  %v2824_v0 = vshll.u32 %v9043_v30, %v2821_v1 }
 0x335   : > { %v2835_v27 = vor.u32 %v2834_v3, %v2833_v16  ;;  %v2541_v24 = vsel %vm2531_vm1, %v2538_v21, %v2540_v46  ;;  %v2827_v12 = vshll.u32 %v6695_v13, %v2821_v1  ;;  %v2830_v39 = vshll.u32 %v9050_v19, %v2821_v1 }
 0x336   : > { %v2838_v28 = vor.u32 %v2837_v53, %v2836_v31  ;;  %v2545_v44 = vsel %vm2531_vm1, %v2542_v38, %v2544_v26  ;;  %v9054_v51 = vand.u32 2147483647, %v7465_v61  ;;  %v7736_v20 = vor.u32 %v2825_v15, %v2824_v0 }
 0x337   : > { %v7738_v48 = vor.u32 %v2828_v22, %v2827_v12  ;;  %v2832_v3 = vor.u32 %v2831_v9, %v2830_v39  ;;  %vm2842_vm2 = vcmp.lt.s32.totalorder %v7714_v42, 4  ;;  %v2714_v21 = vadd.s32 1, %v5187_v43 }
 0x338   : > { %v2814_v8 = vand.u32 8388607, %v9054_v51  ;;  %v7742_v46 = vmul.u32.u64.low %v7725_v7, %v2541_v24  ;;  %v7743_v1 = vmul.u32.u64.high %v7725_v7, %v2541_v24, %v7742_v46  ;;  %v2848_v31 = vsel %vm2842_vm2, %v2835_v27, 920167782 }
 0x339   : > { %vm2143_vm4 = vc.u32 %v7487_v18, %v7458_v6  ;;  %v2639_v12 = vsel %vm2635_vm12, %v7599_v11, %v2638_v25  ;;  %v7754_v39 = vmul.u32.u64.low %v7725_v7, %v2545_v44  ;;  %v7755_v53 = vmul.u32.u64.high %v7725_v7, %v2545_v44, %v7754_v39 }
 0x33a   : > { %v2852_v43 = vsel %vm2842_vm2, %v2838_v28, 1326507024  ;;  %v2659_v26 = vadd.s32 1, %v7689_v50  ;;  %vm2839_vm8 = vcmp.lt.s32.totalorder %v7714_v42, 1  ;;  %vm2841_vm9 = vcmp.lt.s32.totalorder %v7714_v42, 3 }
 0x33b   : > { %v2847_v11 = vsel %vm2839_vm8, %v7736_v20, %v7738_v48  ;;  %v2849_v44 = vsel %vm2841_vm9, %v2832_v3, %v2848_v31  ;;  %vm2715_vm10 = vcmp.gt.s32.totalorder %v2714_v21, 0  ;;  %vm2658_vm12 = vc.u32 %v7683_v41, %v7688_v5 }
 0x33c   : > { %v2851_v28 = vsel %vm2839_vm8, %v7738_v48, %v2832_v3  ;;  %v2853_v25 = vsel %vm2841_vm9, %v2835_v27, %v2852_v43  ;;  %v9055_v15 = vor.u32 %v7572_v36, %v7566_v23  ;;  %v2640_v22 = vsel %vm2634_vm11, %v7666_v4, %v2639_v12 }
 0x33d   : > { %v2514_v9 = vshrl.u32 %v9043_v30, %v7601_v35  ;;  %vm2840_vm0 = vcmp.lt.s32.totalorder %v7714_v42, 2  ;;  %v2535_v0 = vsel %vm2533_vm13, %v7678_v10, 2102212464  ;;  %v2716_v23 = vsel %vm2715_vm10, %v2714_v21, 0 }
 0x33e   : > { %v2337_v16 = vsel %vm2327_vm7, %v9055_v15, 1326507024  ;;  %v2850_v27 = vsel %vm2840_vm0, %v2847_v11, %v2849_v44  ;;  %v2336_v37 = vsel %vm2324_vm5, %v7561_v52, %v7563_v40  ;;  %v2660_v4 = vsel %vm2658_vm12, %v2659_v26, %v7689_v50 }
 0x33f   : > { %v2854_v35 = vsel %vm2840_vm0, %v2851_v28, %v2853_v25  ;;  %v2338_v10 = vsel %vm2326_vm6, %v7568_v57, %v2337_v16  ;;  %v2656_v51 = vmul.u32 %v7620_v62, %v2640_v22  ;;  %v2534_v21 = vsel %vm2530_vm14, %v2514_v9, %v7674_v59  ;;  %v9059_v25 = vld [vmem:[#allocation38_spill] sm:$0xff] }
 0x340   : > { %v2536_v50 = vsel %vm2532_vm15, %v7676_v17, %v2535_v0  ;;  %v2718_v39 = vand.u32 31, %v2716_v23  ;;  %v2556_v57 = vadd.s32 1, %v7743_v1  ;;  %v7823_v59 = vadd.s32 536870912, %v7491_v32  ;;  %v9061_v0 = vld [vmem:[#allocation34_spill] sm:$0xff] }
 0x341   : > { %v7815_v43 = vadd.s32 %v2660_v4, %v2656_v51  ;;  %v2141_v17 = vmul.u32 %v7350_v29, %v7502_v14  ;;  %vm2325_vm11 = vcmp.lt.s32.totalorder %v7537_v54, 2  ;;  %vm2555_vm13 = vc.u32 %v7755_v53, %v7742_v46 }
 0x342   : > { %v2335_v29 = vsel %vm2325_vm11, %v7611_v33, %v7616_v63  ;;  %v2537_v14 = vsel %vm2531_vm1, %v2534_v21, %v2536_v50  ;;  %v2339_v11 = vsel %vm2325_vm11, %v2336_v37, %v2338_v10  ;;  %v9056_v44 = vor.u32 8388608, %v7357_v56  ;;  %v9058_v63 = vld [vmem:[#allocation42_spill] sm:$0xff]  ;;  %v9064_v21 = vld [vmem:[#allocation41_spill] sm:$0xff] }
 0x343   : > { %v7853_v2 = vsub.s32 32, %v2718_v39  ;;  %v2557_v33 = vsel %vm2555_vm13, %v2556_v57, %v7743_v1  ;;  %v2823_v49 = vshrl.u32 %v9043_v30, %v9058_v63  ;;  %v7894_v50 = vshrl.u32 %v2716_v23, 5 }
 0x344   : > { %v7849_v28 = vshll.u32 %v9056_v44, 8  ;;  %v9065_v57 = vmov 2102212464   ;;  %v9066_v44 = vld [vmem:[#allocation36_spill] sm:$0xff] }
 0x345   : > { %v2843_v1 = vsel %vm2839_vm8, %v2823_v49, %v7736_v20  ;;  %v9063_v20 = vmov 1326507024   ;;  %v2308_v42 = vshrl.u32 %v9043_v30, %v9066_v44  ;;  %v2329_v49 = vsel %vm2327_vm7, %v7563_v40, 2102212464 }
 0x346   : > { %v7863_v56 = vmul.u32.u64.low %v7849_v28, %v2335_v29  ;;  %v7864_v15 = vmul.u32.u64.high %v7849_v28, %v2335_v29, %v7863_v56  ;;  %v7869_v16 = vmul.u32.u64.low %v7849_v28, %v2339_v11  ;;  %v7870_v22 = vmul.u32.u64.high %v7849_v28, %v2339_v11, %v7869_v16 }
 0x347   : > { %v2734_v51 = vshrl.u32 %v9063_v20, %v7853_v2  ;;  %v2725_v29 = vshrl.u32 %v9050_v19, %v7853_v2  ;;  %vm2736_vm15 = vcmp.lt.s32.totalorder %v7894_v50, 1  ;;  %vm2738_vm1 = vcmp.lt.s32.totalorder %v7894_v50, 3 }
 0x348   : > { %vm2349_vm7 = vc.u32 %v7870_v22, %v7863_v56 }
 0x372   : > { %v1881_v55 = vpop.xlane.xlu0 %1880 }
 0x373   : > { %v1882_v58 = vrot.slane %v1881_v55, 4 }
 0x375   : > { %v1883_v38 = vmax.f32 %v1881_v55, %v1882_v58  ;;  %v2815_v58 = vor.u32 8388608, %v2814_v8 }
 0x377   : > { %v1884_v55 = vrot.slane %v1883_v38, 2  ;;  %v7798_v24 = vshll.u32 %v2815_v58, 8  ;;  %v2434_v58 = vsel %vm2428_vm3, %v7518_v60, %v7535_v34  ;;  %v2662_v34 = vadd.s32 536870912, %v7815_v43 }
 0x379   : > { %v1885_v8 = vmax.f32 %v1883_v38, %v1884_v55  ;;  %v7811_v38 = vmul.u32.u64.low %v7798_v24, %v2850_v27  ;;  %v7812_v12 = vmul.u32.u64.high %v7798_v24, %v2850_v27, %v7811_v38  ;;  %v2145_v55 = vsel %vm2143_vm4, %v7514_v47, %v7459_v45  ;;  %v9057_v47 = vld [vmem:[#allocation37_spill] sm:$0xff] }
 0x37a   : > { %v7819_v62 = vmul.u32.u64.low %v7798_v24, %v2854_v35  ;;  %v7820_v26 = vmul.u32.u64.high %v7798_v24, %v2854_v35, %v7819_v62  ;;  %v2844_v45 = vsel %vm2842_vm2, %v2832_v3, 2102212464  ;;  %v2453_v60 = vadd.s32 1, %v9057_v47 }
 0x37b   : > { %v1886_v36 = vrot.slane %v1885_v8, 1  ;;  %v2553_v3 = vmul.u32 %v7725_v7, %v2537_v14  ;;  %v2845_v9 = vsel %vm2841_vm9, %v7738_v48, %v2844_v45  ;;  %v2450_v27 = vmul.u32 %v9061_v0, %v2434_v58 }
 0x37c   : > { %v2865_v37 = vadd.s32 1, %v7812_v12  ;;  %v9062_v7 = vmov 920167782   ;;  %v7885_v10 = vshrl.u32 %v2662_v34, 30  ;;  %vm2864_vm14 = vc.u32 %v7820_v26, %v7811_v38 }
 0x37d   : > { %v1887_v31 = vmax.f32 %v1885_v8, %v1886_v36  ;;  %v9060_v8 = vld [vmem:[#allocation39_spill] sm:$0xff]  ;;  %v7879_v36 = vadd.s32 %v2557_v33, %v2553_v3  ;;  %v2731_v4 = vshrl.u32 %v9062_v7, %v7853_v2  ;;  %v2846_v48 = vsel %vm2840_vm0, %v2843_v1, %v2845_v9 }
 0x37e   : > { %vm2452_vm3 = vc.u32 %v9060_v8, %v9059_v25  ;;  %v2730_v62 = vshll.u32 %v9065_v57, %v2718_v39  ;;  %v2722_v58 = vshrl.u32 %v6695_v13, %v7853_v2  ;;  %v2728_v14 = vshrl.u32 %v9065_v57, %v7853_v2 }
 0x37f   : > { %5989 = vpush %v1887_v31  ;;  %v2454_v35 = vsel %vm2452_vm3, %v2453_v60, %v9057_v47  ;;  %v2704_v31 = vand.u32 2147483647, %v9064_v21  ;;  %v2733_v11 = vshll.u32 %v9062_v7, %v2718_v39  ;;  %v2559_v45 = vadd.s32 536870912, %v7879_v36  ;;  %v9067_v7 = vld [vmem:[#allocation40_spill] sm:$0xff] }
 0x380   : > { %v2866_v23 = vsel %vm2864_vm14, %v2865_v37, %v7812_v12  ;;  %v2732_v47 = vor.u32 %v2731_v4, %v2730_v62  ;;  %v2721_v60 = vshll.u32 %v9043_v30, %v2718_v39  ;;  %v2724_v34 = vshll.u32 %v6695_v13, %v2718_v39 }
 0x381   : > { %v2727_v33 = vshll.u32 %v9050_v19, %v2718_v39  ;;  %v2735_v63 = vor.u32 %v2734_v51, %v2733_v11  ;;  %v2664_v3 = vshll.u32 %v7885_v10, 30  ;;  %v2862_v16 = vmul.u32 %v7798_v24, %v2846_v48 }
 0x382   : > { %v2711_v1 = vand.u32 8388607, %v2704_v31  ;;  %v2723_v12 = vor.u32 %v2722_v58, %v2721_v60  ;;  %v2726_v9 = vor.u32 %v2725_v29, %v2724_v34  ;;  %vm2739_vm0 = vcmp.lt.s32.totalorder %v7894_v50, 4 }
 0x383   : > { %v2729_v0 = vor.u32 %v2728_v14, %v2727_v33  ;;  %v2146_v13 = vadd.s32 %v2145_v55, %v2141_v17  ;;  %v2455_v37 = vadd.s32 %v2454_v35, %v2450_v27  ;;  %v2867_v19 = vadd.s32 %v2866_v23, %v2862_v16 }
 0x384   : > { %v2745_v39 = vsel %vm2739_vm0, %v2732_v47, 920167782  ;;  %v2328_v40 = vsel %vm2324_vm5, %v2308_v42, %v9067_v7  ;;  %v2330_v24 = vsel %vm2326_vm6, %v7561_v52, %v2329_v49  ;;  %v7927_v4 = vshrl.u32 %v2559_v45, 30 }
 0x385   : > { %v2749_v20 = vsel %vm2739_vm0, %v2735_v63, 1326507024  ;;  %v2350_v17 = vadd.s32 1, %v7864_v15  ;;  %v7937_v55 = vsub.s32 %v7815_v43, %v2664_v3  ;;  %v2712_v27 = vor.u32 8388608, %v2711_v1 }
 0x386   : > { %v2744_v52 = vsel %vm2736_vm15, %v2723_v12, %v2726_v9  ;;  %v2746_v35 = vsel %vm2738_vm1, %v2729_v0, %v2745_v39  ;;  %v2331_v51 = vsel %vm2325_vm11, %v2328_v40, %v2330_v24  ;;  %v2868_v48 = vadd.s32 536870912, %v2867_v19 }
 0x387   : > { %v2748_v57 = vsel %vm2736_vm15, %v2726_v9, %v2729_v0  ;;  %v2750_v62 = vsel %vm2738_vm1, %v2732_v47, %v2749_v20  ;;  %v2561_v43 = vshll.u32 %v7927_v4, 30  ;;  %vm2737_vm5 = vcmp.lt.s32.totalorder %v7894_v50, 2 }
 0x388   : > { %v7952_v58 = vshrl.u32 %v7823_v59, 30  ;;  %v2147_v29 = vadd.s32 536870912, %v2146_v13  ;;  %v2351_v54 = vsel %vm2349_vm7, %v2350_v17, %v7864_v15  ;;  %v2747_v14 = vsel %vm2737_vm5, %v2744_v52, %v2746_v35 }
 0x389   : > { %v2347_v11 = vmul.u32 %v7849_v28, %v2331_v51  ;;  %v2667_v44 = vsub.s32 0, %v7937_v55  ;;  %v2751_v42 = vsel %vm2737_vm5, %v2748_v57, %v2750_v62  ;;  %v2752_v45 = vshll.u32 %v2712_v27, 8 }
 0x38a   : > { %v2456_v23 = vadd.s32 536870912, %v2455_v37  ;;  %v7964_v59 = vshrl.u32 %v2868_v48, 30  ;;  %v7967_v60 = vsub.s32 %v7879_v36, %v2561_v43  ;;  %v2252_v33 = vshll.u32 %v7952_v58, 30 }
 0x38b   : > { %v2352_v47 = vadd.s32 %v2351_v54, %v2347_v11  ;;  %v7969_v34 = vmul.u32.u64.low %v2752_v45, %v2747_v14  ;;  %v7970_v15 = vmul.u32.u64.high %v2752_v45, %v2747_v14, %v7969_v34  ;;  %v7977_v49 = vshrl.u32 %v2147_v29, 30 }
 0x38c   : > { %v7974_v28 = vmul.u32.u64.low %v2752_v45, %v2751_v42  ;;  %v7975_v63 = vmul.u32.u64.high %v2752_v45, %v2751_v42, %v7974_v28  ;;  %v5184_v3 = vmin.u32 %v2667_v44, %v7937_v55  ;;  %v7980_v16 = vshrl.u32 %v2456_v23, 30 }
 0x38d   : > { %v2870_v1 = vshll.u32 %v7964_v59, 30  ;;  %v2353_v39 = vadd.s32 536870912, %v2352_v47  ;;  %v2564_v36 = vsub.s32 0, %v7967_v60  ;;  %v2741_v7 = vsel %vm2739_vm0, %v2729_v0, 2102212464 }
 0x38e   : > { %v7987_v40 = vsub.s32 %v7491_v32, %v2252_v33  ;;  %v2720_v24 = vshrl.u32 %v9043_v30, %v7853_v2  ;;  %v2149_v20 = vshll.u32 %v7977_v49, 30  ;;  %v2669_v17 = vclz %v5184_v3 }
 0x38f   : > { %v2458_v27 = vshll.u32 %v7980_v16, 30  ;;  %v7993_v52 = vsub.s32 %v2867_v19, %v2870_v1  ;;  %v2742_v51 = vsel %vm2738_vm1, %v2726_v9, %v2741_v7  ;;  %v7999_v0 = vshrl.u32 %v2353_v39, 30 }
 0x390   : > { %v2740_v35 = vsel %vm2736_vm15, %v2720_v24, %v2723_v12  ;;  %v5180_v32 = vmin.u32 %v2564_v36, %v7967_v60  ;;  %v2762_v48 = vadd.s32 1, %v7970_v15  ;;  %v2255_v30 = vsub.s32 0, %v7987_v40 }
 0x391   : > { %vm2761_vm6 = vc.u32 %v7975_v63, %v7969_v34  ;;  %v8006_v2 = vsub.s32 %v2146_v13, %v2149_v20  ;;  %v5185_v19 = vadd.s32 4294967294, %v2669_v17  ;;  %v2743_v12 = vsel %vm2737_vm5, %v2740_v35, %v2742_v51 }
 0x392   : > { %v8010_v57 = vsub.s32 %v2455_v37, %v2458_v27  ;;  %v2873_v9 = vsub.s32 0, %v7993_v52  ;;  %v2355_v62 = vshll.u32 %v7999_v0, 30  ;;  %v2566_v43 = vclz %v5180_v32 }
 0x393   : > { %v2763_v29 = vsel %vm2761_vm6, %v2762_v48, %v7970_v15  ;;  %v5168_v54 = vmin.u32 %v2255_v30, %v7987_v40  ;;  %v2759_v14 = vmul.u32 %v2752_v45, %v2743_v12  ;;  %v2152_v11 = vsub.s32 0, %v8006_v2 }
 0x394   : > { %vm5186_vm2 = vcmp.lt.s32.totalorder %v5185_v19, 0  ;;  %v2461_v13 = vsub.s32 0, %v8010_v57  ;;  %v5192_v50 = vmin.u32 %v2873_v9, %v7993_v52  ;;  %v8019_v37 = vsub.s32 %v2352_v47, %v2355_v62 }
 0x395   : > { %v2764_v44 = vadd.s32 %v2763_v29, %v2759_v14  ;;  %v5181_v42 = vadd.s32 4294967294, %v2566_v43  ;;  %v2257_v23 = vclz %v5168_v54  ;;  %v2672_v33 = vsel %vm5186_vm2, 0, %v5185_v19 }
 0x396   : > { %v5164_v28 = vmin.u32 %v2152_v11, %v8006_v2  ;;  %v5176_v15 = vmin.u32 %v2461_v13, %v8010_v57  ;;  %v2875_v3 = vclz %v5192_v50  ;;  %v2358_v45 = vsub.s32 0, %v8019_v37 }
 0x397   : > { %v2765_v1 = vadd.s32 536870912, %v2764_v44  ;;  %v2677_v39 = vsub.s32 4294967266, %v2672_v33  ;;  %vm5182_vm4 = vcmp.lt.s32.totalorder %v5181_v42, 0  ;;  %v5169_v36 = vadd.s32 4294967294, %v2257_v23 }
 0x398   : > { %v2154_v7 = vclz %v5164_v28  ;;  %v2463_v24 = vclz %v5176_v15  ;;  %v2569_v20 = vsel %vm5182_vm4, 0, %v5181_v42  ;;  %v5193_v17 = vadd.s32 4294967294, %v2875_v3 }
 0x399   : > { %v8024_v47 = vshrl.u32 %v2765_v1, 30  ;;  %v5172_v27 = vmin.u32 %v2358_v45, %v8019_v37  ;;  %v2678_v35 = vadd.s32 127, %v2677_v39  ;;  %vm5170_vm8 = vcmp.lt.s32.totalorder %v5169_v36, 0 }
 0x39a   : > { %v5165_v51 = vadd.s32 4294967294, %v2154_v7  ;;  %v2673_v32 = vsub.s32 32, %v2672_v33  ;;  %v2574_v48 = vsub.s32 4294967266, %v2569_v20  ;;  %v5177_v19 = vadd.s32 4294967294, %v2463_v24  ;;  %v9069_v7 = vld [vmem:[#allocation33_spill] sm:$0xff] }
 0x39b   : > { %vm5194_vm9 = vcmp.lt.s32.totalorder %v5193_v17, 0  ;;  %v2767_v12 = vshll.u32 %v8024_v47, 30  ;;  %v8031_v9 = vsel %vm5170_vm8, 0, %v5169_v36  ;;  %v2360_v62 = vclz %v5172_v27 }
 0x39c   : > { %v2657_v43 = vadd.s32 %v7688_v5, %v7683_v41  ;;  %v2679_v29 = vshll.u32 %v2678_v35, 23  ;;  %vm5166_vm10 = vcmp.lt.s32.totalorder %v5165_v51, 0  ;;  %v2575_v14 = vadd.s32 127, %v2574_v48 }
 0x39d   : > { %v8035_v11 = vsel %vm5194_vm9, 0, %v5193_v17  ;;  %v2265_v13 = vsub.s32 4294967266, %v8031_v9  ;;  %vm5178_vm12 = vcmp.lt.s32.totalorder %v5177_v19, 0  ;;  %v8038_v50 = vsub.s32 %v2764_v44, %v2767_v12  ;;  %v9068_v44 = vld [vmem:[#allocation31_spill] sm:$0xff] }
 0x39e   : > { %v2675_v54 = vshrl.u32 %v2657_v43, %v2673_v32  ;;  %v5173_v42 = vadd.s32 4294967294, %v2360_v62  ;;  %v2674_v23 = vshll.u32 %v7937_v55, %v2672_v33  ;;  %v2680_v28 = vor.u32 4788187, %v2679_v29 }
 0x39f   : > { %v2570_v15 = vsub.s32 32, %v2569_v20  ;;  %v2261_v3 = vsub.s32 32, %v8031_v9  ;;  %v8042_v1 = vsel %vm5166_vm10, 0, %v5165_v51  ;;  %v2883_v41 = vsub.s32 4294967266, %v8035_v11 }
 0x3a0   : > { %v8045_v5 = vsel %vm5178_vm12, 0, %v5177_v19  ;;  %v2676_v45 = vor.u32 %v2675_v54, %v2674_v23  ;;  %v2554_v39 = vadd.s32 %v7742_v46, %v7755_v53  ;;  %v2576_v36 = vshll.u32 %v2575_v14, 23 }
 0x3a1   : > { %v2245_v24 = vadd.s32 %v9069_v7, %v9068_v44  ;;  %v2266_v17 = vadd.s32 127, %v2265_v13  ;;  %v2770_v55 = vsub.s32 0, %v8038_v50  ;;  %v2162_v33 = vsub.s32 4294967266, %v8042_v1 }
 0x3a2   : > { %vm5174_vm11 = vcmp.lt.s32.totalorder %v5173_v42, 0  ;;  %v2681_v27 = vand.u32 2147483647, %v2680_v28  ;;  %v2572_v35 = vshrl.u32 %v2554_v39, %v2570_v15  ;;  %v2262_v51 = vshll.u32 %v7987_v40, %v8031_v9 }
 0x3a3   : > { %v2142_v32 = vadd.s32 %v7458_v6, %v7487_v18  ;;  %v2471_v46 = vsub.s32 4294967266, %v8045_v5  ;;  %v2884_v53 = vadd.s32 127, %v2883_v41  ;;  %v2263_v48 = vshrl.u32 %v2245_v24, %v2261_v3 }
 0x3a4   : > { %v2683_v19 = vcvt.s32.f32 %v2676_v45  ;;  %v2571_v12 = vshll.u32 %v7967_v60, %v2569_v20  ;;  %v2577_v62 = vor.u32 4788187, %v2576_v36  ;;  %v2267_v43 = vshll.u32 %v2266_v17, 23 }
 0x3a5   : > { %v8059_v29 = vsel %vm5174_vm11, 0, %v5173_v42  ;;  %v2879_v54 = vsub.s32 32, %v8035_v11  ;;  %v5188_v14 = vmin.u32 %v2770_v55, %v8038_v50  ;;  %v2158_v40 = vsub.s32 32, %v8042_v1 }
 0x3a6   : > { %v2163_v9 = vadd.s32 127, %v2162_v33  ;;  %v2684_v6 = vmul.f32 %v2683_v19, %v2681_v27  ;;  %v2573_v18 = vor.u32 %v2572_v35, %v2571_v12  ;;  %v2472_v23 = vadd.s32 127, %v2471_v46 }
 0x3a7   : > { %v2863_v28 = vadd.s32 %v7811_v38, %v7820_v26  ;;  %v2885_v15 = vshll.u32 %v2884_v53, 23  ;;  %v2368_v20 = vsub.s32 4294967266, %v8059_v29  ;;  %v2578_v42 = vand.u32 2147483647, %v2577_v62 }
 0x3a8   : > { %v2772_v45 = vclz %v5188_v14  ;;  %v2467_v36 = vsub.s32 32, %v8045_v5  ;;  %v2685_v44 = vxor.u32 2147483648, %v2684_v6  ;;  %v2580_v38 = vcvt.s32.f32 %v2573_v18 }
 0x3a9   : > { %v2881_v41 = vshrl.u32 %v2863_v28, %v2879_v54  ;;  %v2264_v7 = vor.u32 %v2263_v48, %v2262_v51  ;;  %v2164_v24 = vshll.u32 %v2163_v9, 23  ;;  %v2880_v17 = vshll.u32 %v7993_v52, %v8035_v11 }
 0x3aa   : > { %v2886_v55 = vor.u32 4788187, %v2885_v15  ;;  %v2268_v33 = vor.u32 4788187, %v2267_v43  ;;  %v2451_v27 = vadd.s32 %v9059_v25, %v9060_v8  ;;  %v2369_v35 = vadd.s32 127, %v2368_v20 }
 0x3ab   : > { %v2581_v46 = vmul.f32 %v2580_v38, %v2578_v42  ;;  %v2473_v53 = vshll.u32 %v2472_v23, 23  ;;  %v2882_v19 = vor.u32 %v2881_v41, %v2880_v17  ;;  %v5189_v12 = vadd.s32 4294967294, %v2772_v45 }
 0x3ac   : > { %v2160_v62 = vshrl.u32 %v2142_v32, %v2158_v40  ;;  %v2469_v54 = vshrl.u32 %v2451_v27, %v2467_v36  ;;  %v2364_v51 = vsub.s32 32, %v8059_v29  ;;  %v2159_v11 = vshll.u32 %v8006_v2, %v8042_v1 }
 0x3ad   : > { %v2165_v48 = vor.u32 4788187, %v2164_v24  ;;  %v2468_v25 = vshll.u32 %v8010_v57, %v8045_v5  ;;  %v2887_v8 = vand.u32 2147483647, %v2886_v55  ;;  %v2348_v43 = vadd.s32 %v7863_v56, %v7870_v22  ;;  %v9074_v22 = vld [vmem:[#allocation35_spill] sm:$0xff] }
 0x3ae   : > { %v2370_v14 = vshll.u32 %v2369_v35, 23  ;;  %v2474_v9 = vor.u32 4788187, %v2473_v53  ;;  %vm5190_vm7 = vcmp.lt.s32.totalorder %v5189_v12, 0  ;;  %v2269_v57 = vand.u32 2147483647, %v2268_v33 }
 0x3af   : > { %v2161_v1 = vor.u32 %v2160_v62, %v2159_v11  ;;  %v2470_v5 = vor.u32 %v2469_v54, %v2468_v25  ;;  %v2366_v18 = vshrl.u32 %v2348_v43, %v2364_v51  ;;  %v2365_v56 = vshll.u32 %v8019_v37, %v8059_v29  ;;  %v9078_v51 = vld [vmem:[#allocation27_spill] sm:$0xff]  ;;  %v9080_v25 = vld [vmem:[#allocation28_spill] sm:$0xff] }
 0x3b0   : > { %s5990_s17 = spop %5989  ;;  %vm2500_vm15 = vcmp.lt.s32.totalorder %v9074_v22, 0  ;;  %v2687_v28 = vsub.s32 4, %v7885_v10  ;;  %v2371_v15 = vor.u32 4788187, %v2370_v14  ;;  %v8102_v20 = vsel %vm5190_vm7, 0, %v5189_v12 }
 0x3b1   : > { %v8027_v30 = vstv %s5990_s17  ;;  %v2271_v42 = vcvt.s32.f32 %v2264_v7  ;;  %v2475_v41 = vand.u32 2147483647, %v2474_v9  ;;  %v2168_v45 = vcvt.s32.f32 %v2161_v1  ;;  %s320_s17 = sld [smem:[#allocation3 + %s319_s28]]  ;;  %s6697_s28 = smov [#allocation13]  }
 0x3b2   : > { %6401 = vrsqrt.f32 %v8027_v30  ;;  %vm1892_vm13 = vcmp.eq.f32.partialorder %v8027_v30, inf  ;;  %v1895_v3 = vand.u32 2147483648, %v8027_v30  ;;  %vm1894_vm3 = vcmp.eq.f32.partialorder %v8027_v30, 0.0  ;;  %s6610_s29 = sshll.u32 %s6697_s28, 4  ;;  %s6611_s29 = int_to_ptr.vmem [resolvable:$false] %s6610_s29 }
 0x3b3   : > { %v2367_v36 = vor.u32 %v2366_v18, %v2365_v56  ;;  %v9075_v37 = vand.u32 2147483647, %v9074_v22  ;;  %v2780_v38 = vsub.s32 4294967266, %v8102_v20  ;;  %v2272_v24 = vmul.f32 %v2271_v42, %v2269_v57 }
 0x3b4   : > { %v2372_v17 = vand.u32 2147483647, %v2371_v15  ;;  %v2893_v55 = vsub.s32 4, %v7964_v59  ;;  %vm2809_vm5 = vcmp.lt.s32.totalorder %v7465_v61, 0  ;;  %vm9010_vm6 = vcmp.lt.s32.totalorder %v9078_v51, 0 }
 0x3b5   : > { %vm8106_vm1 = vcmp.le.f32.partialorder %v9075_v37, 0.7853982  ;;  %v2374_v35 = vcvt.s32.f32 %v2367_v36  ;;  %v2273_v12 = vxor.u32 2147483648, %v2272_v24  ;;  %v2776_v11 = vsub.s32 32, %v8102_v20 }
 0x3b6   : > { %v2894_v54 = vsel %vm2809_vm5, %v2893_v55, %v7964_v59  ;;  %vm9009_vm4 = vcmp.lt.s32.totalorder %v9080_v25, 0  ;;  %v2777_v15 = vshll.u32 %v8038_v50, %v8102_v20  ;;  %vm2706_vm10 = vcmp.lt.s32.totalorder %v9064_v21, 0 }
 0x3b7   : > { %v2375_v62 = vmul.f32 %v2374_v35, %v2372_v17  ;;  %v8136_v9 = vsel %vm9010_vm6, %v2273_v12, %v2272_v24  ;;  %vm8158_vm12 = vcmp.le.f32.partialorder %v2704_v31, 0.7853982 }
 0x3b9   : > { %v2376_v57 = vxor.u32 2147483648, %v2375_v62 }
 0x3bf   : > { %v6402_v13 = vpop.eup %6401 }
 0x3c0   : > { %v1891_v60 = vmul.f32 %v6402_v13, %v8027_v30  ;;  %v2582_v13 = vxor.u32 2147483648, %v2581_v46 }
 0x3c2   : > { %v1893_v39 = vsel %vm1892_vm13, %v8027_v30, %v1891_v60  ;;  %v9070_v30 = vld [vmem:[#allocation32_spill] sm:$0xff]  ;;  %v2583_v60 = vsel %vm2500_vm15, %v2582_v13, %v2581_v46  ;;  %v2760_v13 = vadd.s32 %v7969_v34, %v7975_v63  ;;  %v2790_v63 = vsub.s32 4, %v8024_v47 }
 0x3c3   : > { %v1896_v26 = vsel %vm1894_vm3, %v1895_v3, %v1893_v39  ;;  %vm2603_vm14 = vcmp.lt.s32.totalorder %v9070_v30, 0  ;;  %v9071_v32 = vand.u32 2147483647, %v9070_v30  ;;  %v2166_v3 = vand.u32 2147483647, %v2165_v48 }
 0x3c4   : > { %5991 = vpush %v1896_v26  ;;  %v2686_v52 = vsel %vm2603_vm14, %v2685_v44, %v2684_v6  ;;  %v2889_v6 = vcvt.s32.f32 %v2882_v19  ;;  %v2477_v39 = vcvt.s32.f32 %v2470_v5  ;;  %v2688_v26 = vsel %vm2603_vm14, %v2687_v28, %v7885_v10 }
 0x3c5   : > { %vm8089_vm0 = vcmp.le.f32.partialorder %v9071_v32, 0.7853982  ;;  %v2586_v7 = vsel %vm8106_vm1, %v9074_v22, %v2583_v60  ;;  %v2169_v33 = vmul.f32 %v2168_v45, %v2166_v3  ;;  %v2781_v19 = vadd.s32 127, %v2780_v38 }
 0x3c6   : > { %v2689_v2 = vsel %vm8089_vm0, %v9070_v30, %v2686_v52  ;;  %v2890_v23 = vmul.f32 %v2889_v6, %v2887_v8  ;;  %v2478_v27 = vmul.f32 %v2477_v39, %v2475_v41  ;;  %v2690_v46 = vsel %vm8089_vm0, 0, %v2688_v26  ;;  %v9081_v6 = vld [vmem:[#allocation29_spill] sm:$0xff]  ;;  %v1916_v41 = vld [vmem:[#allocation7 + $0x140] sm:$0xff] }
 0x3c7   : > { %6403 = vcosq.f32 %v2689_v2  ;;  %v2584_v10 = vsub.s32 4, %v7927_v4  ;;  %v2170_v52 = vxor.u32 2147483648, %v2169_v33  ;;  %v9079_v48 = vand.u32 2147483647, %v7465_v61 }
 0x3c8   : > { %6405 = vsinq.f32 %v2689_v2  ;;  %v2891_v44 = vxor.u32 2147483648, %v2890_v23  ;;  %v2479_v8 = vxor.u32 2147483648, %v2478_v27  ;;  %v3531_v14 = vadd.s32 3, %v2690_v46  ;;  %v9082_v2 = vld [vmem:[#allocation30_spill] sm:$0xff] }
 0x3c9   : > { %6407 = vcosq.f32 %v2586_v7  ;;  %vm2808_vm2 = vcmp.le.f32.partialorder %v9079_v48, 0.7853982  ;;  %v2782_v32 = vshll.u32 %v2781_v19, 23  ;;  %v2585_v59 = vsel %vm2500_vm15, %v2584_v10, %v7927_v4 }
 0x3ca   : > { %v2892_v53 = vsel %vm2809_vm5, %v2891_v44, %v2890_v23  ;;  %6409 = vsinq.f32 %v2586_v7  ;;  %v2896_v40 = vsel %vm2808_vm2, 0, %v2894_v54  ;;  %vm2397_vm8 = vcmp.lt.s32.totalorder %v9081_v6, 0 }
 0x3cb   : > { %v2895_v43 = vsel %vm2808_vm2, %v7465_v61, %v2892_v53  ;;  %vm2294_vm9 = vcmp.lt.s32.totalorder %v9082_v2, 0  ;;  %v8142_v5 = vsel %vm9009_vm4, %v2170_v52, %v2169_v33  ;;  %v2778_v34 = vshrl.u32 %v2760_v13, %v2776_v11 }
 0x3cc   : > { %6411 = vcosq.f32 %v2895_v43  ;;  %v3739_v4 = vadd.s32 3, %v2896_v40  ;;  %v3532_v56 = vand.u32 3, %v3531_v14  ;;  %v2587_v23 = vsel %vm8106_vm1, 0, %v2585_v59 }
 0x3cd   : > { %6413 = vsinq.f32 %v2895_v43  ;;  %v2480_v28 = vsel %vm2397_vm8, %v2479_v8, %v2478_v27  ;;  %v2783_v60 = vor.u32 4788187, %v2782_v32  ;;  %v2694_v42 = vand.u32 3, %v2690_v46 }
 0x3ce   : > { %v8153_v3 = vsel %vm2294_vm9, %v2376_v57, %v2375_v62  ;;  %v2779_v39 = vor.u32 %v2778_v34, %v2777_v15  ;;  %v2791_v50 = vsel %vm2706_vm10, %v2790_v63, %v8024_v47  ;;  %v3427_v36 = vadd.s32 3, %v2587_v23 }
 0x3cf   : > { %v8165_v37 = vand.u32 3, %v3739_v4  ;;  %v8167_v29 = vand.u32 3, %v2896_v40  ;;  %vm3534_vm11 = vcmp.eq.s32.totalorder %v3532_v56, 0  ;;  %v2481_v44 = vsub.s32 4, %v7980_v16 }
 0x3d0   : > { %v2784_v38 = vand.u32 2147483647, %v2783_v60  ;;  %vm3537_vm13 = vcmp.eq.s32.totalorder %v3532_v56, 2  ;;  %vm2696_vm3 = vcmp.eq.s32.totalorder %v2694_v42, 0  ;;  %vm2699_vm14 = vcmp.eq.s32.totalorder %v2694_v42, 2 }
 0x3d1   : > { %v2793_v47 = vsel %vm8158_vm12, 0, %v2791_v50  ;;  %v2591_v17 = vand.u32 3, %v2587_v23  ;;  %v2786_v55 = vcvt.s32.f32 %v2779_v39  ;;  %v3428_v35 = vand.u32 3, %v3427_v36  ;;  %v1921_v39 = vld [vmem:[#allocation7 + $0x168] sm:$0xff] }
 0x3d2   : > { %vm2693_vm0 = vweird.f32 %v9070_v30  ;;  %vm3533_vm7 = vcmp.lt.s32.totalorder %v3532_v56, 2  ;;  %v2482_v53 = vsel %vm2397_vm8, %v2481_v44, %v7980_v16  ;;  %vm2695_vm15 = vcmp.lt.s32.totalorder %v2694_v42, 2  ;;  %v1936_v42 = vld [vmem:[#allocation7 + $0x190] sm:$0xff] }
 0x3d3   : > { %v2787_v19 = vmul.f32 %v2786_v55, %v2784_v38  ;;  %v9085_v12 = vand.u32 2147483647, %v9081_v6  ;;  %vm3745_vm5 = vcmp.eq.s32.totalorder %v8165_v37, 2  ;;  %vm2905_vm2 = vcmp.eq.s32.totalorder %v8167_v29, 2 }
 0x3d4   : > { %v6404_v1 = vpop.eup %6403  ;;  %v3635_v54 = vadd.s32 3, %v2793_v47  ;;  %v8191_v52 = vand.u32 3, %v2793_v47  ;;  %vm2590_vm8 = vweird.f32 %v9074_v22  ;;  %vm2902_vm4 = vcmp.eq.s32.totalorder %v8167_v29, 0  ;;  %v1940_v47 = vld [vmem:[#allocation7 + $0x1b0] sm:$0xff] }
 0x3d5   : > { %v6406_v18 = vpop.eup %6405  ;;  %v2700_v45 = vxor.u32 2147483648, %v6404_v1  ;;  %vm8184_vm1 = vcmp.le.f32.partialorder %v9085_v12, 0.7853982  ;;  %vm2593_vm6 = vcmp.eq.s32.totalorder %v2591_v17, 0  ;;  %v2788_v40 = vxor.u32 2147483648, %v2787_v19 }
 0x3d6   : > { %v2697_v20 = vxor.u32 2147483648, %v6406_v18  ;;  %v6408_v31 = vpop.eup %6407  ;;  %v2484_v48 = vsel %vm8184_vm1, 0, %v2482_v53  ;;  %v2483_v13 = vsel %vm8184_vm1, %v9081_v6, %v2480_v28  ;;  %v8204_v34 = vand.u32 3, %v3635_v54  ;;  %v1920_v53 = vld [vmem:[#allocation7 + $0x160] sm:$0xff]  ;;  %v1917_v54 = vld [vmem:[#allocation7 + $0x148] sm:$0xff] }
 0x3d7   : > { %v6410_v26 = vpop.eup %6409  ;;  %v3539_v7 = vsel %vm3537_vm13, %v2700_v45, %v6406_v18  ;;  %v2701_v24 = vsel %vm2699_vm14, %v2700_v45, %v6406_v18  ;;  %v2597_v46 = vxor.u32 2147483648, %v6408_v31  ;;  %vm3433_vm13 = vcmp.eq.s32.totalorder %v3428_v35, 2 }
 0x3d8   : > { %v3536_v33 = vsel %vm3534_vm11, %v6404_v1, %v2697_v20  ;;  %v2698_v27 = vsel %vm2696_vm3, %v6404_v1, %v2697_v20  ;;  %v2594_v10 = vxor.u32 2147483648, %v6410_v26  ;;  %vm3430_vm11 = vcmp.eq.s32.totalorder %v3428_v35, 0  ;;  %v1939_v20 = vld [vmem:[#allocation7 + $0x1a8] sm:$0xff] }
 0x3d9   : > { %v3540_v16 = vsel %vm3533_vm7, %v3536_v33, %v3539_v7  ;;  %v2702_v11 = vsel %vm2695_vm15, %v2698_v27, %v2701_v24  ;;  %vm2596_vm3 = vcmp.eq.s32.totalorder %v2591_v17, 2  ;;  %v6412_v8 = vpop.eup %6411  ;;  %vm3742_vm14 = vcmp.eq.s32.totalorder %v8165_v37, 0  ;;  %v1941_v33 = vld [vmem:[#allocation7 + $0x1b8] sm:$0xff] }
 0x3da   : > { %v3435_v43 = vsel %vm3433_vm13, %v2597_v46, %v6410_v26  ;;  %v2598_v14 = vsel %vm2596_vm3, %v2597_v46, %v6410_v26  ;;  %v6414_v32 = vpop.eup %6413  ;;  %v3432_v59 = vsel %vm3430_vm11, %v6408_v31, %v2594_v10  ;;  %v2595_v57 = vsel %vm2593_vm6, %v6408_v31, %v2594_v10  ;;  %v1922_v26 = vld [vmem:[#allocation7 + $0x170] sm:$0xff]  ;;  %v1965_v10 = vld [vmem:[#allocation7 + $0x1e8] sm:$0xff] }
 0x3db   : > { %v2378_v1 = vsub.s32 4, %v7999_v0  ;;  %v8208_v63 = vsel %vm2693_vm0, nan, %v3540_v16  ;;  %vm3429_vm7 = vcmp.lt.s32.totalorder %v3428_v35, 2  ;;  %v3323_v18 = vadd.s32 3, %v2484_v48 }
 0x3dc   : > { %v2906_v4 = vxor.u32 2147483648, %v6412_v8  ;;  %v8212_v56 = vsel %vm2693_vm0, nan, %v2702_v11  ;;  %vm2592_vm15 = vcmp.lt.s32.totalorder %v2591_v17, 2  ;;  %6415 = vcosq.f32 %v2483_v13 }
 0x3dd   : > { %9088 = vst [vmem:[#allocation37_spill] sm:$0xff] %v8212_v56  ;;  %v2903_v23 = vxor.u32 2147483648, %v6414_v32  ;;  %v3436_v28 = vsel %vm3429_vm7, %v3432_v59, %v3435_v43  ;;  %v2599_v15 = vsel %vm2592_vm15, %v2595_v57, %v2598_v14  ;;  %v9089_v60 = vand.u32 2147483647, %v9082_v2  ;;  %v1919_v14 = vld [vmem:[#allocation7 + $0x158] sm:$0xff]  ;;  %v1918_v57 = vld [vmem:[#allocation7 + $0x150] sm:$0xff] }
 0x3de   : > { %v2789_v45 = vsel %vm2706_vm10, %v2788_v40, %v2787_v19  ;;  %v1924_v50 = vstv %s8174_s11  ;;  %v8224_v30 = vstv %s8180_s16  ;;  %v2379_v36 = vsel %vm2294_vm9, %v2378_v1, %v7999_v0  ;;  %v1938_v19 = vld [vmem:[#allocation7 + $0x1a0] sm:$0xff] }
 0x3df   : > { %vm8216_vm6 = vcmp.le.f32.partialorder %v9089_v60, 0.7853982  ;;  %6417 = vsinq.f32 %v2483_v13  ;;  %v8229_v44 = vand.u32 3, %v3323_v18  ;;  %v8231_v31 = vand.u32 3, %v2484_v48 }
 0x3e0   : > { %v2380_v38 = vsel %vm8216_vm6, %v9082_v2, %v8153_v3  ;;  %v8239_v7 = vsel %vm3745_vm5, %v2906_v4, %v6414_v32  ;;  %v8243_v0 = vsel %vm2905_vm2, %v2906_v4, %v6414_v32  ;;  %v8247_v24 = vsel %vm2590_vm8, nan, %v3436_v28  ;;  %v1923_v3 = vld [vmem:[#allocation7 + $0x178] sm:$0xff] }
 0x3e1   : > { %9092 = vst [vmem:[#allocation42_spill] sm:$0xff] %v8247_v24  ;;  %v8251_v17 = vsel %vm2590_vm8, nan, %v2599_v15  ;;  %v1930_v55 = vmul.f32 %v1924_v50, %v1921_v39  ;;  %v1948_v27 = vmul.f32 %v8224_v30, %v1939_v20  ;;  %v2792_v35 = vsel %vm8158_vm12, %v9064_v21, %v2789_v45  ;;  %v1937_v32 = vld [vmem:[#allocation7 + $0x198] sm:$0xff]  ;;  %v1964_v45 = vld [vmem:[#allocation7 + $0x1e0] sm:$0xff] }
 0x3e2   : > { %9093 = vst [vmem:[#allocation38_spill] sm:$0xff] %v8251_v17  ;;  %v8259_v46 = vsel %vm8216_vm6, 0, %v2379_v36  ;;  %v8262_v12 = vstv %s8201_s18  ;;  %v8266_v22 = vsel %vm3742_vm14, %v6412_v8, %v2903_v23  ;;  %v8270_v62 = vsel %vm2902_vm4, %v6412_v8, %v2903_v23  ;;  %v1966_v8 = vld [vmem:[#allocation7 + $0x1f0] sm:$0xff]  ;;  %v1967_v23 = vld [vmem:[#allocation7 + $0x1f8] sm:$0xff]  ;;  %s302_s18 = scalar_lea.vmem [#allocation13], %s5113_s13 }
 0x3e3   : > { %6419 = vcosq.f32 %v2380_v38  ;;  %v1931_v16 = vmul.f32 %v1924_v50, %v1922_v26  ;;  %v1949_v11 = vmul.f32 %v8224_v30, %v1940_v47  ;;  %v9094_v48 = vand.u32 2147483647, %v9078_v51 }
 0x3e4   : > { %6421 = vsinq.f32 %v2380_v38  ;;  %v1932_v13 = vmul.f32 %v1924_v50, %v1923_v3  ;;  %v1950_v40 = vmul.f32 %v8224_v30, %v1941_v33  ;;  %v1929_v1 = vmul.f32 %v1924_v50, %v1920_v53  ;;  %v1935_v33 = vld [vmem:[#allocation7 + $0x188] sm:$0xff] }
 0x3e5   : > { %vm8275_vm9 = vcmp.le.f32.partialorder %v9094_v48, 0.7853982  ;;  %6423 = vcosq.f32 %v2792_v35  ;;  %v1947_v18 = vmul.f32 %v8224_v30, %v1938_v19  ;;  %v1956_v4 = vadd.f32 %v1948_v27, %v1930_v55  ;;  %v1934_v55 = vld [vmem:[#allocation7 + $0x180] sm:$0xff] }
 0x3e6   : > { %v1974_v28 = vmul.f32 %v8262_v12, %v1965_v10  ;;  %v8283_v15 = vmul.f32 %v1924_v50, %v1916_v41  ;;  %v1926_v60 = vmul.f32 %v1924_v50, %v1917_v54  ;;  %6425 = vsinq.f32 %v2792_v35  ;;  %v1963_v54 = vld [vmem:[#allocation7 + $0x1d8] sm:$0xff] }
 0x3e7   : > { %v8289_v39 = vsel %vm8275_vm9, %v9078_v51, %v8136_v9  ;;  %v1928_v20 = vmul.f32 %v1924_v50, %v1919_v14  ;;  %v1946_v36 = vmul.f32 %v8224_v30, %v1937_v32  ;;  %v1957_v38 = vadd.f32 %v1949_v11, %v1931_v16  ;;  %v9100_v11 = vld [vmem:[#allocation19_spill] sm:$0xff]  ;;  %v9102_v32 = vld [vmem:[#allocation20_spill] sm:$0xff] }
 0x3e8   : > { %v1975_v26 = vmul.f32 %v8262_v12, %v1966_v8  ;;  %v1927_v3 = vmul.f32 %v1924_v50, %v1918_v57  ;;  %v1958_v27 = vadd.f32 %v1950_v40, %v1932_v13  ;;  %v1976_v35 = vmul.f32 %v8262_v12, %v1967_v23  ;;  %v9101_v14 = vld [vmem:[#allocation23_spill] sm:$0xff]  ;;  %v9103_v8 = vld [vmem:[#allocation26_spill] sm:$0xff]  ;;  %v1962_v23 = vld [vmem:[#allocation7 + $0x1d0] sm:$0xff] }
 0x3e9   : > { %v9097_v53 = vand.u32 2147483647, %v9080_v25  ;;  %v8302_v19 = vpop.eup %6415  ;;  %v1945_v10 = vmul.f32 %v8224_v30, %v1936_v42  ;;  %v1955_v41 = vadd.f32 %v1947_v18, %v1929_v1  ;;  %v1973_v16 = vmul.f32 %v8262_v12, %v1964_v45 }
 0x3ea   : > { %v1982_v50 = vadd.f32 %v1974_v28, %v1956_v4  ;;  %v1943_v42 = vmul.f32 %v8224_v30, %v1934_v55  ;;  %v1944_v1 = vmul.f32 %v8224_v30, %v1935_v33  ;;  %v1954_v18 = vadd.f32 %v1946_v36, %v1928_v20  ;;  %v9104_v28 = vld [vmem:[#allocation25_spill] sm:$0xff]  ;;  %v9105_v55 = vld [vmem:[#allocation22_spill] sm:$0xff]  ;;  %v1960_v36 = vld [vmem:[#allocation7 + $0x1c0] sm:$0xff] }
 0x3eb   : > { %vm8298_vm4 = vcmp.le.f32.partialorder %v9097_v53, 0.7853982  ;;  %v1983_v45 = vadd.f32 %v1975_v26, %v1957_v38  ;;  %v1972_v59 = vmul.f32 %v8262_v12, %v1963_v54  ;;  %v1971_v56 = vmul.f32 %v8262_v12, %v1962_v23  ;;  %v9107_v23 = vld [vmem:[#allocation21_spill] sm:$0xff] }
 0x3ec   : > { %v8316_v4 = vpop.eup %6417  ;;  %v1981_v38 = vadd.f32 %v1973_v16, %v1955_v41  ;;  %vm3741_vm10 = vcmp.lt.s32.totalorder %v8165_v37, 2  ;;  %vm2901_vm12 = vcmp.lt.s32.totalorder %v8167_v29, 2  ;;  %v1952_v54 = vadd.f32 %v1944_v1, %v1926_v60 }
 0x3ed   : > { %6427 = vcosq.f32 %v8289_v39  ;;  %v1980_v41 = vadd.f32 %v1972_v59, %v1954_v18  ;;  %vm3326_vm0 = vcmp.eq.s32.totalorder %v8229_v44, 0  ;;  %vm3329_vm1 = vcmp.eq.s32.totalorder %v8229_v44, 2 }
 0x3ee   : > { %v1951_v60 = vadd.f32 %v1943_v42, %v8283_v15  ;;  %vm2899_vm5 = vweird.f32 %v7465_v61  ;;  %vm2493_vm2 = vcmp.eq.s32.totalorder %v8231_v31, 2  ;;  %vm2490_vm8 = vcmp.eq.s32.totalorder %v8231_v31, 0 }
 0x3ef   : > { %6429 = vsinq.f32 %v8289_v39  ;;  %vm3325_vm11 = vcmp.lt.s32.totalorder %v8229_v44, 2  ;;  %vm9109_vm13 = vcmp.lt.s32.totalorder %v9078_v51, 0  ;;  %v3748_v39 = vsel %vm3741_vm10, %v8266_v22, %v8239_v7 }
 0x3f0   : > { %v8326_v33 = vpop.eup %6419  ;;  %vm2489_vm3 = vcmp.lt.s32.totalorder %v8231_v31, 2  ;;  %vm2487_vm14 = vweird.f32 %v9081_v6  ;;  %vm3638_vm7 = vcmp.eq.s32.totalorder %v8204_v34, 0  ;;  %vm3641_vm15 = vcmp.eq.s32.totalorder %v8204_v34, 2 }
 0x3f1   : > { %vm2799_vm6 = vcmp.eq.s32.totalorder %v8191_v52, 0  ;;  %vm2802_vm10 = vcmp.eq.s32.totalorder %v8191_v52, 2 }
 0x3f5   : > { %s5992_s20 = spop %5991 }
 0x3f6   : > { %v8293_v47 = vstv %s5992_s20  ;;  %s4997_s20 = sshll.u32 %s302_s18, 4  ;;  %s8902_s20 = int_to_ptr.vmem [resolvable:$true] %s4997_s20 }
 0x3f7   : > { %v1903_v48 = vsub.f32 %v9100_v11, %v8293_v47  ;;  %v1904_v13 = vsub.f32 %v9101_v14, %v8293_v47  ;;  %v1905_v40 = vsub.f32 %v9102_v32, %v8293_v47  ;;  %v1906_v57 = vsub.f32 %v9103_v8, %v8293_v47  ;;  %v1961_v14 = vld [vmem:[#allocation7 + $0x1c8] sm:$0xff]  ;;  %p6613_p5 = scmp.lt.s32.totalorder %s8902_s20, %s6611_s29 }
 0x3f8   : > { %v1902_v53 = vsub.f32 %v9104_v28, %v8293_v47  ;;  %v1984_v32 = vadd.f32 %v1976_v35, %v1958_v27  ;;  %v1953_v8 = vadd.f32 %v1945_v10, %v1927_v3  ;;  %v1901_v30 = vsub.f32 %v9105_v55, %v8293_v47  ;;  %v8330_v3 = vpop.eup %6421  ;;  %v9106_v10 = vld [vmem:[#allocation24_spill] sm:$0xff] }
 0x3f9   : > { %v1912_v11 = vmul.f32 1.4500796e-05, %v1904_v13  ;;  %v1913_v17 = vmul.f32 1.4500796e-05, %v1905_v40  ;;  %v1914_v24 = vmul.f32 1.4500796e-05, %v1906_v57  ;;  %v1970_v27 = vmul.f32 %v8262_v12, %v1961_v14 }
 0x3fa   : > { %v1911_v20 = vmul.f32 1.4500796e-05, %v1903_v48  ;;  %v1900_v48 = vsub.f32 %v9106_v10, %v8293_v47  ;;  %v1910_v13 = vmul.f32 1.4500796e-05, %v1902_v53  ;;  %v1979_v40 = vadd.f32 %v1971_v56, %v1953_v8 }
 0x3fb   : > { %v1990_v26 = vsub.f32 %v1912_v11, %v1982_v50  ;;  %v1991_v35 = vsub.f32 %v1913_v17, %v1983_v45  ;;  %v1992_v16 = vsub.f32 %v1914_v24, %v1984_v32  ;;  %v8336_v50 = vpop.eup %6423  ;;  %v1969_v17 = vmul.f32 %v8262_v12, %v1960_v36 }
 0x3fc   : > { %v2174_v57 = vsel %vm8298_vm4, %v9080_v25, %v8142_v5  ;;  %v1899_v59 = vsub.f32 %v9107_v23, %v8293_v47  ;;  %v1909_v24 = vmul.f32 1.4500796e-05, %v1901_v30  ;;  %v1989_v1 = vsub.f32 %v1911_v20, %v1981_v38  ;;  %v8348_v45 = vpop.eup %6425 }
 0x3fd   : > { %v2063_v18 = vmul.f32 1.442695, %v1990_v26  ;;  %v2065_v15 = vmul.f32 1.442695, %v1991_v35  ;;  %v2491_v56 = vxor.u32 2147483648, %v8316_v4  ;;  %v2494_v12 = vxor.u32 2147483648, %v8302_v19  ;;  %v8401_v35 = vpop.eup %6427 }
 0x3fe   : > { %v1908_v5 = vmul.f32 1.4500796e-05, %v1900_v48  ;;  %v1978_v47 = vadd.f32 %v1970_v27, %v1952_v54  ;;  %v1988_v42 = vsub.f32 %v1910_v13, %v1980_v41  ;;  %v2067_v28 = vmul.f32 1.442695, %v1992_v16 }
 0x3ff   : > { %v1977_v53 = vadd.f32 %v1969_v17, %v1951_v60  ;;  %v9108_v11 = vsub.s32 4, %v7952_v58  ;;  %v2172_v32 = vsub.s32 4, %v7977_v49  ;;  %6431 = vcosq.f32 %v2174_v57 }
 0x400   : > { %v1907_v8 = vmul.f32 1.4500796e-05, %v1899_v59  ;;  %v1987_v55 = vsub.f32 %v1909_v24, %v1979_v40  ;;  %v2061_v30 = vmul.f32 1.442695, %v1989_v1  ;;  %6433 = vpow2.f32 %v2063_v18 }
 0x401   : > { %v2276_v14 = vsel %vm9109_vm13, %v9108_v11, %v7952_v58  ;;  %6435 = vpow2.f32 %v2065_v15  ;;  %v2908_v20 = vsel %vm2901_vm12, %v8270_v62, %v8243_v0  ;;  %v3219_v58 = vadd.s32 3, %v8259_v46 }
 0x402   : > { %v1986_v36 = vsub.f32 %v1908_v5, %v1978_v47  ;;  %v2059_v38 = vmul.f32 1.442695, %v1988_v42  ;;  %6437 = vpow2.f32 %v2067_v28  ;;  %v8373_v26 = vand.u32 3, %v8259_v46 }
 0x403   : > { %v3328_v37 = vsel %vm3326_vm0, %v8302_v19, %v2491_v56  ;;  %v3331_v29 = vsel %vm3329_vm1, %v2494_v12, %v8316_v4  ;;  %v2278_v7 = vsel %vm8275_vm9, 0, %v2276_v14  ;;  %6439 = vsinq.f32 %v2174_v57  ;;  %v2075_v14 = vld [vmem:[#allocation7 + $0x228] sm:$0xff] }
 0x404   : > { %v1985_v0 = vsub.f32 %v1907_v8, %v1977_v53  ;;  %v2057_v22 = vmul.f32 1.442695, %v1987_v55  ;;  %6441 = vpow2.f32 %v2061_v30  ;;  %vm9110_vm12 = vcmp.lt.s32.totalorder %v9080_v25, 0 }
 0x405   : > { %v2173_v46 = vsel %vm9110_vm12, %v2172_v32, %v7977_v49  ;;  %v8392_v62 = vsel %vm2899_vm5, nan, %v3748_v39  ;;  %v8396_v43 = vsel %vm2899_vm5, nan, %v2908_v20  ;;  %v2495_v54 = vsel %vm2493_vm2, %v2494_v12, %v8316_v4  ;;  %v2076_v12 = vld [vmem:[#allocation7 + $0x230] sm:$0xff] }
 0x406   : > { %v3220_v27 = vand.u32 3, %v3219_v58  ;;  %v2055_v10 = vmul.f32 1.442695, %v1986_v36  ;;  %6443 = vpow2.f32 %v2059_v38  ;;  %vm3637_vm9 = vcmp.lt.s32.totalorder %v8204_v34, 2  ;;  %v2074_v58 = vld [vmem:[#allocation7 + $0x220] sm:$0xff] }
 0x407   : > { %v2492_v49 = vsel %vm2490_vm8, %v8302_v19, %v2491_v56  ;;  %v3115_v48 = vadd.s32 3, %v2278_v7  ;;  %vm2798_vm0 = vcmp.lt.s32.totalorder %v8191_v52, 2  ;;  %v3332_v61 = vsel %vm3325_vm11, %v3328_v37, %v3331_v29  ;;  %v8422_v19 = vpop.eup %6429  ;;  %v2077_v56 = vld [vmem:[#allocation7 + $0x238] sm:$0xff] }
 0x408   : > { %v2388_v13 = vxor.u32 2147483648, %v8330_v3  ;;  %v2391_v4 = vxor.u32 2147483648, %v8326_v33  ;;  %v2175_v41 = vsel %vm8298_vm4, 0, %v2173_v46  ;;  %v2053_v16 = vmul.f32 1.442695, %v1985_v0 }
 0x409   : > { %6445 = vpow2.f32 %v2057_v22  ;;  %v2800_v60 = vxor.u32 2147483648, %v8348_v45  ;;  %v2803_v17 = vxor.u32 2147483648, %v8336_v50  ;;  %vm2386_vm1 = vcmp.lt.s32.totalorder %v8373_v26, 2  ;;  %v2073_v22 = vld [vmem:[#allocation7 + $0x218] sm:$0xff] }
 0x40a   : > { %vm2796_vm5 = vweird.f32 %v9064_v21  ;;  %vm3221_vm2 = vcmp.lt.s32.totalorder %v3220_v27, 2  ;;  %vm2387_vm8 = vcmp.eq.s32.totalorder %v8373_v26, 0  ;;  %vm2390_vm11 = vcmp.eq.s32.totalorder %v8373_v26, 2 }
 0x40b   : > { %v8420_v44 = vand.u32 3, %v2278_v7  ;;  %6447 = vpow2.f32 %v2055_v10  ;;  %v8426_v9 = vsel %vm2489_vm3, %v2492_v49, %v2495_v54  ;;  %vm3225_vm4 = vcmp.eq.s32.totalorder %v3220_v27, 2  ;;  %v2072_v49 = vld [vmem:[#allocation7 + $0x210] sm:$0xff] }
 0x40c   : > { %v8428_v40 = vand.u32 3, %v3115_v48  ;;  %v8432_v57 = vsel %vm2487_vm14, nan, %v3332_v61  ;;  %vm3222_vm13 = vcmp.eq.s32.totalorder %v3220_v27, 0  ;;  %v3227_v23 = vsel %vm3225_vm4, %v2391_v4, %v8330_v3  ;;  %v8435_v24 = vpop.eup %6431 }
 0x40d   : > { %v3011_v59 = vadd.s32 3, %v2175_v41  ;;  %6449 = vpow2.f32 %v2053_v16  ;;  %v3640_v31 = vsel %vm3638_vm7, %v8336_v50, %v2800_v60  ;;  %v3643_v1 = vsel %vm3641_vm15, %v2803_v17, %v8348_v45  ;;  %v6434_v15 = vpop.eup %6433 }
 0x40e   : > { %v3224_v18 = vsel %vm3222_vm13, %v8326_v33, %v2388_v13  ;;  %v2801_v5 = vsel %vm2799_vm6, %v8336_v50, %v2800_v60  ;;  %v2804_v47 = vsel %vm2802_vm10, %v2803_v17, %v8348_v45  ;;  %vm2284_vm3 = vcmp.eq.s32.totalorder %v8420_v44, 0  ;;  %v6436_v28 = vpop.eup %6435 }
 0x40f   : > { %v8451_v42 = vand.u32 3, %v2175_v41  ;;  %v2389_v53 = vsel %vm2387_vm8, %v8326_v33, %v2388_v13  ;;  %v2392_v11 = vsel %vm2390_vm11, %v2391_v4, %v8330_v3  ;;  %vm3118_vm7 = vcmp.eq.s32.totalorder %v8428_v40, 0  ;;  %v6438_v50 = vpop.eup %6437  ;;  %v9111_v41 = vld [vmem:[#allocation37_spill] sm:$0xff] }
 0x410   : > { %vm2287_vm15 = vcmp.eq.s32.totalorder %v8420_v44, 2  ;;  %v3644_v45 = vsel %vm3637_vm9, %v3640_v31, %v3643_v1  ;;  %v8464_v32 = vsel %vm3221_vm2, %v3224_v18, %v3227_v23  ;;  %v2288_v8 = vxor.u32 2147483648, %v8401_v35  ;;  %v6440_v33 = vpop.eup %6439  ;;  %v9113_v1 = vld [vmem:[#allocation38_spill] sm:$0xff] }
 0x411   : > { %vm3121_vm6 = vcmp.eq.s32.totalorder %v8428_v40, 2  ;;  %v2085_v55 = vmul.f32 %v6438_v50, %v2077_v56  ;;  %v2084_v30 = vmul.f32 %v6436_v28, %v2076_v12  ;;  %v2805_v3 = vsel %vm2798_vm0, %v2801_v5, %v2804_v47  ;;  %v6442_v20 = vpop.eup %6441  ;;  %v2070_v5 = vld [vmem:[#allocation7 + $0x200] sm:$0xff] }
 0x412   : > { %v8470_v39 = vand.u32 3, %v3011_v59  ;;  %v8474_v34 = vsel %vm2386_vm1, %v2389_v53, %v2392_v11  ;;  %v2285_v36 = vxor.u32 2147483648, %v8422_v19  ;;  %v2185_v38 = vxor.u32 2147483648, %v8435_v24  ;;  %v9112_v59 = vld [vmem:[#allocation42_spill] sm:$0xff] }
 0x413   : > { %vm2181_vm10 = vcmp.eq.s32.totalorder %v8451_v42, 0  ;;  %v8480_v37 = vmul.f32 %v8392_v62, %v2085_v55  ;;  %v8483_v52 = vmul.f32 %v8396_v43, %v2085_v55  ;;  %v3645_v29 = vsel %vm2796_vm5, nan, %v3644_v45  ;;  %v6444_v26 = vpop.eup %6443 }
 0x414   : > { %v2083_v7 = vmul.f32 %v6434_v15, %v2075_v14  ;;  %vm2384_vm12 = vweird.f32 %v9082_v2  ;;  %v2806_v0 = vsel %vm2796_vm5, nan, %v2805_v3  ;;  %v3123_v46 = vsel %vm3121_vm6, %v2288_v8, %v8422_v19  ;;  %v8603_v3 = vld [vmem:[#allocation7 + $0x290] sm:$0xff] }
 0x415   : > { %v2289_v62 = vsel %vm2287_vm15, %v2288_v8, %v8422_v19  ;;  %v2182_v43 = vxor.u32 2147483648, %v6440_v33  ;;  %5721 = vmatprep.subr.mxu0 %v8480_v37  ;;  %5749 = vmatprep.subr.mxu1 %v8483_v52  ;;  %v8498_v54 = vmul.f32 %v3645_v29, %v2084_v30  ;;  %v8500_v27 = vmul.f32 %v2806_v0, %v2084_v30  ;;  %v8593_v30 = vld [vmem:[#allocation7 + $0x248] sm:$0xff]  ;;  %v8655_v29 = vld [vmem:[#allocation7 + $0x270] sm:$0xff]  ;;  %v8676_v0 = vld [vmem:[#allocation7 + $0x240] sm:$0xff] }
 0x416   : > { %v2082_v21 = vmul.f32 %v6442_v20, %v2074_v58  ;;  %vm3017_vm9 = vcmp.eq.s32.totalorder %v8470_v39, 2  ;;  %v6446_v10 = vpop.eup %6445  ;;  %5722 = vmatpush3.msra.mxu0 %v8480_v37  ;;  %5750 = vmatpush3.msra.mxu1 %v8483_v52  ;;  %v3120_v48 = vsel %vm3118_vm7, %v8401_v35, %v2285_v36  ;;  %v2286_v61 = vsel %vm2284_vm3, %v8401_v35, %v2285_v36  ;;  %v2071_v35 = vld [vmem:[#allocation7 + $0x208] sm:$0xff]  ;;  %v8613_v20 = vld [vmem:[#allocation7 + $0x298] sm:$0xff]  ;;  %v8631_v36 = vld [vmem:[#allocation7 + $0x260] sm:$0xff] }
 0x417   : > { %v3019_v13 = vsel %vm3017_vm9, %v2185_v38, %v6440_v33  ;;  %vm2184_vm0 = vcmp.eq.s32.totalorder %v8451_v42, 2  ;;  %5723 = vmatprep.subr.mxu0 %v8498_v54  ;;  %5751 = vmatprep.subr.mxu1 %v8500_v27  ;;  %v8515_v4 = vmul.f32 %v8208_v63, %v2083_v7  ;;  %v8518_v16 = vmul.f32 %v9111_v41, %v2083_v7  ;;  %v8617_v58 = vld [vmem:[#allocation7 + $0x258] sm:$0xff] }
 0x418   : > { %v2081_v60 = vmul.f32 %v6444_v26, %v2073_v22  ;;  %vm3014_vm1 = vcmp.eq.s32.totalorder %v8470_v39, 0  ;;  %v6448_v17 = vpop.eup %6447  ;;  %5724 = vmatpush3.msra.mxu0 %v8498_v54  ;;  %5752 = vmatpush3.msra.mxu1 %v8500_v27  ;;  %vm2283_vm5 = vcmp.lt.s32.totalorder %v8420_v44, 2  ;;  %v2183_v63 = vsel %vm2181_vm10, %v8435_v24, %v2182_v43  ;;  %v8661_v7 = vld [vmem:[#allocation7 + $0x2b8] sm:$0xff]  ;;  %v8681_v22 = vld [vmem:[#allocation7 + $0x280] sm:$0xff] }
 0x419   : > { %v3016_v19 = vsel %vm3014_vm1, %v8435_v24, %v2182_v43  ;;  %v2186_v23 = vsel %vm2184_vm0, %v2185_v38, %v6440_v33  ;;  %5725 = vmatprep.subr.mxu0 %v8515_v4  ;;  %5753 = vmatprep.subr.mxu1 %v8518_v16  ;;  %v8531_v31 = vmul.f32 %v9112_v59, %v2082_v21  ;;  %vm3117_vm2 = vcmp.lt.s32.totalorder %v8428_v40, 2  ;;  %v8637_v38 = vld [vmem:[#allocation7 + $0x2a8] sm:$0xff]  ;;  %v8665_v26 = vld [vmem:[#allocation7 + $0x278] sm:$0xff] }
 0x41a   : > { %v8534_v18 = vmul.f32 %v9113_v1, %v2082_v21  ;;  %v2080_v15 = vmul.f32 %v6446_v10, %v2072_v49  ;;  %v6450_v44 = vpop.eup %6449  ;;  %5726 = vmatpush3.msra.mxu0 %v8515_v4  ;;  %5754 = vmatpush3.msra.mxu1 %v8518_v16  ;;  %v2497_v24 = vsel %vm2487_vm14, nan, %v8426_v9  ;;  %v3124_v56 = vsel %vm3117_vm2, %v3120_v48, %v3123_v46 }
 0x41b   : > { %v2290_v12 = vsel %vm2283_vm5, %v2286_v61, %v2289_v62  ;;  %vm2180_vm8 = vcmp.lt.s32.totalorder %v8451_v42, 2  ;;  %5727 = vmatprep.subr.mxu0 %v8531_v31  ;;  %v8546_v40 = vmul.f32 %v8432_v57, %v2081_v60  ;;  %v8548_v47 = vmul.f32 %v2497_v24, %v2081_v60 }
 0x41c   : > { %5755 = vmatprep.subr.mxu1 %v8534_v18  ;;  %v2079_v28 = vmul.f32 %v6448_v17, %v2071_v35  ;;  %vm3013_vm11 = vcmp.lt.s32.totalorder %v8470_v39, 2  ;;  %5728 = vmatpush3.msra.mxu0 %v8531_v31  ;;  %v3229_v6 = vsel %vm2384_vm12, nan, %v8464_v32  ;;  %v2394_v9 = vsel %vm2384_vm12, nan, %v8474_v34  ;;  %v8607_v39 = vld [vmem:[#allocation7 + $0x250] sm:$0xff]  ;;  %v8627_v34 = vld [vmem:[#allocation7 + $0x2a0] sm:$0xff] }
 0x41d   : > { %5756 = vmatpush3.msra.mxu1 %v8534_v18  ;;  %v3020_v42 = vsel %vm3013_vm11, %v3016_v19, %v3019_v13  ;;  %v2187_v57 = vsel %vm2180_vm8, %v2183_v63, %v2186_v23  ;;  %5729 = vmatprep.subr.mxu0 %v8546_v40  ;;  %v8561_v53 = vmul.f32 %v3229_v6, %v2080_v15  ;;  %vm2281_vm14 = vweird.f32 %v9078_v51 }
 0x41e   : > { %5757 = vmatprep.subr.mxu1 %v8548_v47  ;;  %v8563_v11 = vmul.f32 %v2394_v9, %v2080_v15  ;;  %v2078_v50 = vmul.f32 %v6450_v44, %v2070_v5  ;;  %5730 = vmatpush3.msra.mxu0 %v8546_v40  ;;  %v3125_v45 = vsel %vm2281_vm14, nan, %v3124_v56  ;;  %v2291_v2 = vsel %vm2281_vm14, nan, %v2290_v12 }
 0x41f   : > { %5758 = vmatpush3.msra.mxu1 %v8548_v47  ;;  %5731 = vmatprep.subr.mxu0 %v8561_v53  ;;  %v8570_v14 = vmul.f32 %v3125_v45, %v2079_v28  ;;  %v8572_v32 = vmul.f32 %v2291_v2, %v2079_v28  ;;  %vm2178_vm4 = vweird.f32 %v9080_v25  ;;  %v8589_v25 = vld [vmem:[#allocation7 + $0x288] sm:$0xff]  ;;  %vm9114_vm13 = vcmask 523264  }
 0x420   : > { %5759 = vmatprep.subr.mxu1 %v8563_v11  ;;  %5732 = vmatpush3.msra.mxu0 %v8561_v53  ;;  %v3021_v51 = vsel %vm2178_vm4, nan, %v3020_v42  ;;  %v2188_v8 = vsel %vm2178_vm4, nan, %v2187_v57  ;;  %vm9115_vm3 = vmmov %vm9114_vm13 }
 0x421   : > { %5760 = vmatpush3.msra.mxu1 %v8563_v11  ;;  %5733 = vmatprep.subr.mxu0 %v8570_v14  ;;  %v8579_v33 = vmul.f32 %v3021_v51, %v2078_v50  ;;  %v8581_v55 = vmul.f32 %v2188_v8, %v2078_v50  ;;  %vm9116_vm7 = vmmov %vm9115_vm3 }
 0x422   : > { %5761 = vmatprep.subr.mxu1 %v8572_v32  ;;  %5734 = vmatpush3.msra.mxu0 %v8570_v14  ;;  %vm9117_vm15 = vmmov %vm9115_vm3 }
 0x423   : > { %5762 = vmatpush3.msra.mxu1 %v8572_v32  ;;  %5735 = vmatprep.subr.mxu0 %v8579_v33  ;;  %vm9118_vm6 = vmmov %vm9115_vm3 }
 0x424   : > { %5763 = vmatprep.subr.mxu1 %v8581_v55  ;;  %5736 = vmatpush3.msra.mxu0 %v8579_v33  ;;  %vm9119_vm10 = vmmov %vm9115_vm3 }
 0x425   : > { %5764 = vmatpush3.msra.mxu1 %v8581_v55  ;;  %5738 = vmatmul.mubr.msk.f32.vlgmr.msra.gmra.mxu0 %vm9114_vm13, %v8589_v25  ;;  %vm9120_vm12 = vmmov %vm9115_vm3 }
 0x426   : > { %5766 = vmatmul.mubr.msk.f32.vlgmr.msra.gmra.mxu1 %vm9115_vm3, %v8593_v30  ;;  %5777 = vmatprep.subr.mxu0 %v8480_v37  ;;  %vm9121_vm9 = vmmov %vm9115_vm3 }
 0x427   : > { %5805 = vmatprep.subr.mxu1 %v8483_v52  ;;  %5778 = vmatpush3.msra.mxu0 %v8480_v37  ;;  %vm9122_vm0 = vmmov %vm9115_vm3  ;;  %v8641_v37 = vld [vmem:[#allocation7 + $0x268] sm:$0xff] }
 0x428   : > { %5806 = vmatpush3.msra.mxu1 %v8483_v52  ;;  %5779 = vmatprep.subr.mxu0 %v8498_v54  ;;  %vm9123_vm1 = vmmov %vm9122_vm0  ;;  %v8651_v52 = vld [vmem:[#allocation7 + $0x2b0] sm:$0xff] }
 0x429   : > { %5807 = vmatprep.subr.mxu1 %v8500_v27  ;;  %5740 = vmatprep.mubr.msk.f32.mxu0 %vm9116_vm7, %v8603_v3  ;;  %vm9124_vm5 = vmmov %vm9122_vm0 }
 0x42a   : > { %5768 = vmatprep.mubr.msk.f32.mxu1 %vm9117_vm15, %v8607_v39  ;;  %5780 = vmatpush3.msra.mxu0 %v8498_v54  ;;  %vm9125_vm2 = vmmov %vm9122_vm0 }
 0x42b   : > { %5808 = vmatpush3.msra.mxu1 %v8500_v27  ;;  %5741 = vmatmul.mubr.msk.f32.gmra.mxu0 %vm9118_vm6, %v8613_v20  ;;  %vm9126_vm8 = vmmov %vm9122_vm0 }
 0x42c   : > { %5769 = vmatmul.mubr.msk.f32.gmra.mxu1 %vm9119_vm10, %v8617_v58  ;;  %5781 = vmatprep.subr.mxu0 %v8515_v4  ;;  %vm9127_vm11 = vmmov %vm9122_vm0 }
 0x42d   : > { %5809 = vmatprep.subr.mxu1 %v8518_v16  ;;  %5782 = vmatpush3.msra.mxu0 %v8515_v4  ;;  %vm9128_vm14 = vmmov %vm9122_vm0 }
 0x42e   : > { %5810 = vmatpush3.msra.mxu1 %v8518_v16  ;;  %5783 = vmatprep.subr.mxu0 %v8531_v31  ;;  %vm9129_vm4 = vmmov %vm9122_vm0 }
 0x42f   : > { %5811 = vmatprep.subr.mxu1 %v8534_v18  ;;  %5743 = vmatprep.mubr.msk.f32.mxu0 %vm9120_vm12, %v8627_v34  ;;  %vm9130_vm13 = vmmov %vm9122_vm0 }
 0x430   : > { %5771 = vmatprep.mubr.msk.f32.mxu1 %vm9121_vm9, %v8631_v36  ;;  %5784 = vmatpush3.msra.mxu0 %v8531_v31  ;;  %vm9131_vm3 = vmmov %vm9122_vm0 }
 0x431   : > { %5812 = vmatpush3.msra.mxu1 %v8534_v18  ;;  %5744 = vmatmul.mubr.msk.f32.gmra.mxu0 %vm9122_vm0, %v8637_v38  ;;  %vm9132_vm7 = vmmov %vm9122_vm0 }
 0x432   : > { %5772 = vmatmul.mubr.msk.f32.gmra.mxu1 %vm9123_vm1, %v8641_v37  ;;  %5785 = vmatprep.subr.mxu0 %v8546_v40  ;;  %vm9133_vm15 = vmmov %vm9122_vm0 }
 0x433   : > { %5813 = vmatprep.subr.mxu1 %v8548_v47  ;;  %5786 = vmatpush3.msra.mxu0 %v8546_v40  ;;  %vm9134_vm6 = vmmov %vm9122_vm0 }
 0x434   : > { %5814 = vmatpush3.msra.mxu1 %v8548_v47  ;;  %5787 = vmatprep.subr.mxu0 %v8561_v53  ;;  %vm9135_vm10 = vmmov %vm9122_vm0 }
 0x435   : > { %5815 = vmatprep.subr.mxu1 %v8563_v11  ;;  %5746 = vmatprep.mubr.msk.f32.mxu0 %vm9124_vm5, %v8651_v52  ;;  %vm9136_vm12 = vmmov %vm9122_vm0 }
 0x436   : > { %5774 = vmatprep.mubr.msk.f32.mxu1 %vm9125_vm2, %v8655_v29  ;;  %5788 = vmatpush3.msra.mxu0 %v8561_v53  ;;  %vm9137_vm9 = vmmov %vm9122_vm0 }
 0x437   : > { %5816 = vmatpush3.msra.mxu1 %v8563_v11  ;;  %5747 = vmatmul.mubr.msk.f32.gmra.mxu0 %vm9126_vm8, %v8661_v7  ;;  %vm9138_vm1 = vmmov %vm9122_vm0 }
 0x438   : > { %5775 = vmatmul.mubr.msk.f32.gmra.mxu1 %vm9127_vm11, %v8665_v26  ;;  %5789 = vmatprep.subr.mxu0 %v8570_v14  ;;  %vm9139_vm5 = vmmov %vm9122_vm0 }
 0x439   : > { %5817 = vmatprep.subr.mxu1 %v8572_v32  ;;  %5790 = vmatpush3.msra.mxu0 %v8570_v14  ;;  %vm9140_vm2 = vmmov %vm9122_vm0 }
 0x43a   : > { %5818 = vmatpush3.msra.mxu1 %v8572_v32  ;;  %5791 = vmatprep.subr.mxu0 %v8579_v33  ;;  %vm9141_vm8 = vmmov %vm9122_vm0 }
 0x43b   : > { %5819 = vmatprep.subr.mxu1 %v8581_v55  ;;  %5792 = vmatpush3.msra.mxu0 %v8579_v33  ;;  %vm9142_vm11 = vmmov %vm9122_vm0 }
 0x43c   : > { %5793 = vmatprep.mubr.msk.f32.mxu0 %vm9128_vm14, %v8676_v0  ;;  %5820 = vmatpush3.msra.mxu1 %v8581_v55  ;;  %vm9143_vm14 = vmmov %vm9122_vm0 }
 0x43d   : > { %5821 = vmatprep.mubr.msk.f32.mxu1 %vm9129_vm4, %v8681_v22  ;;  %5794 = vmatmul.mubr.msk.f32.vlgmr.msra.gmra.mxu0 %vm9130_vm13, %v8593_v30  ;;  %vm9144_vm4 = vmmov %vm9122_vm0 }
 0x43e   : > { %5822 = vmatmul.mubr.msk.f32.vlgmr.msra.gmra.mxu1 %vm9131_vm3, %v8589_v25  ;;  %5796 = vmatprep.mubr.msk.f32.mxu0 %vm9132_vm7, %v8607_v39  ;;  %vm9145_vm13 = vmmov %vm9122_vm0 }
 0x43f   : > { %5824 = vmatprep.mubr.msk.f32.mxu1 %vm9133_vm15, %v8603_v3  ;;  %5861 = vmatprep.subr.mxu1 %v8665_v26  ;;  %vm9146_vm3 = vmmov %vm9122_vm0 }
 0x440   : > { %5833 = vmatprep.subr.mxu0 %v8661_v7  ;;  %5862 = vmatpush3.msra.mxu1 %v8665_v26  ;;  %vm9147_vm7 = vmmov %vm9122_vm0 }
 0x441   : > { %5834 = vmatpush3.msra.mxu0 %v8661_v7  ;;  %5863 = vmatprep.subr.mxu1 %v8655_v29  ;;  %vm9148_vm15 = vmmov %vm9122_vm0 }
 0x442   : > { %5797 = vmatmul.mubr.msk.f32.gmra.mxu0 %vm9134_vm6, %v8617_v58  ;;  %5825 = vmatmul.mubr.msk.f32.gmra.mxu1 %vm9135_vm10, %v8613_v20  ;;  %vm9149_vm6 = vmmov %vm9122_vm0 }
 0x443   : > { %5799 = vmatprep.mubr.msk.f32.mxu0 %vm9136_vm12, %v8631_v36  ;;  %5827 = vmatprep.mubr.msk.f32.mxu1 %vm9137_vm9, %v8627_v34  ;;  %vm9150_vm10 = vmmov %vm9122_vm0 }
 0x444   : > { %5835 = vmatprep.subr.mxu0 %v8651_v52  ;;  %5864 = vmatpush3.msra.mxu1 %v8655_v29  ;;  %vm9151_vm12 = vmmov %vm9122_vm0 }
 0x445   : > { %5836 = vmatpush3.msra.mxu0 %v8651_v52  ;;  %5865 = vmatprep.subr.mxu1 %v8641_v37  ;;  %vm9152_vm9 = vmmov %vm9122_vm0 }
 0x446   : > { %5800 = vmatmul.mubr.msk.f32.gmra.mxu0 %vm9122_vm0, %v8641_v37  ;;  %5828 = vmatmul.mubr.msk.f32.gmra.mxu1 %vm9138_vm1, %v8637_v38  ;;  %vm9153_vm1 = vmmov %vm9122_vm0 }
 0x447   : > { %5802 = vmatprep.mubr.msk.f32.mxu0 %vm9139_vm5, %v8655_v29  ;;  %5830 = vmatprep.mubr.msk.f32.mxu1 %vm9140_vm2, %v8651_v52  ;;  %vm9154_vm5 = vmmov %vm9122_vm0 }
 0x448   : > { %5837 = vmatprep.subr.mxu0 %v8637_v38  ;;  %5866 = vmatpush3.msra.mxu1 %v8641_v37  ;;  %vm9155_vm2 = vmmov %vm9122_vm0 }
 0x449   : > { %5838 = vmatpush3.msra.mxu0 %v8637_v38  ;;  %5867 = vmatprep.subr.mxu1 %v8631_v36 }
 0x44a   : > { %5803 = vmatmul.mubr.msk.f32.gmra.mxu0 %vm9141_vm8, %v8665_v26  ;;  %5831 = vmatmul.mubr.msk.f32.gmra.mxu1 %vm9142_vm11, %v8661_v7  ;;  %vm9156_vm8 = vmmov %vm9122_vm0 }
 0x44b   : > { %5839 = vmatprep.subr.mxu0 %v8627_v34  ;;  %5868 = vmatpush3.msra.mxu1 %v8631_v36  ;;  %vm9157_vm11 = vmmov %vm9122_vm0 }
 0x44c   : > { %5840 = vmatpush3.msra.mxu0 %v8627_v34  ;;  %5869 = vmatprep.subr.mxu1 %v8617_v58 }
 0x44d   : > { %5841 = vmatprep.subr.mxu0 %v8613_v20  ;;  %5870 = vmatpush3.msra.mxu1 %v8617_v58 }
 0x44e   : > { %5842 = vmatpush3.msra.mxu0 %v8613_v20  ;;  %5871 = vmatprep.subr.mxu1 %v8607_v39 }
 0x44f   : > { %5843 = vmatprep.subr.mxu0 %v8603_v3  ;;  %5872 = vmatpush3.msra.mxu1 %v8607_v39 }
 0x450   : > { %5844 = vmatpush3.msra.mxu0 %v8603_v3  ;;  %5873 = vmatprep.subr.mxu1 %v8593_v30 }
 0x451   : > { %5845 = vmatprep.subr.mxu0 %v8589_v25  ;;  %5874 = vmatpush3.msra.mxu1 %v8593_v30 }
 0x452   : > { %5846 = vmatpush3.msra.mxu0 %v8589_v25  ;;  %5875 = vmatprep.subr.mxu1 %v8676_v0 }
 0x453   : > { %5847 = vmatprep.subr.mxu0 %v8681_v22  ;;  %5876 = vmatpush3.msra.mxu1 %v8676_v0 }
 0x454   : > { %5848 = vmatpush3.msra.mxu0 %v8681_v22  ;;  %5917 = vmatprep.subr.mxu1 %v8661_v7 }
 0x455   : > { %5889 = vmatprep.subr.mxu0 %v8665_v26 }
 0x4e5   : > { %v5739_v46 = vpop.f32.mrf.mxu0 }
 0x4e6   : > { %v5767_v62 = vpop.f32.mrf.mxu1 }
 0x4e7   : > { %v3824_v43 = vpop.f32.mrf.mxu0  ;;  %v3935_v21 = vadd.f32 %v5767_v62, %v5739_v46 }
 0x4e8   : > { %v3929_v54 = vpop.f32.mrf.mxu1 }
 0x4e9   : > { %v3930_v27 = vadd.f32 %v3929_v54, %v3824_v43 }
 0x4eb   : > { %5877 = vmatprep.mubr.msk.f32.mxu1 %vm9143_vm14, %v3930_v27  ;;  %v5742_v10 = vpop.f32.mrf.mxu0  ;;  %vm9158_vm14 = vmmov %vm9122_vm0 }
 0x4ec   : > { %v5770_v49 = vpop.f32.mrf.mxu1  ;;  %5878 = vmatmul.mubr.msk.f32.vlgmr.msra.gmra.mxu1 %vm9144_vm4, %v3935_v21  ;;  %vm9159_vm4 = vmmov %vm9122_vm0 }
 0x4ed   : > { %5918 = vmatpush3.msra.mxu1 %v8661_v7  ;;  %v3834_v48 = vpop.f32.mrf.mxu0  ;;  %v3945_v4 = vadd.f32 %v5770_v49, %v5742_v10 }
 0x4ee   : > { %v3939_v61 = vpop.f32.mrf.mxu1  ;;  %5919 = vmatprep.subr.mxu1 %v8651_v52 }
 0x4ef   : > { %v3940_v13 = vadd.f32 %v3939_v61, %v3834_v48  ;;  %5920 = vmatpush3.msra.mxu1 %v8651_v52 }
 0x4f0   : > { %5921 = vmatprep.subr.mxu1 %v8637_v38 }
 0x4f1   : > { %5880 = vmatprep.mubr.msk.f32.mxu1 %vm9145_vm13, %v3940_v13  ;;  %5922 = vmatpush3.msra.mxu1 %v8637_v38  ;;  %v5745_v41 = vpop.f32.mrf.mxu0  ;;  %vm9160_vm13 = vmmov %vm9122_vm0 }
 0x4f2   : > { %v5773_v16 = vpop.f32.mrf.mxu1  ;;  %5881 = vmatmul.mubr.msk.f32.gmra.mxu1 %vm9146_vm3, %v3945_v4  ;;  %5923 = vmatprep.subr.mxu1 %v8627_v34  ;;  %vm9161_vm3 = vmmov %vm9122_vm0 }
 0x4f3   : > { %5924 = vmatpush3.msra.mxu1 %v8627_v34  ;;  %v3844_v60 = vpop.f32.mrf.mxu0  ;;  %v3955_v19 = vadd.f32 %v5773_v16, %v5745_v41  ;;  %v4845_v34 = vld [vmem:[%s8953_s5 + $0x10] sm:$0xff] }
 0x4f4   : > { %v3949_v17 = vpop.f32.mrf.mxu1  ;;  %5925 = vmatprep.subr.mxu1 %v8613_v20 }
 0x4f5   : > { %v3950_v35 = vadd.f32 %v3949_v17, %v3844_v60  ;;  %5926 = vmatpush3.msra.mxu1 %v8613_v20  ;;  %v4847_v20 = vld [vmem:[%s8953_s5 + $0x20] sm:$0xff] }
 0x4f6   : > { %5927 = vmatprep.subr.mxu1 %v8603_v3 }
 0x4f7   : > { %5883 = vmatprep.mubr.msk.f32.mxu1 %vm9147_vm7, %v3950_v35  ;;  %5928 = vmatpush3.msra.mxu1 %v8603_v3  ;;  %v5748_v63 = vpop.f32.mrf.mxu0  ;;  %vm9162_vm7 = vmmov %vm9122_vm0  ;;  %v4849_v3 = vld [vmem:[%s8953_s5 + $0x30] sm:$0xff] }
 0x4f8   : > { %v5776_v23 = vpop.f32.mrf.mxu1  ;;  %5884 = vmatmul.mubr.msk.f32.gmra.mxu1 %vm9148_vm15, %v3955_v19  ;;  %5929 = vmatprep.subr.mxu1 %v8589_v25  ;;  %vm9163_vm15 = vmmov %vm9122_vm0 }
 0x4f9   : > { %5930 = vmatpush3.msra.mxu1 %v8589_v25  ;;  %v3854_v59 = vpop.f32.mrf.mxu0  ;;  %v3965_v18 = vadd.f32 %v5776_v23, %v5748_v63  ;;  %v4742_v25 = vld [vmem:[#allocation11] sm:$0xff] }
 0x4fa   : > { %v3959_v31 = vpop.f32.mrf.mxu1  ;;  %5931 = vmatprep.subr.mxu1 %v8681_v22 }
 0x4fb   : > { %v3960_v1 = vadd.f32 %v3959_v31, %v3854_v59  ;;  %5932 = vmatpush3.msra.mxu1 %v8681_v22 }
 0x4fd   : > { %5886 = vmatprep.mubr.msk.f32.mxu1 %vm9149_vm6, %v3960_v1  ;;  %v5795_v15 = vpop.f32.mrf.mxu0  ;;  %vm9164_vm6 = vmmov %vm9122_vm0 }
 0x4fe   : > { %v5823_v44 = vpop.f32.mrf.mxu1  ;;  %5887 = vmatmul.mubr.msk.f32.gmra.mxu1 %vm9150_vm10, %v3965_v18  ;;  %vm9165_vm10 = vmmov %vm9122_vm0 }
 0x4ff   : > { %5933 = vmatprep.mubr.msk.f32.mxu1 %vm9151_vm12, %v3930_v27  ;;  %v4034_v24 = vpop.f32.mrf.mxu0  ;;  %v4179_v5 = vsub.f32 %v5795_v15, %v5823_v44  ;;  %vm9166_vm12 = vmmov %vm9122_vm0 }
 0x500   : > { %v4139_v56 = vpop.f32.mrf.mxu1 }
 0x501   : > { %v4178_v12 = vsub.f32 %v4034_v24, %v4139_v56 }
 0x502   : > { %v5798_v40 = vpop.f32.mrf.mxu0  ;;  %v5826_v47 = vpop.f32.mrf.mxu1  ;;  %5934 = vmatmul.mubr.msk.f32.vlgmr.msra.gmra.mxu1 %vm9152_vm9, %v3935_v21  ;;  %vm9167_vm9 = vmmov %vm9122_vm0 }
 0x503   : > { %5849 = vmatprep.mubr.msk.f32.mxu0 %vm9122_vm0, %v4178_v12  ;;  %5936 = vmatprep.mubr.msk.f32.mxu1 %vm9153_vm1, %v3940_v13  ;;  %v4181_v42 = vsub.f32 %v5798_v40, %v5826_v47  ;;  %vm9168_vm1 = vmmov %vm9122_vm0 }
 0x504   : > { %v4044_v28 = vpop.f32.mrf.mxu0  ;;  %v4149_v6 = vpop.f32.mrf.mxu1  ;;  %5850 = vmatmul.mubr.msk.f32.vlgmr.msra.gmra.mxu0 %vm9154_vm5, %v4179_v5  ;;  %vm9169_vm5 = vmmov %vm9122_vm0 }
 0x505   : > { %v4180_v9 = vsub.f32 %v4044_v28, %v4149_v6  ;;  %5890 = vmatpush3.msra.mxu0 %v8665_v26 }
 0x506   : > { %v5801_v57 = vpop.f32.mrf.mxu0  ;;  %v5829_v53 = vpop.f32.mrf.mxu1  ;;  %5891 = vmatprep.subr.mxu0 %v8655_v29  ;;  %5937 = vmatmul.mubr.msk.f32.gmra.mxu1 %vm9155_vm2, %v3945_v4  ;;  %vm9170_vm2 = vmmov %vm9122_vm0 }
 0x507   : > { %5852 = vmatprep.mubr.msk.f32.mxu0 %vm9156_vm8, %v4180_v9  ;;  %5892 = vmatpush3.msra.mxu0 %v8655_v29  ;;  %v4183_v2 = vsub.f32 %v5801_v57, %v5829_v53  ;;  %vm9171_vm8 = vmmov %vm9122_vm0 }
 0x508   : > { %v4054_v11 = vpop.f32.mrf.mxu0  ;;  %v4159_v50 = vpop.f32.mrf.mxu1  ;;  %5853 = vmatmul.mubr.msk.f32.gmra.mxu0 %vm9157_vm11, %v4181_v42  ;;  %5893 = vmatprep.subr.mxu0 %v8641_v37  ;;  %vm9172_vm11 = vmmov %vm9122_vm0 }
 0x509   : > { %v4182_v45 = vsub.f32 %v4054_v11, %v4159_v50  ;;  %5894 = vmatpush3.msra.mxu0 %v8641_v37  ;;  %5939 = vmatprep.mubr.msk.f32.mxu1 %vm9158_vm14, %v3950_v35  ;;  %vm9173_vm14 = vmmov %vm9122_vm0 }
 0x50a   : > { %v5804_v14 = vpop.f32.mrf.mxu0  ;;  %v5832_v32 = vpop.f32.mrf.mxu1  ;;  %5895 = vmatprep.subr.mxu0 %v8631_v36  ;;  %5940 = vmatmul.mubr.msk.f32.gmra.mxu1 %vm9159_vm4, %v3955_v19 }
 0x50b   : > { %5855 = vmatprep.mubr.msk.f32.mxu0 %vm9160_vm13, %v4182_v45  ;;  %5896 = vmatpush3.msra.mxu0 %v8631_v36  ;;  %v4185_v55 = vsub.f32 %v5804_v14, %v5832_v32 }
 0x50c   : > { %v4064_v51 = vpop.f32.mrf.mxu0  ;;  %v4169_v8 = vpop.f32.mrf.mxu1  ;;  %5856 = vmatmul.mubr.msk.f32.gmra.mxu0 %vm9161_vm3, %v4183_v2  ;;  %5897 = vmatprep.subr.mxu0 %v8617_v58 }
 0x50d   : > { %v4184_v33 = vsub.f32 %v4064_v51, %v4169_v8  ;;  %5898 = vmatpush3.msra.mxu0 %v8617_v58  ;;  %5942 = vmatprep.mubr.msk.f32.mxu1 %vm9162_vm7, %v3960_v1  ;;  %v4846_v58 = vld [vmem:[%s8953_s5 + $0x18] sm:$0xff] }
 0x50e   : > { %5899 = vmatprep.subr.mxu0 %v8607_v39  ;;  %5943 = vmatmul.mubr.msk.f32.gmra.mxu1 %vm9163_vm15, %v3965_v18 }
 0x50f   : > { %5858 = vmatprep.mubr.msk.f32.mxu0 %vm9164_vm6, %v4184_v33  ;;  %5900 = vmatpush3.msra.mxu0 %v8607_v39  ;;  %v4848_v39 = vld [vmem:[%s8953_s5 + $0x28] sm:$0xff] }
 0x510   : > { %5859 = vmatmul.mubr.msk.f32.gmra.mxu0 %vm9165_vm10, %v4185_v55  ;;  %5901 = vmatprep.subr.mxu0 %v8593_v30 }
 0x511   : > { %5902 = vmatpush3.msra.mxu0 %v8593_v30  ;;  %5905 = vmatprep.mubr.msk.f32.mxu0 %vm9166_vm12, %v4178_v12  ;;  %v4850_v30 = vld [vmem:[%s8953_s5 + $0x38] sm:$0xff] }
 0x512   : > { %5903 = vmatprep.subr.mxu0 %v8676_v0  ;;  %5967 = vmatprep.subr.mxu1 %v4850_v30 }
 0x513   : > { %5904 = vmatpush3.msra.mxu0 %v8676_v0  ;;  %5968 = vmatpush3.msra.mxu1 %v4850_v30 }
 0x514   : > { %5906 = vmatmul.mubr.msk.f32.vlgmr.msra.gmra.mxu0 %vm9167_vm9, %v4179_v5  ;;  %5969 = vmatprep.subr.mxu1 %v4849_v3 }
 0x515   : > { %5908 = vmatprep.mubr.msk.f32.mxu0 %vm9122_vm0, %v4180_v9  ;;  %5970 = vmatpush3.msra.mxu1 %v4849_v3 }
 0x516   : > { %5971 = vmatprep.subr.mxu1 %v4848_v39 }
 0x517   : > { %5972 = vmatpush3.msra.mxu1 %v4848_v39 }
 0x518   : > { %5909 = vmatmul.mubr.msk.f32.gmra.mxu0 %vm9168_vm1, %v4181_v42  ;;  %5973 = vmatprep.subr.mxu1 %v4847_v20 }
 0x519   : > { %5911 = vmatprep.mubr.msk.f32.mxu0 %vm9169_vm5, %v4182_v45  ;;  %5974 = vmatpush3.msra.mxu1 %v4847_v20 }
 0x51a   : > { %5975 = vmatprep.subr.mxu1 %v4846_v58 }
 0x51b   : > { %5976 = vmatpush3.msra.mxu1 %v4846_v58 }
 0x51c   : > { %5912 = vmatmul.mubr.msk.f32.gmra.mxu0 %vm9170_vm2, %v4183_v2  ;;  %5977 = vmatprep.subr.mxu1 %v4845_v34 }
 0x51d   : > { %5914 = vmatprep.mubr.msk.f32.mxu0 %vm9171_vm8, %v4184_v33  ;;  %5978 = vmatpush3.msra.mxu1 %v4845_v34 }
 0x520   : > { %5915 = vmatmul.mubr.msk.f32.gmra.mxu0 %vm9172_vm11, %v4185_v55 }
 0x521   : > { %5961 = vmatprep.mubr.msk.f32.mxu0 %vm9173_vm14, %v4742_v25 }
 0x5ac   : > { %v5879_v36 = vpop.f32.mrf.mxu1 }
 0x5ae   : > { %v4405_v38 = vpop.f32.mrf.mxu1 }
 0x5b2   : > { %v5882_v37 = vpop.f32.mrf.mxu1 }
 0x5b4   : > { %v4415_v52 = vpop.f32.mrf.mxu1 }
 0x5b8   : > { %v5885_v29 = vpop.f32.mrf.mxu1 }
 0x5ba   : > { %v4425_v7 = vpop.f32.mrf.mxu1 }
 0x5be   : > { %v5888_v26 = vpop.f32.mrf.mxu1 }
 0x5c0   : > { %v4435_v0 = vpop.f32.mrf.mxu1 }
 0x5c2   : > { %v5935_v46 = vpop.f32.mrf.mxu1 }
 0x5c4   : > { %v5851_v22 = vpop.f32.mrf.mxu0  ;;  %v4615_v54 = vpop.f32.mrf.mxu1 }
 0x5c5   : > { %v4411_v50 = vadd.f32 %v5879_v36, %v5851_v22 }
 0x5c6   : > { %v4276_v62 = vpop.f32.mrf.mxu0  ;;  %v5938_v10 = vpop.f32.mrf.mxu1 }
 0x5c7   : > { %v4406_v30 = vadd.f32 %v4405_v38, %v4276_v62 }
 0x5c8   : > { %v5854_v43 = vpop.f32.mrf.mxu0  ;;  %v4625_v61 = vpop.f32.mrf.mxu1 }
 0x5c9   : > { %v4421_v1 = vadd.f32 %v5882_v37, %v5854_v43  ;;  %v4663_v37 = vmul.f32 %v4411_v50, %v4411_v50  ;;  %v4662_v38 = vmul.f32 %v4406_v30, %v4406_v30  ;;  %v4743_v50 = vld [vmem:[#allocation11 + $0x8] sm:$0xff] }
 0x5ca   : > { %v4286_v27 = vpop.f32.mrf.mxu0  ;;  %v5941_v41 = vpop.f32.mrf.mxu1 }
 0x5cb   : > { %v4416_v40 = vadd.f32 %v4415_v52, %v4286_v27  ;;  %v4665_v45 = vmul.f32 %v4421_v1, %v4421_v1 }
 0x5cc   : > { %v5857_v21 = vpop.f32.mrf.mxu0  ;;  %v4635_v17 = vpop.f32.mrf.mxu1 }
 0x5cd   : > { %v4431_v19 = vadd.f32 %v5885_v29, %v5857_v21  ;;  %v4664_v3 = vmul.f32 %v4416_v40, %v4416_v40 }
 0x5ce   : > { %v4296_v49 = vpop.f32.mrf.mxu0  ;;  %v5944_v15 = vpop.f32.mrf.mxu1 }
 0x5cf   : > { %v4426_v63 = vadd.f32 %v4425_v7, %v4296_v49  ;;  %v4667_v24 = vmul.f32 %v4431_v19, %v4431_v19 }
 0x5d0   : > { %v5860_v48 = vpop.f32.mrf.mxu0  ;;  %v4645_v14 = vpop.f32.mrf.mxu1 }
 0x5d1   : > { %v4441_v18 = vadd.f32 %v5888_v26, %v5860_v48  ;;  %v4666_v47 = vmul.f32 %v4426_v63, %v4426_v63 }
 0x5d2   : > { %v4306_v13 = vpop.f32.mrf.mxu0 }
 0x5d3   : > { %v4436_v28 = vadd.f32 %v4435_v0, %v4306_v13  ;;  %v4669_v2 = vmul.f32 %v4441_v18, %v4441_v18 }
 0x5d4   : > { %v5907_v4 = vpop.f32.mrf.mxu0 }
 0x5d5   : > { %v4655_v42 = vsub.f32 %v5907_v4, %v5935_v46  ;;  %v4668_v39 = vmul.f32 %v4436_v28, %v4436_v28 }
 0x5d6   : > { %v4510_v16 = vpop.f32.mrf.mxu0 }
 0x5d7   : > { %v4654_v32 = vsub.f32 %v4510_v16, %v4615_v54  ;;  %v4671_v58 = vmul.f32 %v4655_v42, %v4655_v42 }
 0x5d8   : > { %v5910_v60 = vpop.f32.mrf.mxu0 }
 0x5d9   : > { %v4657_v23 = vsub.f32 %v5910_v60, %v5938_v10  ;;  %v4670_v52 = vmul.f32 %v4654_v32, %v4654_v32  ;;  %v8839_v26 = vadd.f32 %v4671_v58, %v4663_v37  ;;  %v4843_v32 = vld [vmem:[%s8953_s5] sm:$0xff] }
 0x5da   : > { %v4520_v35 = vpop.f32.mrf.mxu0 }
 0x5db   : > { %v4656_v56 = vsub.f32 %v4520_v35, %v4625_v61  ;;  %v4673_v6 = vmul.f32 %v4657_v23, %v4657_v23  ;;  %v8841_v0 = vadd.f32 %v4670_v52, %v4662_v38  ;;  %vm4695_vm5 = vcmp.eq.f32.partialorder %v8839_v26, inf }
 0x5dc   : > { %v5913_v59 = vpop.f32.mrf.mxu0  ;;  %vm4697_vm11 = vcmp.eq.f32.partialorder %v8839_v26, 0.0 }
 0x5dd   : > { %v4659_v31 = vsub.f32 %v5913_v59, %v5941_v41  ;;  %v4672_v8 = vmul.f32 %v4656_v56, %v4656_v56  ;;  %v8832_v20 = vadd.f32 %v4673_v6, %v4665_v45  ;;  %vm4688_vm8 = vcmp.eq.f32.partialorder %v8841_v0, inf  ;;  %v4744_v45 = vld [vmem:[#allocation11 + $0x10] sm:$0xff] }
 0x5de   : > { %v4530_v44 = vpop.f32.mrf.mxu0  ;;  %vm4690_vm14 = vcmp.eq.f32.partialorder %v8841_v0, 0.0 }
 0x5df   : > { %v4675_v12 = vmul.f32 %v4659_v31, %v4659_v31  ;;  %v4658_v5 = vsub.f32 %v4530_v44, %v4635_v17  ;;  %v8836_v29 = vadd.f32 %v4672_v8, %v4664_v3  ;;  %vm4709_vm12 = vcmp.eq.f32.partialorder %v8832_v20, inf }
 0x5e0   : > { %v5916_v9 = vpop.f32.mrf.mxu0  ;;  %v4712_v56 = vand.u32 2147483648, %v8832_v20  ;;  %vm4711_vm1 = vcmp.eq.f32.partialorder %v8832_v20, 0.0 }
 0x5e1   : > { %v8828_v57 = vadd.f32 %v4675_v12, %v4667_v24  ;;  %v4674_v53 = vmul.f32 %v4658_v5, %v4658_v5  ;;  %v4661_v11 = vsub.f32 %v5916_v9, %v5944_v15  ;;  %vm4702_vm0 = vcmp.eq.f32.partialorder %v8836_v29, inf }
 0x5e2   : > { %v4540_v51 = vpop.f32.mrf.mxu0  ;;  %vm4704_vm2 = vcmp.eq.f32.partialorder %v8836_v29, 0.0  ;;  %v4698_v9 = vand.u32 2147483648, %v8839_v26 }
 0x5e3   : > { %v8830_v33 = vadd.f32 %v4674_v53, %v4666_v47  ;;  %v4677_v55 = vmul.f32 %v4661_v11, %v4661_v11  ;;  %v4660_v25 = vsub.f32 %v4540_v51, %v4645_v14  ;;  %6451 = vrsqrt.f32 %v8828_v57  ;;  %v4844_v14 = vld [vmem:[%s8953_s5 + $0x8] sm:$0xff] }
 0x5e4   : > { %vm4723_vm7 = vcmp.eq.f32.partialorder %v8828_v57, inf  ;;  %v4726_v63 = vand.u32 2147483648, %v8828_v57  ;;  %vm4725_vm10 = vcmp.eq.f32.partialorder %v8828_v57, 0.0  ;;  %v4705_v47 = vand.u32 2147483648, %v8836_v29  ;;  %5979 = vmatprep.subr.mxu1 %v4844_v14 }
 0x5e5   : > { %v4685_v34 = vadd.f32 %v4677_v55, %v4669_v2  ;;  %v4676_v36 = vmul.f32 %v4660_v25, %v4660_v25  ;;  %6453 = vrsqrt.f32 %v8830_v33  ;;  %vm4716_vm6 = vcmp.eq.f32.partialorder %v8830_v33, inf  ;;  %v4745_v2 = vld [vmem:[#allocation11 + $0x18] sm:$0xff]  ;;  %5980 = vmatpush3.msra.mxu1 %v4844_v14 }
 0x5e6   : > { %v4719_v18 = vand.u32 2147483648, %v8830_v33  ;;  %vm4718_vm9 = vcmp.eq.f32.partialorder %v8830_v33, 0.0  ;;  %v4691_v53 = vand.u32 2147483648, %v8841_v0  ;;  %5981 = vmatprep.subr.mxu1 %v4843_v32 }
 0x5e7   : > { %6455 = vrsqrt.f32 %v4685_v34  ;;  %v4684_v7 = vadd.f32 %v4676_v36, %v4668_v39  ;;  %vm4737_vm4 = vcmp.eq.f32.partialorder %v4685_v34, inf  ;;  %v4740_v10 = vand.u32 2147483648, %v4685_v34  ;;  %5982 = vmatpush3.msra.mxu1 %v4843_v32 }
 0x5e8   : > { %6457 = vrsqrt.f32 %v8832_v20  ;;  %vm4739_vm13 = vcmp.eq.f32.partialorder %v4685_v34, 0.0 }
 0x5e9   : > { %6459 = vrsqrt.f32 %v4684_v7  ;;  %vm4730_vm3 = vcmp.eq.f32.partialorder %v4684_v7, inf  ;;  %v4733_v41 = vand.u32 2147483648, %v4684_v7  ;;  %vm4732_vm15 = vcmp.eq.f32.partialorder %v4684_v7, 0.0 }
 0x5ea   : > { %6461 = vrsqrt.f32 %v8836_v29 }
 0x5eb   : > { %6463 = vrsqrt.f32 %v8839_v26 }
 0x5ec   : > { %6465 = vrsqrt.f32 %v8841_v0 }
 0x5f0   : > { %v6452_v22 = vpop.eup %6451 }
 0x5f1   : > { %v4722_v27 = vmul.f32 %v6452_v22, %v8828_v57 }
 0x5f2   : > { %v6454_v46 = vpop.eup %6453 }
 0x5f3   : > { %v4715_v61 = vmul.f32 %v6454_v46, %v8830_v33  ;;  %v4724_v60 = vsel %vm4723_vm7, %v8828_v57, %v4722_v27 }
 0x5f4   : > { %v6456_v62 = vpop.eup %6455  ;;  %v4727_v1 = vsel %vm4725_vm10, %v4726_v63, %v4724_v60 }
 0x5f5   : > { %v6458_v43 = vpop.eup %6457  ;;  %v4736_v54 = vmul.f32 %v6456_v62, %v4685_v34  ;;  %v4717_v23 = vsel %vm4716_vm6, %v8830_v33, %v4715_v61 }
 0x5f6   : > { %v6460_v21 = vpop.eup %6459  ;;  %v4708_v17 = vmul.f32 %v6458_v43, %v8832_v20  ;;  %v4720_v24 = vsel %vm4718_vm9, %v4719_v18, %v4717_v23 }
 0x5f7   : > { %v4738_v49 = vsel %vm4737_vm4, %v4685_v34, %v4736_v54  ;;  %v4729_v48 = vmul.f32 %v6460_v21, %v4684_v7  ;;  %v6462_v13 = vpop.eup %6461  ;;  %vm9174_vm4 = vcmask 523264   ;;  %v4974_v21 = vstv %s322_s12 }
 0x5f8   : > { %v4741_v4 = vsel %vm4739_vm13, %v4740_v10, %v4738_v49  ;;  %v6464_v35 = vpop.eup %6463  ;;  %v4701_v59 = vmul.f32 %v6462_v13, %v8836_v29  ;;  %v4710_v15 = vsel %vm4709_vm12, %v8832_v20, %v4708_v17  ;;  %vm9175_vm13 = vmmov %vm9174_vm4  ;;  %vm4948_vm12 = vcmask 261120  }
 0x5f9   : > { %5945 = vmatprep.subr.mxu0 %v4741_v4  ;;  %v4731_v16 = vsel %vm4730_vm3, %v4684_v7, %v4729_v48  ;;  %v6466_v31 = vpop.eup %6465  ;;  %v4694_v44 = vmul.f32 %v6464_v35, %v8839_v26  ;;  %v4713_v40 = vsel %vm4711_vm1, %v4712_v56, %v4710_v15  ;;  %vm9176_vm3 = vmmov %vm9174_vm4 }
 0x5fa   : > { %5946 = vmatpush3.msra.mxu0 %v4741_v4  ;;  %v4734_v19 = vsel %vm4732_vm15, %v4733_v41, %v4731_v16  ;;  %v4703_v12 = vsel %vm4702_vm0, %v8836_v29, %v4701_v59  ;;  %v4687_v5 = vmul.f32 %v6466_v31, %v8841_v0  ;;  %vm9177_vm7 = vmmov %vm9176_vm3 }
 0x5fb   : > { %5947 = vmatprep.subr.mxu0 %v4734_v19  ;;  %v4696_v28 = vsel %vm4695_vm5, %v8839_v26, %v4694_v44  ;;  %v4706_v6 = vsel %vm4704_vm2, %v4705_v47, %v4703_v12  ;;  %vm9178_vm15 = vmmov %vm9176_vm3 }
 0x5fc   : > { %5948 = vmatpush3.msra.mxu0 %v4734_v19  ;;  %v4689_v42 = vsel %vm4688_vm8, %v8841_v0, %v4687_v5  ;;  %v4699_v57 = vsel %vm4697_vm11, %v4698_v9, %v4696_v28  ;;  %vm9179_vm6 = vmmov %vm9176_vm3 }
 0x5fd   : > { %5949 = vmatprep.subr.mxu0 %v4727_v1  ;;  %v4692_v11 = vsel %vm4690_vm14, %v4691_v53, %v4689_v42  ;;  %vm9180_vm10 = vmmov %vm9176_vm3 }
 0x5fe   : > { %5950 = vmatpush3.msra.mxu0 %v4727_v1 }
 0x5ff   : > { %5951 = vmatprep.subr.mxu0 %v4720_v24 }
 0x600   : > { %5952 = vmatpush3.msra.mxu0 %v4720_v24 }
 0x601   : > { %5953 = vmatprep.subr.mxu0 %v4713_v40 }
 0x602   : > { %5954 = vmatpush3.msra.mxu0 %v4713_v40 }
 0x603   : > { %5955 = vmatprep.subr.mxu0 %v4706_v6 }
 0x604   : > { %5956 = vmatpush3.msra.mxu0 %v4706_v6 }
 0x605   : > { %5957 = vmatprep.subr.mxu0 %v4699_v57 }
 0x606   : > { %5958 = vmatpush3.msra.mxu0 %v4699_v57 }
 0x607   : > { %5959 = vmatprep.subr.mxu0 %v4692_v11 }
 0x608   : > { %5960 = vmatpush3.msra.mxu0 %v4692_v11 }
 0x609   : > { %5962 = vmatmul.mubr.msk.f32.vlgmr.msra.gmra.mxu0 %vm9174_vm4, %v4743_v50 }
 0x60a   : > { %5964 = vmatprep.mubr.msk.f32.mxu0 %vm9175_vm13, %v4744_v45 }
 0x60d   : > { %5965 = vmatmul.mubr.msk.f32.gmra.mxu0 %vm9176_vm3, %v4745_v2 }
 0x6c9   : > { %v5963_v51 = vpop.f32.mrf.mxu0 }
 0x6cb   : > { %v4824_v8 = vpop.f32.mrf.mxu0 }
 0x6cc   : > { %5983 = vmatprep.mubr.msk.f32.mxu1 %vm9177_vm7, %v4824_v8 }
 0x6cd   : > { %v5966_v33 = vpop.f32.mrf.mxu0  ;;  %5984 = vmatmul.mubr.msk.f32.vlgmr.msra.gmra.mxu1 %vm9178_vm15, %v5963_v51 }
 0x6cf   : > { %v4834_v55 = vpop.f32.mrf.mxu0 }
 0x6d0   : > { %5986 = vmatprep.mubr.msk.f32.mxu1 %vm9179_vm6, %v4834_v55 }
 0x6d1   : > { %5987 = vmatmul.mubr.msk.f32.gmra.mxu1 %vm9180_vm10, %v5966_v33 }
 0x78d   : > { %v5985_v25 = vpop.f32.mrf.mxu1 }
 0x78e   : > { %v4950_v20 = vsel %vm4948_vm12, %v5985_v25, 0.0 }
 0x78f   : > { %v4929_v30 = vpop.f32.mrf.mxu1 }
 0x790   : > { %v4949_v3 = vsel %vm4948_vm12, %v4929_v30, 0.0 }
 0x791   : > { %v5988_v39 = vpop.f32.mrf.mxu1  ;;  %v4951_v58 = vadd.f32 %v4950_v20, %v4949_v3 }
 0x792   : > { %v4954_v52 = vsel %vm4948_vm12, %v5988_v39, 0.0 }
 0x793   : > { %v4939_v34 = vpop.f32.mrf.mxu1 }
 0x794   : > { %v4952_v36 = vsel %vm4948_vm12, %v4939_v34, 0.0 }
 0x795   : > { %v4953_v37 = vadd.f32 %v4952_v36, %v4951_v58 }
 0x797   : > { %v4955_v29 = vadd.f32 %v4954_v52, %v4953_v37 }
 0x799   : > { %4956 = vadd.xlane.f32.xlu0 %v4955_v29 }
 0x822   : > { %v4957_v7 = vpop.xlane.xlu0 %4956 }
 0x823   : > { %v4958_v38 = vrot.slane %v4957_v7, 4 }
 0x825   : > { %v4959_v26 = vadd.f32 %v4958_v38, %v4957_v7 }
 0x827   : > { %v4960_v0 = vrot.slane %v4959_v26, 2 }
 0x829   : > { %v4961_v22 = vadd.f32 %v4960_v0, %v4959_v26 }
 0x82b   : > { %v4962_v46 = vrot.slane %v4961_v22, 1 }
 0x82d   : > { %v4963_v62 = vadd.f32 %v4962_v46, %v4961_v22 }
 0x82f   : > { %6025 = vpush %v4963_v62 }
 0x860   : > { %s6026_s19 = spop %6025 }
 0x861   : > { %v4965_v43 = vstv %s6026_s19  ;;  %s6606_s19 = scalar_lea.vmem %s8902_s20, 512 }
 0x862   : > { %6467 = vrcp.f32 %v4965_v43  ;;  %p6607_p8 = scmp.ne.s32.totalorder %s8902_s20, %s6606_s19 }
 0x864   : > { %p6608_p0 = pnand %p6607_p8, %p9181_p11 }
 0x866   : > { %p6609_p9 = pneg %p6608_p0 }
 0x86f   : > { %v6468_v54 = vpop.eup %6467 }
 0x870   : > { %6027 = vpush %v6468_v54 }
 0x8a1   : > { %s6028_s11 = spop %6027 }
 0x8a2   : > { %s4968_s16 = smul.f32 %s6028_s11, %s320_s17  ;;  %s6612_s17 = scalar_lea.vmem %s6611_s29, 1024 }
 0x8a3   : > { %p6614_p6 = scmp.lt.s32.totalorder %s6612_s17, %s6606_s19 }
 0x8a4   : > { %v4969_v27 = vstv %s4968_s16 }
 0x8a5   : > { %v4970_v10 = vmul.f32 %v4969_v27, %v4929_v30  ;;  %v4971_v49 = vmul.f32 %v5985_v25, %v4969_v27  ;;  %v4972_v48 = vmul.f32 %v4969_v27, %v4939_v34  ;;  %v4973_v61 = vmul.f32 %v5988_v39, %v4969_v27  ;;  %p6615_p13 = por %p6614_p6, %p6613_p5 }
 0x8a7   : > { %v4975_v13 = vadd.f32 %v4974_v21, %v4970_v10  ;;  %v4976_v4 = vadd.f32 %v4974_v21, %v4971_v49  ;;  %v4977_v41 = vadd.f32 %v4974_v21, %v4972_v48  ;;  %v4978_v16 = vadd.f32 %v4974_v21, %v4973_v61  ;;  %p6616_p10 = pnand %p6615_p13, %p6609_p9 }
 0x8a9   : > { %4979 = vst.msk [vmem:[%s302_s18] sm:$0xff] %vm4948_vm12, %v4975_v13  ;;  %4980 = vst.msk [vmem:[%s302_s18 + $0x8] sm:$0xff] %vm4948_vm12, %v4976_v4 }
 0x8aa   : > { %4981 = vst.msk [vmem:[%s302_s18 + $0x10] sm:$0xff] %vm4948_vm12, %v4977_v41  ;;  %4982 = vst.msk [vmem:[%s302_s18 + $0x18] sm:$0xff] %vm4948_vm12, %v4978_v16 }
 0x8ab   : > { %6619 = shalt.err (!%p6616_p10)
}
 0x8ac   : > { %s6620_s10 = scalar_lea.hbm %s8900_s9, 512  ;;  %s6624_s11 = scalar_lea.hbm %s8954_s6, 1024 }
 0x8ad   : > { %p6621_p1 = scmp.ne.s32.totalorder %s8900_s9, %s6620_s10  ;;  %p6625_p12 = scmp.lt.s32.totalorder %s8900_s9, %s8954_s6 }
 0x8ae   : > { %p6626_p4 = scmp.lt.s32.totalorder %s6624_s11, %s6620_s10 }
 0x8af   : > { %p6622_p3 = pnand %p6621_p1, %p9181_p11 }
 0x8b0   : > { %p6627_p7 = por %p6626_p4, %p6625_p12 }
 0x8b1   : > { %p6623_p2 = pneg %p6622_p3 }
 0x8b3   : > { %p6628_p8 = pnand %p6627_p7, %p6623_p2 }
 0x8b5   : > { %6631 = shalt.err (!%p6628_p8)
}
 0x8b6   : > { %s6698_s18 = smov 128   ;;  %s6699_s26 = smov 8  }
 0x8b7   : > { %6049 = dma.vmem_to_hbm [thread:$0]  (%p9181_p11), %s8902_s20, 512, %s8900_s9, %s8908_s25, %s6698_s18, %s6698_s18, %s6699_s26  }
 0x8b8 PF: > { %p6081_p0 = scmp.ge.s32.totalorder %s6682_s24, 2  ;;  %s5012_s14 = sand.u32 1, %s6670_s21  }
 0x8b9   : > { %p9182_p9 = scmp.ne.s32.totalorder %s9012_s8, 0  ;;  %s5013_s19 = scalar_lea.sflag [#allocation5], %s5012_s14 }
 0x8bb   : > { %p6068_p5 = pnand %p6081_p0, %p9182_p9 }
 0x8bd   : > { %p6069_p6 = pneg %p6068_p5 }
 0x8bf   : > { %6665 = dma.done.wait (%p6069_p6), %s5013_s19, 512  }
 0x8c0   : > { %6667 = vsyncadd (%p6069_p6), %s5013_s19, 4294966784  ;;  %p20_p13 = scmp.ge.s32.totalorder %s6760_s27, 4   ;;  %s9183_s21 = smov %s6674_s22 }
 0x8c1   : > { %s9184_s22 = smov %s6678_s23  ;;  %s9185_s23 = smov %s6771_s30 }
 0x8c2   : > { %s9186_s24 = smov %s6760_s27  ;;  %22 = sbr.rel (!%p20_p13) target bundleno = 7 (0x7), region = 136 }
 0x8c7   :  { %5018 = vsyncpa [#allocation4], 1 }
 0x8c8   :  { %5020 = vsyncpa [#allocation4 + $0x1], 1 }
 0x8c9   :  { %5021 = vsyncpa [#allocation9], 1 }
 0x8ca   :  { %5022 = vsyncpa [#allocation12], 1 }
 0x8cb   :  { %5023 = vsyncpa [#allocation5], 1 }
 0x8cc   :  { %5025 = vsyncpa [#allocation5 + $0x1], 1 }
 0x8cd   :  { %5026 = vsyncpa [#allocation6], 1 }
 0x8ce   :  { %5028 = vsyncpa [#allocation6 + $0x1], 1 }

</bundles_post_ra>
